<compile_context>
chip_gen: v7x
topology: tpu7x:2x2x1
jax: 0.10.0
libtpu: 0.0.40
codegen_flags: <defaults>
</compile_context>

<pallas_src>
import functools

import numpy as np
import jax
import jax.numpy as jnp
from jax.experimental import pallas as pl
from jax.experimental.pallas import tpu as pltpu

# ----------------------------------------------------------------------------
# db6 filter bank (identical to pywt 'db6' / pytorch_wavelets construction)
# ----------------------------------------------------------------------------
_DB6_REC_LO = np.array([
    0.11154074335008017, 0.4946238903983854, 0.7511339080215775,
    0.3152503517092432, -0.22626469396516913, -0.12976686756709563,
    0.09750160558707936, 0.02752286553001629, -0.031582039318031156,
    0.0005538422009938016, 0.004777257511010651, -0.00107730108499558,
], dtype=np.float64)

REC_LO = _DB6_REC_LO                      # synthesis low-pass (pywt rec_lo)
DEC_LO = REC_LO[::-1].copy()              # analysis low-pass (pywt dec_lo)
REC_HI = DEC_LO.copy()                    # qmf: reverse + negate odd taps
REC_HI[1::2] = -REC_HI[1::2]
DEC_HI = REC_HI[::-1].copy()
# pytorch_wavelets prep_filt_afb1d reverses the analysis filters and then uses
# cross-correlation (F.conv2d), so the effective correlation taps are:
H0R = DEC_LO[::-1].copy()
H1R = DEC_HI[::-1].copy()
L = 12                                    # db6 filter length

PW = 128                                  # padded spatial width = one full lane-dim vreg


# ----------------------------------------------------------------------------
# symmetric (half-sample) padding indices — same "reflect" as pytorch_wavelets
# ----------------------------------------------------------------------------
def _reflect(x, minx, maxx):
    rng = maxx - minx
    rng_by_2 = 2.0 * rng
    mod = np.fmod(x - minx, rng_by_2)
    normed = np.where(mod < 0.0, mod + rng_by_2, mod)
    out = np.where(normed >= rng, rng_by_2 - normed, normed) + minx
    return out.astype(np.int64)


def _sym_pad_indices(n, pad_l, pad_r):
    return _reflect(np.arange(-pad_l, n + pad_r, dtype=np.float64), -0.5, n - 0.5)


# ----------------------------------------------------------------------------
# trace-time constant matrices (numpy): one DWT / IDWT level as a dense map
# ----------------------------------------------------------------------------
def _analysis_matrices(n):
    """lo = x @ A_lo, hi = x @ A_hi for one symmetric-mode db6 DWT level.

    lo[k] = sum_t x_pad[2k + t] * H0R[t] with x_pad[j] = x[idx[j]], so
    A_lo[i, k] = sum_{t : idx[2k+t] == i} H0R[t]   (ditto for hi / H1R).
    """
    outsize = (n + L - 1) // 2                 # pywt.dwt_coeff_len, symmetric mode
    p = 2 * (outsize - 1) - n + L
    idx = _sym_pad_indices(n, p // 2, (p + 1) // 2)
    a_lo = np.zeros((n, outsize), np.float64)
    a_hi = np.zeros((n, outsize), np.float64)
    for k in range(outsize):
        for t in range(L):
            i = int(idx[2 * k + t])
            a_lo[i, k] += H0R[t]
            a_hi[i, k] += H1R[t]
    return a_lo, a_hi, outsize


def _synthesis_matrices(n):
    """y = lo @ S_lo + hi @ S_hi for one db6 IDWT level (transposed stride-2
    conv with padding L-2, even/odd output phases interleaved into y)."""
    m = n - (L // 2 - 1)
    s_lo = np.zeros((n, 2 * m), np.float64)
    s_hi = np.zeros((n, 2 * m), np.float64)
    for q in range(m):
        for i in range(L // 2):
            k = q + i
            s_lo[k, 2 * q] += REC_LO[L - 2 - 2 * i]
            s_lo[k, 2 * q + 1] += REC_LO[L - 1 - 2 * i]
            s_hi[k, 2 * q] += REC_HI[L - 2 - 2 * i]
            s_hi[k, 2 * q + 1] += REC_HI[L - 1 - 2 * i]
    return s_lo, s_hi, 2 * m


def _pad_mat(m):
    """Embed a (n, k) matrix into a lane-aligned (PW, PW) block (zeros elsewhere)."""
    out = np.zeros((PW, PW), np.float64)
    out[: m.shape[0], : m.shape[1]] = m
    return out


# ----------------------------------------------------------------------------
# fused Pallas kernel: one batch element per grid step
# ----------------------------------------------------------------------------
def _waveconv1d_kernel(x_ref, w1_ref, *refs):
    """Fused DWT -> mul1d -> IDWT for one batch element (grid axis 0 = batch).

    refs = 4*level constant (PW, PW) filter-bank matrices
           [A_lo_0, A_hi_0, ..., A_lo_{J-1}, A_hi_{J-1},
            S_lo_0, S_hi_0, ..., S_lo_{J-1}, S_hi_{J-1}]
           followed by the output ref.
    The whole coefficient pyramid lives in VMEM/vregs (a handful of (C, 128)
    tiles); no intermediate HBM traffic, single kernel launch.
    """
    mat_refs, out_ref = refs[:-1], refs[-1]
    level = len(mat_refs) // 4
    a_refs = mat_refs[: 2 * level]
    s_refs = mat_refs[2 * level:]

    cur = x_ref[0]              # (C_in, PW)  f32, zero beyond the valid length
    w1 = w1_ref[...]            # (C_in, C_out, PW) f32, zero beyond modes1

    # --- forward DWT: each level = two lane-aligned MXU matmuls -------------
    details = []
    for j in range(level):
        details.append(jnp.dot(cur, a_refs[2 * j + 1][...],
                               preferred_element_type=jnp.float32))
        cur = jnp.dot(cur, a_refs[2 * j][...],
                      preferred_element_type=jnp.float32)

    # --- mul1d = einsum('bix,iox->box') for this batch element --------------
    def mul1d(v):
        # out[o, m] = sum_i v[i, m] * w1[i, o, m]
        # TODO(synk): at production channel counts (e.g. 64x64) route this
        # through a batched dot_general on the MXU; at C_in=C_out=4 this
        # C_in-term VPU contraction is already optimal and lowers robustly.
        acc = v[0:1, :] * w1[0]
        for i in range(1, w1.shape[0]):
            acc = acc + v[i:i + 1, :] * w1[i]
        return acc

    cur = mul1d(cur)                    # approximation coefficients
    details[-1] = mul1d(details[-1])    # coarsest detail (reference uses weights1 here too)

    # --- inverse DWT: the crop-by-one step is encoded by the zero rows of the
    #     padded synthesis matrices, the phase interleave by their columns ----
    for j in range(level - 1, -1, -1):
        cur = (jnp.dot(cur, s_refs[2 * j][...],
                       preferred_element_type=jnp.float32)
               + jnp.dot(details[j], s_refs[2 * j + 1][...],
                         preferred_element_type=jnp.float32))

    out_ref[0] = cur.astype(out_ref.dtype)


# ----------------------------------------------------------------------------
# wrapper
# ----------------------------------------------------------------------------
def wave_conv1d_forward(x, weights1, weights2, level):
    # TODO(synk): weights2 is allocated by the reference module but never used
    # in its forward; kept in the signature for parity.
    del weights2
    b, cin, n0 = x.shape
    cin_w, cout, modes1 = weights1.shape
    if cin_w != cin or cin != cout:
        raise ValueError("WaveConv1d requires in_channels == out_channels")
    if n0 > PW or modes1 > PW:
        raise ValueError("spatial length exceeds the padded lane width")

    # ---- trace-time plan: per-level constant filter-bank matrices ----------
    a_mats, d_lens = [], []
    n = n0
    for _ in range(level):
        a_lo, a_hi, out = _analysis_matrices(n)
        a_mats += [_pad_mat(a_lo), _pad_mat(a_hi)]
        d_lens.append(out)
        n = out
    yl_len = n
    if yl_len != modes1 or d_lens[-1] != modes1:
        raise ValueError("weights1 spatial size must equal the level-J "
                         "approximation length (modes1)")

    s_mats = [None] * (2 * level)
    cur_len = yl_len
    for j in range(level - 1, -1, -1):
        nd = d_lens[j]
        if cur_len < nd:
            raise ValueError("approximation shorter than detail band")
        s_lo, s_hi, out_len = _synthesis_matrices(nd)
        s_mats[2 * j], s_mats[2 * j + 1] = _pad_mat(s_lo), _pad_mat(s_hi)
        cur_len = out_len
    n_out = cur_len
    if n_out > PW:
        raise ValueError("reconstructed length exceeds the padded lane width")

    mats = [jnp.asarray(m, jnp.float32) for m in (a_mats + s_mats)]

    # lane-dense kernel I/O: zero-pad the spatial axis to PW = 128 lanes
    x_p = jnp.pad(x.astype(jnp.float32), ((0, 0), (0, 0), (0, PW - n0)))
    w1_p = jnp.pad(weights1.astype(jnp.float32),
                   ((0, 0), (0, 0), (0, PW - modes1)))

    in_specs = [
        pl.BlockSpec((1, cin, PW), lambda i: (i, 0, 0)),        # x: one batch / step
        pl.BlockSpec((cin, cout, PW), lambda i: (0, 0, 0)),     # weights1 (resident)
    ]
    in_specs += [pl.BlockSpec((PW, PW), lambda i: (0, 0))] * len(mats)

    # advisory cost so XLA schedules the custom call sensibly
    flops = int(b * (4 * level * 2 * cin * PW * PW + 2 * 2 * cin * cout * PW))
    bytes_accessed = int(4 * (b * cin * PW + cin * cout * PW
                              + len(mats) * PW * PW + b * cout * PW))

    y_p = pl.pallas_call(
        _waveconv1d_kernel,
        grid=(b,),                                   # one batch element per step
        in_specs=in_specs,
        out_specs=pl.BlockSpec((1, cout, PW), lambda i: (i, 0, 0)),
        out_shape=jax.ShapeDtypeStruct((b, cout, PW), jnp.float32),
        compiler_params=pltpu.CompilerParams(
            dimension_semantics=("parallel",)),       # uses both TCs on v7x
        cost_estimate=pl.CostEstimate(flops=flops, transcendentals=0,
                                      bytes_accessed=bytes_accessed),
    )(x_p, w1_p, *mats)

    return y_p[:, :, :n_out]


if __name__ == "__main__":
    level = 6
    B, Cin, Cout, N = 2, 4, 4, 16          # in_channels == out_channels (as in WNO)

    # modes1 = length of the level-J approximation of the dummy signal (length N)
    modes1 = N
    for _ in range(level):
        modes1 = (modes1 + L - 1) // 2

    key = jax.random.PRNGKey(0)
    k1, k2, kx = jax.random.split(key, 3)
    scale = 1.0 / (Cin * Cout)
    weights1 = scale * jax.random.uniform(k1, (Cin, Cout, modes1), dtype=jnp.float32)
    weights2 = scale * jax.random.uniform(k2, (Cin, Cout, modes1), dtype=jnp.float32)
    x = jax.random.normal(kx, (B, Cin, N), dtype=jnp.float32)

    fwd = jax.jit(functools.partial(wave_conv1d_forward, level=level))
    y = fwd(x, weights1, weights2)
    y = jax.block_until_ready(y)
    assert y.shape == (B, Cout, N), y.shape
    assert jnp.all(jnp.isfinite(y))
    print("KERNEL_OK")
</pallas_src>

<mosaic_0001>
module attributes {stable_mosaic.version = 11 : i64} {
  func.func @_waveconv1d_kernel(%arg0: i32, %arg1: memref<1x4x128xf32, #tpu.memory_space<vmem>>, %arg2: memref<4x4x128xf32, #tpu.memory_space<vmem>>, %arg3: memref<128x128xf32, #tpu.memory_space<vmem>>, %arg4: memref<128x128xf32, #tpu.memory_space<vmem>>, %arg5: memref<128x128xf32, #tpu.memory_space<vmem>>, %arg6: memref<128x128xf32, #tpu.memory_space<vmem>>, %arg7: memref<128x128xf32, #tpu.memory_space<vmem>>, %arg8: memref<128x128xf32, #tpu.memory_space<vmem>>, %arg9: memref<128x128xf32, #tpu.memory_space<vmem>>, %arg10: memref<128x128xf32, #tpu.memory_space<vmem>>, %arg11: memref<128x128xf32, #tpu.memory_space<vmem>>, %arg12: memref<128x128xf32, #tpu.memory_space<vmem>>, %arg13: memref<128x128xf32, #tpu.memory_space<vmem>>, %arg14: memref<128x128xf32, #tpu.memory_space<vmem>>, %arg15: memref<128x128xf32, #tpu.memory_space<vmem>>, %arg16: memref<128x128xf32, #tpu.memory_space<vmem>>, %arg17: memref<128x128xf32, #tpu.memory_space<vmem>>, %arg18: memref<128x128xf32, #tpu.memory_space<vmem>>, %arg19: memref<128x128xf32, #tpu.memory_space<vmem>>, %arg20: memref<128x128xf32, #tpu.memory_space<vmem>>, %arg21: memref<128x128xf32, #tpu.memory_space<vmem>>, %arg22: memref<128x128xf32, #tpu.memory_space<vmem>>, %arg23: memref<128x128xf32, #tpu.memory_space<vmem>>, %arg24: memref<128x128xf32, #tpu.memory_space<vmem>>, %arg25: memref<128x128xf32, #tpu.memory_space<vmem>>, %arg26: memref<128x128xf32, #tpu.memory_space<vmem>>, %arg27: memref<1x4x128xf32, #tpu.memory_space<vmem>>) attributes {dimension_semantics = [#tpu.dimension_semantics<parallel>], iteration_bounds = array<i64: 2>, scalar_prefetch = 0 : i64, scratch_operands = 0 : i64, tpu.core_type = #tpu.core_type<tc>, window_params = [{transform_indices = @transform_0, window_bounds = array<i64: 1, 4, 128>}, {pipeline_mode = #tpu.pipeline_mode<synchronous>, transform_indices = @transform_1, window_bounds = array<i64: 4, 4, 128>}, {pipeline_mode = #tpu.pipeline_mode<synchronous>, transform_indices = @transform_2, window_bounds = array<i64: 128, 128>}, {pipeline_mode = #tpu.pipeline_mode<synchronous>, transform_indices = @transform_3, window_bounds = array<i64: 128, 128>}, {pipeline_mode = #tpu.pipeline_mode<synchronous>, transform_indices = @transform_4, window_bounds = array<i64: 128, 128>}, {pipeline_mode = #tpu.pipeline_mode<synchronous>, transform_indices = @transform_5, window_bounds = array<i64: 128, 128>}, {pipeline_mode = #tpu.pipeline_mode<synchronous>, transform_indices = @transform_6, window_bounds = array<i64: 128, 128>}, {pipeline_mode = #tpu.pipeline_mode<synchronous>, transform_indices = @transform_7, window_bounds = array<i64: 128, 128>}, {pipeline_mode = #tpu.pipeline_mode<synchronous>, transform_indices = @transform_8, window_bounds = array<i64: 128, 128>}, {pipeline_mode = #tpu.pipeline_mode<synchronous>, transform_indices = @transform_9, window_bounds = array<i64: 128, 128>}, {pipeline_mode = #tpu.pipeline_mode<synchronous>, transform_indices = @transform_10, window_bounds = array<i64: 128, 128>}, {pipeline_mode = #tpu.pipeline_mode<synchronous>, transform_indices = @transform_11, window_bounds = array<i64: 128, 128>}, {pipeline_mode = #tpu.pipeline_mode<synchronous>, transform_indices = @transform_12, window_bounds = array<i64: 128, 128>}, {pipeline_mode = #tpu.pipeline_mode<synchronous>, transform_indices = @transform_13, window_bounds = array<i64: 128, 128>}, {pipeline_mode = #tpu.pipeline_mode<synchronous>, transform_indices = @transform_14, window_bounds = array<i64: 128, 128>}, {pipeline_mode = #tpu.pipeline_mode<synchronous>, transform_indices = @transform_15, window_bounds = array<i64: 128, 128>}, {pipeline_mode = #tpu.pipeline_mode<synchronous>, transform_indices = @transform_16, window_bounds = array<i64: 128, 128>}, {pipeline_mode = #tpu.pipeline_mode<synchronous>, transform_indices = @transform_17, window_bounds = array<i64: 128, 128>}, {pipeline_mode = #tpu.pipeline_mode<synchronous>, transform_indices = @transform_18, window_bounds = array<i64: 128, 128>}, {pipeline_mode = #tpu.pipeline_mode<synchronous>, transform_indices = @transform_19, window_bounds = array<i64: 128, 128>}, {pipeline_mode = #tpu.pipeline_mode<synchronous>, transform_indices = @transform_20, window_bounds = array<i64: 128, 128>}, {pipeline_mode = #tpu.pipeline_mode<synchronous>, transform_indices = @transform_21, window_bounds = array<i64: 128, 128>}, {pipeline_mode = #tpu.pipeline_mode<synchronous>, transform_indices = @transform_22, window_bounds = array<i64: 128, 128>}, {pipeline_mode = #tpu.pipeline_mode<synchronous>, transform_indices = @transform_23, window_bounds = array<i64: 128, 128>}, {pipeline_mode = #tpu.pipeline_mode<synchronous>, transform_indices = @transform_24, window_bounds = array<i64: 128, 128>}, {pipeline_mode = #tpu.pipeline_mode<synchronous>, transform_indices = @transform_25, window_bounds = array<i64: 128, 128>}, {transform_indices = @transform_26, window_bounds = array<i64: 1, 4, 128>}]} {
    %c0 = arith.constant 0 : index
    %c0_0 = arith.constant 0 : index
    %c0_1 = arith.constant 0 : index
    %0 = vector.load %arg1[%c0, %c0_0, %c0_1] : memref<1x4x128xf32, #tpu.memory_space<vmem>>, vector<1x4x128xf32>
    %1 = vector.shape_cast %0 : vector<1x4x128xf32> to vector<4x128xf32>
    %c0_2 = arith.constant 0 : index
    %c0_3 = arith.constant 0 : index
    %c0_4 = arith.constant 0 : index
    %2 = vector.load %arg2[%c0_2, %c0_3, %c0_4] : memref<4x4x128xf32, #tpu.memory_space<vmem>>, vector<4x4x128xf32>
    %c0_5 = arith.constant 0 : index
    %c0_6 = arith.constant 0 : index
    %3 = vector.load %arg4[%c0_5, %c0_6] : memref<128x128xf32, #tpu.memory_space<vmem>>, vector<128x128xf32>
    %cst = arith.constant dense<0.000000e+00> : vector<4x128xf32>
    %4 = tpu.matmul %1, %3, %cst {dimension_numbers = #tpu.dot_dimension_numbers<[1], [0], [0], [1], [0, 0, 1, 1], [], []>} : vector<4x128xf32>, vector<128x128xf32>, vector<4x128xf32> -> vector<4x128xf32>
    %c0_7 = arith.constant 0 : index
    %c0_8 = arith.constant 0 : index
    %5 = vector.load %arg3[%c0_7, %c0_8] : memref<128x128xf32, #tpu.memory_space<vmem>>, vector<128x128xf32>
    %cst_9 = arith.constant dense<0.000000e+00> : vector<4x128xf32>
    %6 = tpu.matmul %1, %5, %cst_9 {dimension_numbers = #tpu.dot_dimension_numbers<[1], [0], [0], [1], [0, 0, 1, 1], [], []>} : vector<4x128xf32>, vector<128x128xf32>, vector<4x128xf32> -> vector<4x128xf32>
    %c0_10 = arith.constant 0 : index
    %c0_11 = arith.constant 0 : index
    %7 = vector.load %arg6[%c0_10, %c0_11] : memref<128x128xf32, #tpu.memory_space<vmem>>, vector<128x128xf32>
    %cst_12 = arith.constant dense<0.000000e+00> : vector<4x128xf32>
    %8 = tpu.matmul %6, %7, %cst_12 {dimension_numbers = #tpu.dot_dimension_numbers<[1], [0], [0], [1], [0, 0, 1, 1], [], []>} : vector<4x128xf32>, vector<128x128xf32>, vector<4x128xf32> -> vector<4x128xf32>
    %c0_13 = arith.constant 0 : index
    %c0_14 = arith.constant 0 : index
    %9 = vector.load %arg5[%c0_13, %c0_14] : memref<128x128xf32, #tpu.memory_space<vmem>>, vector<128x128xf32>
    %cst_15 = arith.constant dense<0.000000e+00> : vector<4x128xf32>
    %10 = tpu.matmul %6, %9, %cst_15 {dimension_numbers = #tpu.dot_dimension_numbers<[1], [0], [0], [1], [0, 0, 1, 1], [], []>} : vector<4x128xf32>, vector<128x128xf32>, vector<4x128xf32> -> vector<4x128xf32>
    %c0_16 = arith.constant 0 : index
    %c0_17 = arith.constant 0 : index
    %11 = vector.load %arg8[%c0_16, %c0_17] : memref<128x128xf32, #tpu.memory_space<vmem>>, vector<128x128xf32>
    %cst_18 = arith.constant dense<0.000000e+00> : vector<4x128xf32>
    %12 = tpu.matmul %10, %11, %cst_18 {dimension_numbers = #tpu.dot_dimension_numbers<[1], [0], [0], [1], [0, 0, 1, 1], [], []>} : vector<4x128xf32>, vector<128x128xf32>, vector<4x128xf32> -> vector<4x128xf32>
    %c0_19 = arith.constant 0 : index
    %c0_20 = arith.constant 0 : index
    %13 = vector.load %arg7[%c0_19, %c0_20] : memref<128x128xf32, #tpu.memory_space<vmem>>, vector<128x128xf32>
    %cst_21 = arith.constant dense<0.000000e+00> : vector<4x128xf32>
    %14 = tpu.matmul %10, %13, %cst_21 {dimension_numbers = #tpu.dot_dimension_numbers<[1], [0], [0], [1], [0, 0, 1, 1], [], []>} : vector<4x128xf32>, vector<128x128xf32>, vector<4x128xf32> -> vector<4x128xf32>
    %c0_22 = arith.constant 0 : index
    %c0_23 = arith.constant 0 : index
    %15 = vector.load %arg10[%c0_22, %c0_23] : memref<128x128xf32, #tpu.memory_space<vmem>>, vector<128x128xf32>
    %cst_24 = arith.constant dense<0.000000e+00> : vector<4x128xf32>
    %16 = tpu.matmul %14, %15, %cst_24 {dimension_numbers = #tpu.dot_dimension_numbers<[1], [0], [0], [1], [0, 0, 1, 1], [], []>} : vector<4x128xf32>, vector<128x128xf32>, vector<4x128xf32> -> vector<4x128xf32>
    %c0_25 = arith.constant 0 : index
    %c0_26 = arith.constant 0 : index
    %17 = vector.load %arg9[%c0_25, %c0_26] : memref<128x128xf32, #tpu.memory_space<vmem>>, vector<128x128xf32>
    %cst_27 = arith.constant dense<0.000000e+00> : vector<4x128xf32>
    %18 = tpu.matmul %14, %17, %cst_27 {dimension_numbers = #tpu.dot_dimension_numbers<[1], [0], [0], [1], [0, 0, 1, 1], [], []>} : vector<4x128xf32>, vector<128x128xf32>, vector<4x128xf32> -> vector<4x128xf32>
    %c0_28 = arith.constant 0 : index
    %c0_29 = arith.constant 0 : index
    %19 = vector.load %arg12[%c0_28, %c0_29] : memref<128x128xf32, #tpu.memory_space<vmem>>, vector<128x128xf32>
    %cst_30 = arith.constant dense<0.000000e+00> : vector<4x128xf32>
    %20 = tpu.matmul %18, %19, %cst_30 {dimension_numbers = #tpu.dot_dimension_numbers<[1], [0], [0], [1], [0, 0, 1, 1], [], []>} : vector<4x128xf32>, vector<128x128xf32>, vector<4x128xf32> -> vector<4x128xf32>
    %c0_31 = arith.constant 0 : index
    %c0_32 = arith.constant 0 : index
    %21 = vector.load %arg11[%c0_31, %c0_32] : memref<128x128xf32, #tpu.memory_space<vmem>>, vector<128x128xf32>
    %cst_33 = arith.constant dense<0.000000e+00> : vector<4x128xf32>
    %22 = tpu.matmul %18, %21, %cst_33 {dimension_numbers = #tpu.dot_dimension_numbers<[1], [0], [0], [1], [0, 0, 1, 1], [], []>} : vector<4x128xf32>, vector<128x128xf32>, vector<4x128xf32> -> vector<4x128xf32>
    %c0_34 = arith.constant 0 : index
    %c0_35 = arith.constant 0 : index
    %23 = vector.load %arg14[%c0_34, %c0_35] : memref<128x128xf32, #tpu.memory_space<vmem>>, vector<128x128xf32>
    %cst_36 = arith.constant dense<0.000000e+00> : vector<4x128xf32>
    %24 = tpu.matmul %22, %23, %cst_36 {dimension_numbers = #tpu.dot_dimension_numbers<[1], [0], [0], [1], [0, 0, 1, 1], [], []>} : vector<4x128xf32>, vector<128x128xf32>, vector<4x128xf32> -> vector<4x128xf32>
    %c0_37 = arith.constant 0 : index
    %c0_38 = arith.constant 0 : index
    %25 = vector.load %arg13[%c0_37, %c0_38] : memref<128x128xf32, #tpu.memory_space<vmem>>, vector<128x128xf32>
    %cst_39 = arith.constant dense<0.000000e+00> : vector<4x128xf32>
    %26 = tpu.matmul %22, %25, %cst_39 {dimension_numbers = #tpu.dot_dimension_numbers<[1], [0], [0], [1], [0, 0, 1, 1], [], []>} : vector<4x128xf32>, vector<128x128xf32>, vector<4x128xf32> -> vector<4x128xf32>
    %27 = vector.extract_strided_slice %26 {offsets = [0, 0], sizes = [1, 128], strides = [1, 1]} : vector<4x128xf32> to vector<1x128xf32>
    %28 = vector.extract_strided_slice %2 {offsets = [0, 0, 0], sizes = [1, 4, 128], strides = [1, 1, 1]} : vector<4x4x128xf32> to vector<1x4x128xf32>
    %29 = vector.shape_cast %28 : vector<1x4x128xf32> to vector<4x128xf32>
    %30 = vector.broadcast %27 : vector<1x128xf32> to vector<4x128xf32>
    %31 = arith.mulf %30, %29 : vector<4x128xf32>
    %32 = vector.extract_strided_slice %26 {offsets = [1, 0], sizes = [1, 128], strides = [1, 1]} : vector<4x128xf32> to vector<1x128xf32>
    %33 = vector.extract_strided_slice %2 {offsets = [1, 0, 0], sizes = [1, 4, 128], strides = [1, 1, 1]} : vector<4x4x128xf32> to vector<1x4x128xf32>
    %34 = vector.shape_cast %33 : vector<1x4x128xf32> to vector<4x128xf32>
    %35 = vector.broadcast %32 : vector<1x128xf32> to vector<4x128xf32>
    %36 = arith.mulf %35, %34 : vector<4x128xf32>
    %37 = arith.addf %31, %36 : vector<4x128xf32>
    %38 = vector.extract_strided_slice %26 {offsets = [2, 0], sizes = [1, 128], strides = [1, 1]} : vector<4x128xf32> to vector<1x128xf32>
    %39 = vector.extract_strided_slice %2 {offsets = [2, 0, 0], sizes = [1, 4, 128], strides = [1, 1, 1]} : vector<4x4x128xf32> to vector<1x4x128xf32>
    %40 = vector.shape_cast %39 : vector<1x4x128xf32> to vector<4x128xf32>
    %41 = vector.broadcast %38 : vector<1x128xf32> to vector<4x128xf32>
    %42 = arith.mulf %41, %40 : vector<4x128xf32>
    %43 = arith.addf %37, %42 : vector<4x128xf32>
    %44 = vector.extract_strided_slice %26 {offsets = [3, 0], sizes = [1, 128], strides = [1, 1]} : vector<4x128xf32> to vector<1x128xf32>
    %45 = vector.extract_strided_slice %2 {offsets = [3, 0, 0], sizes = [1, 4, 128], strides = [1, 1, 1]} : vector<4x4x128xf32> to vector<1x4x128xf32>
    %46 = vector.shape_cast %45 : vector<1x4x128xf32> to vector<4x128xf32>
    %47 = vector.broadcast %44 : vector<1x128xf32> to vector<4x128xf32>
    %48 = arith.mulf %47, %46 : vector<4x128xf32>
    %49 = arith.addf %43, %48 : vector<4x128xf32>
    %50 = vector.extract_strided_slice %24 {offsets = [0, 0], sizes = [1, 128], strides = [1, 1]} : vector<4x128xf32> to vector<1x128xf32>
    %51 = vector.extract_strided_slice %2 {offsets = [0, 0, 0], sizes = [1, 4, 128], strides = [1, 1, 1]} : vector<4x4x128xf32> to vector<1x4x128xf32>
    %52 = vector.shape_cast %51 : vector<1x4x128xf32> to vector<4x128xf32>
    %53 = vector.broadcast %50 : vector<1x128xf32> to vector<4x128xf32>
    %54 = arith.mulf %53, %52 : vector<4x128xf32>
    %55 = vector.extract_strided_slice %24 {offsets = [1, 0], sizes = [1, 128], strides = [1, 1]} : vector<4x128xf32> to vector<1x128xf32>
    %56 = vector.extract_strided_slice %2 {offsets = [1, 0, 0], sizes = [1, 4, 128], strides = [1, 1, 1]} : vector<4x4x128xf32> to vector<1x4x128xf32>
    %57 = vector.shape_cast %56 : vector<1x4x128xf32> to vector<4x128xf32>
    %58 = vector.broadcast %55 : vector<1x128xf32> to vector<4x128xf32>
    %59 = arith.mulf %58, %57 : vector<4x128xf32>
    %60 = arith.addf %54, %59 : vector<4x128xf32>
    %61 = vector.extract_strided_slice %24 {offsets = [2, 0], sizes = [1, 128], strides = [1, 1]} : vector<4x128xf32> to vector<1x128xf32>
    %62 = vector.extract_strided_slice %2 {offsets = [2, 0, 0], sizes = [1, 4, 128], strides = [1, 1, 1]} : vector<4x4x128xf32> to vector<1x4x128xf32>
    %63 = vector.shape_cast %62 : vector<1x4x128xf32> to vector<4x128xf32>
    %64 = vector.broadcast %61 : vector<1x128xf32> to vector<4x128xf32>
    %65 = arith.mulf %64, %63 : vector<4x128xf32>
    %66 = arith.addf %60, %65 : vector<4x128xf32>
    %67 = vector.extract_strided_slice %24 {offsets = [3, 0], sizes = [1, 128], strides = [1, 1]} : vector<4x128xf32> to vector<1x128xf32>
    %68 = vector.extract_strided_slice %2 {offsets = [3, 0, 0], sizes = [1, 4, 128], strides = [1, 1, 1]} : vector<4x4x128xf32> to vector<1x4x128xf32>
    %69 = vector.shape_cast %68 : vector<1x4x128xf32> to vector<4x128xf32>
    %70 = vector.broadcast %67 : vector<1x128xf32> to vector<4x128xf32>
    %71 = arith.mulf %70, %69 : vector<4x128xf32>
    %72 = arith.addf %66, %71 : vector<4x128xf32>
    %c0_40 = arith.constant 0 : index
    %c0_41 = arith.constant 0 : index
    %73 = vector.load %arg25[%c0_40, %c0_41] : memref<128x128xf32, #tpu.memory_space<vmem>>, vector<128x128xf32>
    %cst_42 = arith.constant dense<0.000000e+00> : vector<4x128xf32>
    %74 = tpu.matmul %49, %73, %cst_42 {dimension_numbers = #tpu.dot_dimension_numbers<[1], [0], [0], [1], [0, 0, 1, 1], [], []>} : vector<4x128xf32>, vector<128x128xf32>, vector<4x128xf32> -> vector<4x128xf32>
    %c0_43 = arith.constant 0 : index
    %c0_44 = arith.constant 0 : index
    %75 = vector.load %arg26[%c0_43, %c0_44] : memref<128x128xf32, #tpu.memory_space<vmem>>, vector<128x128xf32>
    %cst_45 = arith.constant dense<0.000000e+00> : vector<4x128xf32>
    %76 = tpu.matmul %72, %75, %cst_45 {dimension_numbers = #tpu.dot_dimension_numbers<[1], [0], [0], [1], [0, 0, 1, 1], [], []>} : vector<4x128xf32>, vector<128x128xf32>, vector<4x128xf32> -> vector<4x128xf32>
    %77 = arith.addf %74, %76 : vector<4x128xf32>
    %c0_46 = arith.constant 0 : index
    %c0_47 = arith.constant 0 : index
    %78 = vector.load %arg23[%c0_46, %c0_47] : memref<128x128xf32, #tpu.memory_space<vmem>>, vector<128x128xf32>
    %cst_48 = arith.constant dense<0.000000e+00> : vector<4x128xf32>
    %79 = tpu.matmul %77, %78, %cst_48 {dimension_numbers = #tpu.dot_dimension_numbers<[1], [0], [0], [1], [0, 0, 1, 1], [], []>} : vector<4x128xf32>, vector<128x128xf32>, vector<4x128xf32> -> vector<4x128xf32>
    %c0_49 = arith.constant 0 : index
    %c0_50 = arith.constant 0 : index
    %80 = vector.load %arg24[%c0_49, %c0_50] : memref<128x128xf32, #tpu.memory_space<vmem>>, vector<128x128xf32>
    %cst_51 = arith.constant dense<0.000000e+00> : vector<4x128xf32>
    %81 = tpu.matmul %20, %80, %cst_51 {dimension_numbers = #tpu.dot_dimension_numbers<[1], [0], [0], [1], [0, 0, 1, 1], [], []>} : vector<4x128xf32>, vector<128x128xf32>, vector<4x128xf32> -> vector<4x128xf32>
    %82 = arith.addf %79, %81 : vector<4x128xf32>
    %c0_52 = arith.constant 0 : index
    %c0_53 = arith.constant 0 : index
    %83 = vector.load %arg21[%c0_52, %c0_53] : memref<128x128xf32, #tpu.memory_space<vmem>>, vector<128x128xf32>
    %cst_54 = arith.constant dense<0.000000e+00> : vector<4x128xf32>
    %84 = tpu.matmul %82, %83, %cst_54 {dimension_numbers = #tpu.dot_dimension_numbers<[1], [0], [0], [1], [0, 0, 1, 1], [], []>} : vector<4x128xf32>, vector<128x128xf32>, vector<4x128xf32> -> vector<4x128xf32>
    %c0_55 = arith.constant 0 : index
    %c0_56 = arith.constant 0 : index
    %85 = vector.load %arg22[%c0_55, %c0_56] : memref<128x128xf32, #tpu.memory_space<vmem>>, vector<128x128xf32>
    %cst_57 = arith.constant dense<0.000000e+00> : vector<4x128xf32>
    %86 = tpu.matmul %16, %85, %cst_57 {dimension_numbers = #tpu.dot_dimension_numbers<[1], [0], [0], [1], [0, 0, 1, 1], [], []>} : vector<4x128xf32>, vector<128x128xf32>, vector<4x128xf32> -> vector<4x128xf32>
    %87 = arith.addf %84, %86 : vector<4x128xf32>
    %c0_58 = arith.constant 0 : index
    %c0_59 = arith.constant 0 : index
    %88 = vector.load %arg19[%c0_58, %c0_59] : memref<128x128xf32, #tpu.memory_space<vmem>>, vector<128x128xf32>
    %cst_60 = arith.constant dense<0.000000e+00> : vector<4x128xf32>
    %89 = tpu.matmul %87, %88, %cst_60 {dimension_numbers = #tpu.dot_dimension_numbers<[1], [0], [0], [1], [0, 0, 1, 1], [], []>} : vector<4x128xf32>, vector<128x128xf32>, vector<4x128xf32> -> vector<4x128xf32>
    %c0_61 = arith.constant 0 : index
    %c0_62 = arith.constant 0 : index
    %90 = vector.load %arg20[%c0_61, %c0_62] : memref<128x128xf32, #tpu.memory_space<vmem>>, vector<128x128xf32>
    %cst_63 = arith.constant dense<0.000000e+00> : vector<4x128xf32>
    %91 = tpu.matmul %12, %90, %cst_63 {dimension_numbers = #tpu.dot_dimension_numbers<[1], [0], [0], [1], [0, 0, 1, 1], [], []>} : vector<4x128xf32>, vector<128x128xf32>, vector<4x128xf32> -> vector<4x128xf32>
    %92 = arith.addf %89, %91 : vector<4x128xf32>
    %c0_64 = arith.constant 0 : index
    %c0_65 = arith.constant 0 : index
    %93 = vector.load %arg17[%c0_64, %c0_65] : memref<128x128xf32, #tpu.memory_space<vmem>>, vector<128x128xf32>
    %cst_66 = arith.constant dense<0.000000e+00> : vector<4x128xf32>
    %94 = tpu.matmul %92, %93, %cst_66 {dimension_numbers = #tpu.dot_dimension_numbers<[1], [0], [0], [1], [0, 0, 1, 1], [], []>} : vector<4x128xf32>, vector<128x128xf32>, vector<4x128xf32> -> vector<4x128xf32>
    %c0_67 = arith.constant 0 : index
    %c0_68 = arith.constant 0 : index
    %95 = vector.load %arg18[%c0_67, %c0_68] : memref<128x128xf32, #tpu.memory_space<vmem>>, vector<128x128xf32>
    %cst_69 = arith.constant dense<0.000000e+00> : vector<4x128xf32>
    %96 = tpu.matmul %8, %95, %cst_69 {dimension_numbers = #tpu.dot_dimension_numbers<[1], [0], [0], [1], [0, 0, 1, 1], [], []>} : vector<4x128xf32>, vector<128x128xf32>, vector<4x128xf32> -> vector<4x128xf32>
    %97 = arith.addf %94, %96 : vector<4x128xf32>
    %c0_70 = arith.constant 0 : index
    %c0_71 = arith.constant 0 : index
    %98 = vector.load %arg15[%c0_70, %c0_71] : memref<128x128xf32, #tpu.memory_space<vmem>>, vector<128x128xf32>
    %cst_72 = arith.constant dense<0.000000e+00> : vector<4x128xf32>
    %99 = tpu.matmul %97, %98, %cst_72 {dimension_numbers = #tpu.dot_dimension_numbers<[1], [0], [0], [1], [0, 0, 1, 1], [], []>} : vector<4x128xf32>, vector<128x128xf32>, vector<4x128xf32> -> vector<4x128xf32>
    %c0_73 = arith.constant 0 : index
    %c0_74 = arith.constant 0 : index
    %100 = vector.load %arg16[%c0_73, %c0_74] : memref<128x128xf32, #tpu.memory_space<vmem>>, vector<128x128xf32>
    %cst_75 = arith.constant dense<0.000000e+00> : vector<4x128xf32>
    %101 = tpu.matmul %4, %100, %cst_75 {dimension_numbers = #tpu.dot_dimension_numbers<[1], [0], [0], [1], [0, 0, 1, 1], [], []>} : vector<4x128xf32>, vector<128x128xf32>, vector<4x128xf32> -> vector<4x128xf32>
    %102 = arith.addf %99, %101 : vector<4x128xf32>
    %c0_76 = arith.constant 0 : index
    %c0_77 = arith.constant 0 : index
    %c0_78 = arith.constant 0 : index
    %103 = vector.load %arg27[%c0_76, %c0_77, %c0_78] : memref<1x4x128xf32, #tpu.memory_space<vmem>>, vector<1x4x128xf32>
    %104 = vector.shape_cast %103 : vector<1x4x128xf32> to vector<4x128xf32>
    %105 = vector.shape_cast %102 : vector<4x128xf32> to vector<1x4x128xf32>
    tpu.vector_store %arg27[%c0_76, %c0_77, %c0_78], %105 {strides = array<i32>} : memref<1x4x128xf32, #tpu.memory_space<vmem>>, vector<1x4x128xf32>,
    return
  }
  func.func @transform_0(%arg0: i32) -> (i32, i32, i32) {
    %c0_i32 = arith.constant 0 : i32
    %c0_i32_0 = arith.constant 0 : i32
    %c0_i32_1 = arith.constant 0 : i32
    return %arg0, %c0_i32, %c0_i32_0 : i32, i32, i32
  }
  func.func @transform_1(%arg0: i32) -> (i32, i32, i32) {
    %c0_i32 = arith.constant 0 : i32
    %c0_i32_0 = arith.constant 0 : i32
    %c0_i32_1 = arith.constant 0 : i32
    %c0_i32_2 = arith.constant 0 : i32
    return %c0_i32, %c0_i32_0, %c0_i32_1 : i32, i32, i32
  }
  func.func @transform_2(%arg0: i32) -> (i32, i32) {
    %c0_i32 = arith.constant 0 : i32
    %c0_i32_0 = arith.constant 0 : i32
    %c0_i32_1 = arith.constant 0 : i32
    return %c0_i32, %c0_i32_0 : i32, i32
  }
  func.func @transform_3(%arg0: i32) -> (i32, i32) {
    %c0_i32 = arith.constant 0 : i32
    %c0_i32_0 = arith.constant 0 : i32
    %c0_i32_1 = arith.constant 0 : i32
    return %c0_i32, %c0_i32_0 : i32, i32
  }
  func.func @transform_4(%arg0: i32) -> (i32, i32) {
    %c0_i32 = arith.constant 0 : i32
    %c0_i32_0 = arith.constant 0 : i32
    %c0_i32_1 = arith.constant 0 : i32
    return %c0_i32, %c0_i32_0 : i32, i32
  }
  func.func @transform_5(%arg0: i32) -> (i32, i32) {
    %c0_i32 = arith.constant 0 : i32
    %c0_i32_0 = arith.constant 0 : i32
    %c0_i32_1 = arith.constant 0 : i32
    return %c0_i32, %c0_i32_0 : i32, i32
  }
  func.func @transform_6(%arg0: i32) -> (i32, i32) {
    %c0_i32 = arith.constant 0 : i32
    %c0_i32_0 = arith.constant 0 : i32
    %c0_i32_1 = arith.constant 0 : i32
    return %c0_i32, %c0_i32_0 : i32, i32
  }
  func.func @transform_7(%arg0: i32) -> (i32, i32) {
    %c0_i32 = arith.constant 0 : i32
    %c0_i32_0 = arith.constant 0 : i32
    %c0_i32_1 = arith.constant 0 : i32
    return %c0_i32, %c0_i32_0 : i32, i32
  }
  func.func @transform_8(%arg0: i32) -> (i32, i32) {
    %c0_i32 = arith.constant 0 : i32
    %c0_i32_0 = arith.constant 0 : i32
    %c0_i32_1 = arith.constant 0 : i32
    return %c0_i32, %c0_i32_0 : i32, i32
  }
  func.func @transform_9(%arg0: i32) -> (i32, i32) {
    %c0_i32 = arith.constant 0 : i32
    %c0_i32_0 = arith.constant 0 : i32
    %c0_i32_1 = arith.constant 0 : i32
    return %c0_i32, %c0_i32_0 : i32, i32
  }
  func.func @transform_10(%arg0: i32) -> (i32, i32) {
    %c0_i32 = arith.constant 0 : i32
    %c0_i32_0 = arith.constant 0 : i32
    %c0_i32_1 = arith.constant 0 : i32
    return %c0_i32, %c0_i32_0 : i32, i32
  }
  func.func @transform_11(%arg0: i32) -> (i32, i32) {
    %c0_i32 = arith.constant 0 : i32
    %c0_i32_0 = arith.constant 0 : i32
    %c0_i32_1 = arith.constant 0 : i32
    return %c0_i32, %c0_i32_0 : i32, i32
  }
  func.func @transform_12(%arg0: i32) -> (i32, i32) {
    %c0_i32 = arith.constant 0 : i32
    %c0_i32_0 = arith.constant 0 : i32
    %c0_i32_1 = arith.constant 0 : i32
    return %c0_i32, %c0_i32_0 : i32, i32
  }
  func.func @transform_13(%arg0: i32) -> (i32, i32) {
    %c0_i32 = arith.constant 0 : i32
    %c0_i32_0 = arith.constant 0 : i32
    %c0_i32_1 = arith.constant 0 : i32
    return %c0_i32, %c0_i32_0 : i32, i32
  }
  func.func @transform_14(%arg0: i32) -> (i32, i32) {
    %c0_i32 = arith.constant 0 : i32
    %c0_i32_0 = arith.constant 0 : i32
    %c0_i32_1 = arith.constant 0 : i32
    return %c0_i32, %c0_i32_0 : i32, i32
  }
  func.func @transform_15(%arg0: i32) -> (i32, i32) {
    %c0_i32 = arith.constant 0 : i32
    %c0_i32_0 = arith.constant 0 : i32
    %c0_i32_1 = arith.constant 0 : i32
    return %c0_i32, %c0_i32_0 : i32, i32
  }
  func.func @transform_16(%arg0: i32) -> (i32, i32) {
    %c0_i32 = arith.constant 0 : i32
    %c0_i32_0 = arith.constant 0 : i32
    %c0_i32_1 = arith.constant 0 : i32
    return %c0_i32, %c0_i32_0 : i32, i32
  }
  func.func @transform_17(%arg0: i32) -> (i32, i32) {
    %c0_i32 = arith.constant 0 : i32
    %c0_i32_0 = arith.constant 0 : i32
    %c0_i32_1 = arith.constant 0 : i32
    return %c0_i32, %c0_i32_0 : i32, i32
  }
  func.func @transform_18(%arg0: i32) -> (i32, i32) {
    %c0_i32 = arith.constant 0 : i32
    %c0_i32_0 = arith.constant 0 : i32
    %c0_i32_1 = arith.constant 0 : i32
    return %c0_i32, %c0_i32_0 : i32, i32
  }
  func.func @transform_19(%arg0: i32) -> (i32, i32) {
    %c0_i32 = arith.constant 0 : i32
    %c0_i32_0 = arith.constant 0 : i32
    %c0_i32_1 = arith.constant 0 : i32
    return %c0_i32, %c0_i32_0 : i32, i32
  }
  func.func @transform_20(%arg0: i32) -> (i32, i32) {
    %c0_i32 = arith.constant 0 : i32
    %c0_i32_0 = arith.constant 0 : i32
    %c0_i32_1 = arith.constant 0 : i32
    return %c0_i32, %c0_i32_0 : i32, i32
  }
  func.func @transform_21(%arg0: i32) -> (i32, i32) {
    %c0_i32 = arith.constant 0 : i32
    %c0_i32_0 = arith.constant 0 : i32
    %c0_i32_1 = arith.constant 0 : i32
    return %c0_i32, %c0_i32_0 : i32, i32
  }
  func.func @transform_22(%arg0: i32) -> (i32, i32) {
    %c0_i32 = arith.constant 0 : i32
    %c0_i32_0 = arith.constant 0 : i32
    %c0_i32_1 = arith.constant 0 : i32
    return %c0_i32, %c0_i32_0 : i32, i32
  }
  func.func @transform_23(%arg0: i32) -> (i32, i32) {
    %c0_i32 = arith.constant 0 : i32
    %c0_i32_0 = arith.constant 0 : i32
    %c0_i32_1 = arith.constant 0 : i32
    return %c0_i32, %c0_i32_0 : i32, i32
  }
  func.func @transform_24(%arg0: i32) -> (i32, i32) {
    %c0_i32 = arith.constant 0 : i32
    %c0_i32_0 = arith.constant 0 : i32
    %c0_i32_1 = arith.constant 0 : i32
    return %c0_i32, %c0_i32_0 : i32, i32
  }
  func.func @transform_25(%arg0: i32) -> (i32, i32) {
    %c0_i32 = arith.constant 0 : i32
    %c0_i32_0 = arith.constant 0 : i32
    %c0_i32_1 = arith.constant 0 : i32
    return %c0_i32, %c0_i32_0 : i32, i32
  }
  func.func @transform_26(%arg0: i32) -> (i32, i32, i32) {
    %c0_i32 = arith.constant 0 : i32
    %c0_i32_0 = arith.constant 0 : i32
    %c0_i32_1 = arith.constant 0 : i32
    return %arg0, %c0_i32, %c0_i32_0 : i32, i32, i32
  }
}

</mosaic_0001>

<bundles_post_ra>
// kernel: wave_conv1d_forward.1
= control target key start
LH: loop header
LB: loop body
LE: loop exit
PB: predicated region body
PF: predicated region fallthrough
CT: control target
= control target key end

     0   :  { %s7659_s0 = inlined_call_operand.vmem [shape: f32[2,4,128], index: 0, kind: input, shape index: {}]   ;;  %s7660_s1 = inlined_call_operand.vmem [shape: f32[4,4,128], index: 1, kind: input, shape index: {}]   ;;  %s7661_s2 = inlined_call_operand.hbm [shape: f32[128,128], index: 2, kind: input, shape index: {}]   ;;  %s7662_s3 = inlined_call_operand.hbm [shape: f32[128,128], index: 3, kind: input, shape index: {}]   ;;  %s7663_s4 = inlined_call_operand.hbm [shape: f32[128,128], index: 4, kind: input, shape index: {}]   ;;  %s7664_s5 = inlined_call_operand.hbm [shape: f32[128,128], index: 5, kind: input, shape index: {}]   ;;  %s7665_s6 = inlined_call_operand.hbm [shape: f32[128,128], index: 6, kind: input, shape index: {}]   ;;  %s7666_s7 = inlined_call_operand.hbm [shape: f32[128,128], index: 7, kind: input, shape index: {}]   ;;  %s7667_s8 = inlined_call_operand.hbm [shape: f32[128,128], index: 8, kind: input, shape index: {}, may-alias: {8,10,12}]   ;;  %s7668_s9 = inlined_call_operand.hbm [shape: f32[128,128], index: 9, kind: input, shape index: {}, may-alias: {9,11,13}]   ;;  %s7669_s10 = inlined_call_operand.hbm [shape: f32[128,128], index: 10, kind: input, shape index: {}, may-alias: {8,10,12}]   ;;  %s7670_s11 = inlined_call_operand.hbm [shape: f32[128,128], index: 11, kind: input, shape index: {}, may-alias: {9,11,13}]   ;;  %s7671_s12 = inlined_call_operand.hbm [shape: f32[128,128], index: 12, kind: input, shape index: {}, may-alias: {8,10,12}]   ;;  %s7672_s13 = inlined_call_operand.hbm [shape: f32[128,128], index: 13, kind: input, shape index: {}, may-alias: {9,11,13}]   ;;  %s7673_s14 = inlined_call_operand.hbm [shape: f32[128,128], index: 14, kind: input, shape index: {}]   ;;  %s7674_s15 = inlined_call_operand.hbm [shape: f32[128,128], index: 15, kind: input, shape index: {}]   ;;  %s7675_s16 = inlined_call_operand.hbm [shape: f32[128,128], index: 16, kind: input, shape index: {}]   ;;  %s7676_s17 = inlined_call_operand.hbm [shape: f32[128,128], index: 17, kind: input, shape index: {}]   ;;  %s7677_s18 = inlined_call_operand.hbm [shape: f32[128,128], index: 18, kind: input, shape index: {}, may-alias: {18,20,22,24}]   ;;  %s7678_s19 = inlined_call_operand.hbm [shape: f32[128,128], index: 19, kind: input, shape index: {}, may-alias: {19,21,23,25}]   ;;  %s7679_s20 = inlined_call_operand.hbm [shape: f32[128,128], index: 20, kind: input, shape index: {}, may-alias: {18,20,22,24}]   ;;  %s7680_s21 = inlined_call_operand.hbm [shape: f32[128,128], index: 21, kind: input, shape index: {}, may-alias: {19,21,23,25}]   ;;  %s7681_s22 = inlined_call_operand.hbm [shape: f32[128,128], index: 22, kind: input, shape index: {}, may-alias: {18,20,22,24}]   ;;  %s7682_s23 = inlined_call_operand.hbm [shape: f32[128,128], index: 23, kind: input, shape index: {}, may-alias: {19,21,23,25}]   ;;  %s7683_s24 = inlined_call_operand.hbm [shape: f32[128,128], index: 24, kind: input, shape index: {}, may-alias: {18,20,22,24}]   ;;  %s7684_s25 = inlined_call_operand.hbm [shape: f32[128,128], index: 25, kind: input, shape index: {}, may-alias: {19,21,23,25}]   ;;  %s7685_s26 = inlined_call_operand.hbm [shape: f32[2,4,128], index: 26, kind: output, shape index: {}]  }
   0x1   :  { %7722 = sst [smem:[#allocation65_spill]] %s7659_s0 }
   0x2   :  { %7723 = sst [smem:[#allocation66_spill]] %s7660_s1 }
   0x3   :  { %7724 = sst [smem:[#allocation67_spill]] %s7661_s2 }
   0x4   :  { %7725 = sst [smem:[#allocation68_spill]] %s7662_s3 }
   0x5   :  { %7726 = sst [smem:[#allocation69_spill]] %s7663_s4 }
   0x6   :  { %7727 = sst [smem:[#allocation70_spill]] %s7664_s5 }
   0x7   :  { %7728 = sst [smem:[#allocation71_spill]] %s7665_s6 }
   0x8   :  { %7729 = sst [smem:[#allocation72_spill]] %s7666_s7 }
   0x9   :  { %7730 = sst [smem:[#allocation73_spill]] %s7667_s8 }
   0xa   :  { %7731 = sst [smem:[#allocation74_spill]] %s7668_s9 }
   0xb   :  { %7732 = sst [smem:[#allocation75_spill]] %s7669_s10 }
   0xc   :  { %7733 = sst [smem:[#allocation76_spill]] %s7670_s11 }
   0xd   :  { %7734 = sst [smem:[#allocation77_spill]] %s7671_s12 }
   0xe   :  { %7735 = sst [smem:[#allocation78_spill]] %s7681_s22 }
   0xf   :  { %7736 = sst [smem:[#allocation79_spill]] %s7683_s24 }
  0x10   :  { %7737 = sst [smem:[#allocation80_spill]] %s7684_s25 }
  0x11   :  { %7738 = sst [smem:[#allocation81_spill]] %s7685_s26 }
  0x12   :  { %31 = vsyncpa [#allocation3], 0 }
  0x13   :  { %32 = vsyncpa [#allocation6], 0 }
  0x14   :  { %33 = vsyncpa [#allocation9], 0 }
  0x15   :  { %34 = vsyncpa [#allocation12], 0 }
  0x16   :  { %35 = vsyncpa [#allocation15], 0 }
  0x17   :  { %36 = vsyncpa [#allocation18], 0 }
  0x18   :  { %37 = vsyncpa [#allocation21], 0 }
  0x19   :  { %38 = vsyncpa [#allocation24], 0 }
  0x1a   :  { %39 = vsyncpa [#allocation27], 0 }
  0x1b   :  { %40 = vsyncpa [#allocation30], 0 }
  0x1c   :  { %41 = vsyncpa [#allocation33], 0 }
  0x1d   :  { %42 = vsyncpa [#allocation36], 0 }
  0x1e   :  { %43 = vsyncpa [#allocation39], 0 }
  0x1f   :  { %44 = vsyncpa [#allocation4], 0 }
  0x20   :  { %46 = vsyncpa [#allocation4 + $0x1], 0  ;;  %s6688_s27 = smov 0   ;;  %s6690_s3 = smov 0  }
  0x21   :  { %s6692_s7 = smov 0   ;;  %s6694_s28 = smov 0  }
  0x22 LB: > { %7739 = sst [smem:[#allocation55_spill]] %s6509_s27  ;;  %s6709_s8 = sadd.s32 4294967295, %s6521_s28   ;;  %s6521_s28 = sphi %s6694_s28, %s7810_s28   ;;  %s6517_s7 = sphi %s6692_s7, %s7813_s7   ;;  %s6513_s3 = sphi %s6690_s3, %s7812_s3   ;;  %s6509_s27 = sphi %s6688_s27, %s7811_s27  }
  0x23   : > { %7740 = sst [smem:[#allocation56_spill]] %s6513_s3  ;;  %s3556_s4 = sadd.s32 4294967294, %s6521_s28  }
  0x24   : > { %7741 = sst [smem:[#allocation57_spill]] %s6517_s7  ;;  %s6713_s29 = sadd.s32 1, %s6521_s28  }
  0x25   : > { %7742 = sst [smem:[#allocation58_spill]] %s6521_s28  ;;  %s610_s0 = sadd.s32 1, %s6517_s7 }
  0x26   : > { %7743 = sst [smem:[#allocation59_spill]] %s6709_s8  ;;  %s607_s9 = ssub.s32 %s6521_s28, %s6713_s29 }
  0x27   : > { %7744 = sst [smem:[#allocation60_spill]] %s6713_s29  ;;  %p620_p0 = scmp.ne.s32.totalorder %s6517_s7, %s6513_s3 }
  0x28   : > { %p608_p1 = scmp.eq.s32.totalorder %s607_s9, 0  ;;  %p621_p2 = scmp.eq.s32.totalorder %s6709_s8, 1 }
  0x29   : > { %p626_p3 = scmp.ne.s32.totalorder %s6513_s3, %s6509_s27  ;;  %p627_p4 = scmp.eq.s32.totalorder %s3556_s4, 1 }
  0x2a   : > { %s6724_s30 = scalar_select %p608_p1, %s6517_s7, %s610_s0  }
  0x2b   : > { %p6726_p5 = por %p621_p2, %p620_p0  ;;  %p6730_p6 = por %p627_p4, %p626_p3 }
  0x2c   : > { %7745 = sst [smem:[#allocation61_spill]] %s6724_s30  ;;  %p3557_p7 = scmp.ge.s32.totalorder %s6521_s28, 1 }
  0x2d   : > { %s7746_s2 = scalar_select %p6726_p5, 1, 0 }
  0x2e   : > { %s7748_s5 = scalar_select %p6730_p6, 1, 0 }
  0x2f   : > { %7747 = sst [smem:[#allocation62_spill]] %s7746_s2  ;;  %p634_p8 = scmp.lt.s32.totalorder %s6521_s28, 3 }
  0x30   : > { %7749 = sst [smem:[#allocation63_spill]] %s7748_s5  ;;  %p7706_p9 = scmp.eq.s32.totalorder %s6709_s8, 0 }
  0x31   : > { %p6737_p10 = pnand %p3557_p7, %p634_p8  ;;  %s6523_s6 = smov [#allocation5]  }
  0x32   : > { %s662_s1 = sshll.u32 %s6523_s6, 4  ;;  %s6524_s0 = smov [#allocation8]   ;;  %s6743_s1 = int_to_ptr.vmem [resolvable:$true] %s662_s1 }
  0x33   : > { %s7750_s10 = scalar_select %p6737_p10, 1, 0 }
  0x34   : > { %p5548_p11 = pneg %p6737_p10  ;;  %s688_s9 = sshll.u32 %s6524_s0, 4  ;;  %s6751_s9 = int_to_ptr.vmem [resolvable:$true] %s688_s9 }
  0x35   : > { %7751 = sst [smem:[#allocation64_spill]] %s7750_s10  ;;  %s6525_s30 = smov [#allocation11]  }
  0x36   : > { %p6747_p12 = pnand %p7706_p9, %p5548_p11  ;;  %s6753_s7 = sshll.u32 %s6525_s30, 4  ;;  %s715_s7 = int_to_ptr.vmem [resolvable:$true] %s6753_s7 }
  0x37   : > { %s7753_s27 = sld [smem:[#allocation68_spill]] }
  0x38   : > { %p6763_p0 = pneg %p6747_p12 }
  0x3d   : > { %s7754_s26 = smov %s7753_s27  ;;  %s5735_s28 = scalar_lea.hbm %s7753_s27, 2048 }
  0x3e   : > { %p5736_p13 = scmp.ne.s32.totalorder %s7754_s26, %s5735_s28  ;;  %p5742_p3 = scmp.lt.u32.totalorder %s5735_s28, %s7754_s26 }
  0x40   : > { %p5738_p1 = pnand %p6763_p0, %p5736_p13 }
  0x42   : > { %p5739_p2 = pneg %p5738_p1 }
  0x44   : > { %p5744_p4 = pnand %p5742_p3, %p5739_p2 }
  0x46   : > { %5747 = shalt.err (!%p5744_p4)
}
  0x47   : > { %s5748_s27 = scalar_lea.vmem %s6743_s1, 2048  ;;  %p5756_p9 = scmp.lt.s32.totalorder %s6743_s1, %s6743_s1 }
  0x48   : > { %p5749_p7 = scmp.ne.s32.totalorder %s6743_s1, %s5748_s27  ;;  %p5757_p6 = scmp.lt.s32.totalorder %s5748_s27, %s5748_s27 }
  0x4a   : > { %p5751_p8 = pnand %p5749_p7, %p6763_p0  ;;  %p5758_p13 = por %p5757_p6, %p5756_p9 }
  0x4c   : > { %p5752_p11 = pneg %p5751_p8 }
  0x4e   : > { %p5759_p1 = pnand %p5758_p13, %p5752_p11 }
  0x50   : > { %5762 = shalt.err (!%p5759_p1)
}
  0x51   : > { %s6526_s29 = smov 128   ;;  %s6527_s28 = smov 8  }
  0x52   : > { %5554 = dma.hbm_to_vmem [thread:$0]  (!%p6747_p12), %s7754_s26, 2048, %s6743_s1, [#allocation6], %s6526_s29, %s6526_s29, %s6527_s28  }
  0x53   : > { %s7756_s30 = sld [smem:[#allocation70_spill]] }
  0x59   : > { %s5763_s27 = scalar_lea.hbm %s7756_s30, 2048 }
  0x5a   : > { %p5764_p6 = scmp.ne.s32.totalorder %s7756_s30, %s5763_s27  ;;  %p5770_p3 = scmp.lt.u32.totalorder %s5763_s27, %s7756_s30 }
  0x5c   : > { %p5766_p9 = pnand %p5764_p6, %p6763_p0 }
  0x5e   : > { %p5767_p2 = pneg %p5766_p9 }
  0x60   : > { %p5772_p4 = pnand %p5770_p3, %p5767_p2 }
  0x62   : > { %5775 = shalt.err (!%p5772_p4)
}
  0x63   : > { %s5776_s1 = scalar_lea.vmem %s6751_s9, 2048  ;;  %p5784_p13 = scmp.lt.s32.totalorder %s6751_s9, %s6751_s9 }
  0x64   : > { %p5777_p7 = scmp.ne.s32.totalorder %s6751_s9, %s5776_s1  ;;  %p5785_p1 = scmp.lt.s32.totalorder %s5776_s1, %s5776_s1 }
  0x66   : > { %p5779_p8 = pnand %p5777_p7, %p6763_p0  ;;  %p5786_p6 = por %p5785_p1, %p5784_p13 }
  0x68   : > { %p5780_p11 = pneg %p5779_p8 }
  0x6a   : > { %p5787_p9 = pnand %p5786_p6, %p5780_p11 }
  0x6c   : > { %5790 = shalt.err (!%p5787_p9)
}
  0x6d   : > { %5560 = dma.hbm_to_vmem [thread:$0]  (!%p6747_p12), %s7756_s30, 2048, %s6751_s9, [#allocation9], %s6526_s29, %s6526_s29, %s6527_s28  }
  0x6e   : > { %s7757_s2 = sld [smem:[#allocation72_spill]] }
  0x74   : > { %s5791_s5 = scalar_lea.hbm %s7757_s2, 2048 }
  0x75   : > { %p5792_p2 = scmp.ne.s32.totalorder %s7757_s2, %s5791_s5  ;;  %p5798_p7 = scmp.lt.u32.totalorder %s5791_s5, %s7757_s2 }
  0x77   : > { %p5794_p3 = pnand %p5792_p2, %p6763_p0 }
  0x79   : > { %p5795_p4 = pneg %p5794_p3 }
  0x7b   : > { %p5800_p8 = pnand %p5798_p7, %p5795_p4 }
  0x7d   : > { %5803 = shalt.err (!%p5800_p8)
}
  0x7e   : > { %s5804_s24 = scalar_lea.vmem %s715_s7, 2048  ;;  %p5812_p6 = scmp.lt.s32.totalorder %s715_s7, %s715_s7 }
  0x7f   : > { %p5805_p11 = scmp.ne.s32.totalorder %s715_s7, %s5804_s24  ;;  %p5813_p9 = scmp.lt.s32.totalorder %s5804_s24, %s5804_s24 }
  0x81   : > { %p5807_p13 = pnand %p5805_p11, %p6763_p0  ;;  %p5814_p5 = por %p5813_p9, %p5812_p6 }
  0x83   : > { %p5808_p1 = pneg %p5807_p13 }
  0x85   : > { %p5815_p10 = pnand %p5814_p5, %p5808_p1 }
  0x87   : > { %5818 = shalt.err (!%p5815_p10)
}
  0x88   : > { %5566 = dma.hbm_to_vmem [thread:$0]  (!%p6747_p12), %s7757_s2, 2048, %s715_s7, [#allocation12], %s6526_s29, %s6526_s29, %s6527_s28  }
  0x89   : > { %s6528_s8 = smov [#allocation14]   ;;  %s6529_s5 = smov [#allocation17]  }
  0x8a   : > { %s740_s10 = sshll.u32 %s6528_s8, 4  ;;  %s766_s6 = sshll.u32 %s6529_s5, 4  ;;  %s741_s10 = int_to_ptr.vmem [resolvable:$true] %s740_s10  ;;  %s767_s6 = int_to_ptr.vmem [resolvable:$true] %s766_s6 }
  0x8b   : > { %s7758_s1 = sld [smem:[#allocation74_spill]] }
  0x91   : > { %s5819_s24 = scalar_lea.hbm %s7758_s1, 2048 }
  0x92   : > { %p5820_p5 = scmp.ne.s32.totalorder %s7758_s1, %s5819_s24  ;;  %p5826_p3 = scmp.lt.u32.totalorder %s5819_s24, %s7758_s1 }
  0x94   : > { %p5822_p10 = pnand %p5820_p5, %p6763_p0 }
  0x96   : > { %p5823_p2 = pneg %p5822_p10 }
  0x98   : > { %p5828_p4 = pnand %p5826_p3, %p5823_p2 }
  0x9a   : > { %5831 = shalt.err (!%p5828_p4)
}
  0x9b   : > { %s5832_s7 = scalar_lea.vmem %s741_s10, 2048  ;;  %p5840_p13 = scmp.lt.s32.totalorder %s741_s10, %s741_s10 }
  0x9c   : > { %p5833_p7 = scmp.ne.s32.totalorder %s741_s10, %s5832_s7  ;;  %p5841_p1 = scmp.lt.s32.totalorder %s5832_s7, %s5832_s7 }
  0x9e   : > { %p5835_p8 = pnand %p5833_p7, %p6763_p0  ;;  %p5842_p6 = por %p5841_p1, %p5840_p13 }
  0xa0   : > { %p5836_p11 = pneg %p5835_p8 }
  0xa2   : > { %p5843_p9 = pnand %p5842_p6, %p5836_p11 }
  0xa4   : > { %5846 = shalt.err (!%p5843_p9)
}
  0xa5   : > { %5572 = dma.hbm_to_vmem [thread:$0]  (!%p6747_p12), %s7758_s1, 2048, %s741_s10, [#allocation15], %s6526_s29, %s6526_s29, %s6527_s28  }
  0xa6   : > { %s7759_s11 = sld [smem:[#allocation76_spill]] }
  0xac   : > { %s5847_s8 = scalar_lea.hbm %s7759_s11, 2048 }
  0xad   : > { %p5848_p5 = scmp.ne.s32.totalorder %s7759_s11, %s5847_s8  ;;  %p5854_p3 = scmp.lt.u32.totalorder %s5847_s8, %s7759_s11 }
  0xaf   : > { %p5850_p10 = pnand %p5848_p5, %p6763_p0 }
  0xb1   : > { %p5851_p2 = pneg %p5850_p10 }
  0xb3   : > { %p5856_p4 = pnand %p5854_p3, %p5851_p2 }
  0xb5   : > { %5859 = shalt.err (!%p5856_p4)
}
  0xb6   : > { %s5860_s9 = scalar_lea.vmem %s767_s6, 2048  ;;  %p5868_p13 = scmp.lt.s32.totalorder %s767_s6, %s767_s6 }
  0xb7   : > { %p5861_p7 = scmp.ne.s32.totalorder %s767_s6, %s5860_s9  ;;  %p5869_p1 = scmp.lt.s32.totalorder %s5860_s9, %s5860_s9 }
  0xb9   : > { %p5863_p8 = pnand %p5861_p7, %p6763_p0  ;;  %p5870_p6 = por %p5869_p1, %p5868_p13 }
  0xbb   : > { %p5864_p11 = pneg %p5863_p8 }
  0xbd   : > { %p5871_p9 = pnand %p5870_p6, %p5864_p11 }
  0xbf   : > { %5874 = shalt.err (!%p5871_p9)
}
  0xc0   : > { %5578 = dma.hbm_to_vmem [thread:$0]  (!%p6747_p12), %s7759_s11, 2048, %s767_s6, [#allocation18], %s6526_s29, %s6526_s29, %s6527_s28  }
  0xc1   : > { %s6530_s22 = smov [#allocation20]   ;;  %s6531_s30 = smov [#allocation23]  }
  0xc2   : > { %s792_s26 = sshll.u32 %s6530_s22, 4  ;;  %s818_s25 = sshll.u32 %s6531_s30, 4  ;;  %s793_s26 = int_to_ptr.vmem [resolvable:$true] %s792_s26  ;;  %s819_s25 = int_to_ptr.vmem [resolvable:$true] %s818_s25 }
  0xc3   : > { %s5875_s0 = scalar_lea.hbm %s7672_s13, 2048 }
  0xc4   : > { %p5876_p5 = scmp.ne.s32.totalorder %s7672_s13, %s5875_s0  ;;  %p5882_p3 = scmp.lt.u32.totalorder %s5875_s0, %s7672_s13 }
  0xc6   : > { %p5878_p10 = pnand %p5876_p5, %p6763_p0 }
  0xc8   : > { %p5879_p2 = pneg %p5878_p10 }
  0xca   : > { %p5884_p4 = pnand %p5882_p3, %p5879_p2 }
  0xcc   : > { %5887 = shalt.err (!%p5884_p4)
}
  0xcd   : > { %s5888_s6 = scalar_lea.vmem %s793_s26, 2048  ;;  %p5896_p13 = scmp.lt.s32.totalorder %s793_s26, %s793_s26 }
  0xce   : > { %p5889_p7 = scmp.ne.s32.totalorder %s793_s26, %s5888_s6  ;;  %p5897_p1 = scmp.lt.s32.totalorder %s5888_s6, %s5888_s6 }
  0xd0   : > { %p5891_p8 = pnand %p5889_p7, %p6763_p0  ;;  %p5898_p6 = por %p5897_p1, %p5896_p13 }
  0xd2   : > { %p5892_p11 = pneg %p5891_p8 }
  0xd4   : > { %p5899_p9 = pnand %p5898_p6, %p5892_p11 }
  0xd6   : > { %5902 = shalt.err (!%p5899_p9)
}
  0xd7   : > { %5584 = dma.hbm_to_vmem [thread:$0]  (!%p6747_p12), %s7672_s13, 2048, %s793_s26, [#allocation21], %s6526_s29, %s6526_s29, %s6527_s28  }
  0xd8   : > { %s5903_s5 = scalar_lea.hbm %s7674_s15, 2048 }
  0xd9   : > { %p5904_p5 = scmp.ne.s32.totalorder %s7674_s15, %s5903_s5  ;;  %p5910_p3 = scmp.lt.u32.totalorder %s5903_s5, %s7674_s15 }
  0xdb   : > { %p5906_p10 = pnand %p5904_p5, %p6763_p0 }
  0xdd   : > { %p5907_p2 = pneg %p5906_p10 }
  0xdf   : > { %p5912_p4 = pnand %p5910_p3, %p5907_p2 }
  0xe1   : > { %5915 = shalt.err (!%p5912_p4)
}
  0xe2   : > { %s5916_s10 = scalar_lea.vmem %s819_s25, 2048  ;;  %p5924_p13 = scmp.lt.s32.totalorder %s819_s25, %s819_s25 }
  0xe3   : > { %p5917_p7 = scmp.ne.s32.totalorder %s819_s25, %s5916_s10  ;;  %p5925_p1 = scmp.lt.s32.totalorder %s5916_s10, %s5916_s10 }
  0xe5   : > { %p5919_p8 = pnand %p5917_p7, %p6763_p0  ;;  %p5926_p6 = por %p5925_p1, %p5924_p13 }
  0xe7   : > { %p5920_p11 = pneg %p5919_p8 }
  0xe9   : > { %p5927_p9 = pnand %p5926_p6, %p5920_p11 }
  0xeb   : > { %5930 = shalt.err (!%p5927_p9)
}
  0xec   : > { %5590 = dma.hbm_to_vmem [thread:$0]  (!%p6747_p12), %s7674_s15, 2048, %s819_s25, [#allocation24], %s6526_s29, %s6526_s29, %s6527_s28  }
  0xed   : > { %s6532_s7 = smov [#allocation26]   ;;  %s6533_s30 = smov [#allocation29]  }
  0xee   : > { %s844_s22 = sshll.u32 %s6532_s7, 4  ;;  %s870_s8 = sshll.u32 %s6533_s30, 4  ;;  %s845_s22 = int_to_ptr.vmem [resolvable:$true] %s844_s22  ;;  %s871_s8 = int_to_ptr.vmem [resolvable:$true] %s870_s8 }
  0xef   : > { %s5931_s27 = scalar_lea.hbm %s7676_s17, 2048 }
  0xf0   : > { %p5932_p5 = scmp.ne.s32.totalorder %s7676_s17, %s5931_s27  ;;  %p5938_p3 = scmp.lt.u32.totalorder %s5931_s27, %s7676_s17 }
  0xf2   : > { %p5934_p10 = pnand %p5932_p5, %p6763_p0 }
  0xf4   : > { %p5935_p2 = pneg %p5934_p10 }
  0xf6   : > { %p5940_p4 = pnand %p5938_p3, %p5935_p2 }
  0xf8   : > { %5943 = shalt.err (!%p5940_p4)
}
  0xf9   : > { %s5944_s25 = scalar_lea.vmem %s845_s22, 2048  ;;  %p5952_p13 = scmp.lt.s32.totalorder %s845_s22, %s845_s22 }
  0xfa   : > { %p5945_p7 = scmp.ne.s32.totalorder %s845_s22, %s5944_s25  ;;  %p5953_p1 = scmp.lt.s32.totalorder %s5944_s25, %s5944_s25 }
  0xfc   : > { %p5947_p8 = pnand %p5945_p7, %p6763_p0  ;;  %p5954_p6 = por %p5953_p1, %p5952_p13 }
  0xfe   : > { %p5948_p11 = pneg %p5947_p8 }
 0x100   : > { %p5955_p9 = pnand %p5954_p6, %p5948_p11 }
 0x102   : > { %5958 = shalt.err (!%p5955_p9)
}
 0x103   : > { %5596 = dma.hbm_to_vmem [thread:$0]  (!%p6747_p12), %s7676_s17, 2048, %s845_s22, [#allocation27], %s6526_s29, %s6526_s29, %s6527_s28  }
 0x104   : > { %s5959_s0 = scalar_lea.hbm %s7678_s19, 2048 }
 0x105   : > { %p5960_p5 = scmp.ne.s32.totalorder %s7678_s19, %s5959_s0  ;;  %p5966_p3 = scmp.lt.u32.totalorder %s5959_s0, %s7678_s19 }
 0x107   : > { %p5962_p10 = pnand %p5960_p5, %p6763_p0 }
 0x109   : > { %p5963_p2 = pneg %p5962_p10 }
 0x10b   : > { %p5968_p4 = pnand %p5966_p3, %p5963_p2 }
 0x10d   : > { %5971 = shalt.err (!%p5968_p4)
}
 0x10e   : > { %s5972_s26 = scalar_lea.vmem %s871_s8, 2048  ;;  %p5980_p13 = scmp.lt.s32.totalorder %s871_s8, %s871_s8 }
 0x10f   : > { %p5973_p7 = scmp.ne.s32.totalorder %s871_s8, %s5972_s26  ;;  %p5981_p1 = scmp.lt.s32.totalorder %s5972_s26, %s5972_s26 }
 0x111   : > { %p5975_p8 = pnand %p5973_p7, %p6763_p0  ;;  %p5982_p6 = por %p5981_p1, %p5980_p13 }
 0x113   : > { %p5976_p11 = pneg %p5975_p8 }
 0x115   : > { %p5983_p9 = pnand %p5982_p6, %p5976_p11 }
 0x117   : > { %5986 = shalt.err (!%p5983_p9)
}
 0x118   : > { %5602 = dma.hbm_to_vmem [thread:$0]  (!%p6747_p12), %s7678_s19, 2048, %s871_s8, [#allocation30], %s6526_s29, %s6526_s29, %s6527_s28  }
 0x119   : > { %s6534_s6 = smov [#allocation32]   ;;  %s6535_s30 = smov [#allocation35]  }
 0x11a   : > { %s896_s7 = sshll.u32 %s6534_s6, 4  ;;  %s922_s5 = sshll.u32 %s6535_s30, 4  ;;  %s897_s7 = int_to_ptr.vmem [resolvable:$true] %s896_s7  ;;  %s923_s5 = int_to_ptr.vmem [resolvable:$true] %s922_s5 }
 0x11b   : > { %s5987_s24 = scalar_lea.hbm %s7680_s21, 2048 }
 0x11c   : > { %p5988_p5 = scmp.ne.s32.totalorder %s7680_s21, %s5987_s24  ;;  %p5994_p3 = scmp.lt.u32.totalorder %s5987_s24, %s7680_s21 }
 0x11e   : > { %p5990_p10 = pnand %p5988_p5, %p6763_p0 }
 0x120   : > { %p5991_p2 = pneg %p5990_p10 }
 0x122   : > { %p5996_p4 = pnand %p5994_p3, %p5991_p2 }
 0x124   : > { %5999 = shalt.err (!%p5996_p4)
}
 0x125   : > { %s6000_s8 = scalar_lea.vmem %s897_s7, 2048  ;;  %p6008_p13 = scmp.lt.s32.totalorder %s897_s7, %s897_s7 }
 0x126   : > { %p6001_p7 = scmp.ne.s32.totalorder %s897_s7, %s6000_s8  ;;  %p6009_p1 = scmp.lt.s32.totalorder %s6000_s8, %s6000_s8 }
 0x128   : > { %p6003_p8 = pnand %p6001_p7, %p6763_p0  ;;  %p6010_p6 = por %p6009_p1, %p6008_p13 }
 0x12a   : > { %p6004_p11 = pneg %p6003_p8 }
 0x12c   : > { %p6011_p9 = pnand %p6010_p6, %p6004_p11 }
 0x12e   : > { %6014 = shalt.err (!%p6011_p9)
}
 0x12f   : > { %5608 = dma.hbm_to_vmem [thread:$0]  (!%p6747_p12), %s7680_s21, 2048, %s897_s7, [#allocation33], %s6526_s29, %s6526_s29, %s6527_s28  }
 0x130   : > { %s6015_s27 = scalar_lea.hbm %s7682_s23, 2048 }
 0x131   : > { %p6016_p5 = scmp.ne.s32.totalorder %s7682_s23, %s6015_s27  ;;  %p6022_p3 = scmp.lt.u32.totalorder %s6015_s27, %s7682_s23 }
 0x133   : > { %p6018_p10 = pnand %p6016_p5, %p6763_p0 }
 0x135   : > { %p6019_p2 = pneg %p6018_p10 }
 0x137   : > { %p6024_p4 = pnand %p6022_p3, %p6019_p2 }
 0x139   : > { %6027 = shalt.err (!%p6024_p4)
}
 0x13a   : > { %s6028_s22 = scalar_lea.vmem %s923_s5, 2048  ;;  %p6036_p13 = scmp.lt.s32.totalorder %s923_s5, %s923_s5 }
 0x13b   : > { %p6029_p7 = scmp.ne.s32.totalorder %s923_s5, %s6028_s22  ;;  %p6037_p1 = scmp.lt.s32.totalorder %s6028_s22, %s6028_s22 }
 0x13d   : > { %p6031_p8 = pnand %p6029_p7, %p6763_p0  ;;  %p6038_p6 = por %p6037_p1, %p6036_p13 }
 0x13f   : > { %p6032_p11 = pneg %p6031_p8 }
 0x141   : > { %p6039_p9 = pnand %p6038_p6, %p6032_p11 }
 0x143   : > { %6042 = shalt.err (!%p6039_p9)
}
 0x144   : > { %5614 = dma.hbm_to_vmem [thread:$0]  (!%p6747_p12), %s7682_s23, 2048, %s923_s5, [#allocation36], %s6526_s29, %s6526_s29, %s6527_s28  }
 0x145   : > { %s6536_s25 = smov [#allocation2]   ;;  %s6537_s30 = smov [#allocation7]  }
 0x146   : > { %s649_s6 = sshll.u32 %s6536_s25, 4  ;;  %s675_s0 = sshll.u32 %s6537_s30, 4  ;;  %s650_s6 = int_to_ptr.vmem [resolvable:$true] %s649_s6  ;;  %s676_s0 = int_to_ptr.vmem [resolvable:$true] %s675_s0 }
 0x147   : > { %s7760_s9 = sld [smem:[#allocation67_spill]] }
 0x14d   : > { %s6043_s10 = scalar_lea.hbm %s7760_s9, 2048 }
 0x14e   : > { %p6044_p5 = scmp.ne.s32.totalorder %s7760_s9, %s6043_s10  ;;  %p6050_p3 = scmp.lt.u32.totalorder %s6043_s10, %s7760_s9 }
 0x150   : > { %p6046_p10 = pnand %p6044_p5, %p6763_p0 }
 0x152   : > { %p6047_p2 = pneg %p6046_p10 }
 0x154   : > { %p6052_p4 = pnand %p6050_p3, %p6047_p2 }
 0x156   : > { %6055 = shalt.err (!%p6052_p4)
}
 0x157   : > { %s6056_s5 = scalar_lea.vmem %s650_s6, 2048  ;;  %p6064_p13 = scmp.lt.s32.totalorder %s650_s6, %s650_s6 }
 0x158   : > { %p6057_p7 = scmp.ne.s32.totalorder %s650_s6, %s6056_s5  ;;  %p6065_p1 = scmp.lt.s32.totalorder %s6056_s5, %s6056_s5 }
 0x15a   : > { %p6059_p8 = pnand %p6057_p7, %p6763_p0  ;;  %p6066_p6 = por %p6065_p1, %p6064_p13 }
 0x15c   : > { %p6060_p11 = pneg %p6059_p8 }
 0x15e   : > { %p6067_p9 = pnand %p6066_p6, %p6060_p11 }
 0x160   : > { %6070 = shalt.err (!%p6067_p9)
}
 0x161   : > { %5551 = dma.hbm_to_vmem [thread:$0]  (!%p6747_p12), %s7760_s9, 2048, %s650_s6, [#allocation3], %s6526_s29, %s6526_s29, %s6527_s28  }
 0x162   : > { %s7761_s27 = sld [smem:[#allocation69_spill]] }
 0x168   : > { %s7762_s24 = smov %s7761_s27  ;;  %s6071_s10 = scalar_lea.hbm %s7761_s27, 2048 }
 0x169   : > { %p6072_p5 = scmp.ne.s32.totalorder %s7762_s24, %s6071_s10  ;;  %p6078_p3 = scmp.lt.u32.totalorder %s6071_s10, %s7762_s24 }
 0x16b   : > { %p6074_p10 = pnand %p6072_p5, %p6763_p0 }
 0x16d   : > { %p6075_p2 = pneg %p6074_p10 }
 0x16f   : > { %p6080_p4 = pnand %p6078_p3, %p6075_p2 }
 0x171   : > { %6083 = shalt.err (!%p6080_p4)
}
 0x172   : > { %s6084_s1 = scalar_lea.vmem %s676_s0, 2048  ;;  %p6092_p13 = scmp.lt.s32.totalorder %s676_s0, %s676_s0 }
 0x173   : > { %p6085_p7 = scmp.ne.s32.totalorder %s676_s0, %s6084_s1  ;;  %p6093_p1 = scmp.lt.s32.totalorder %s6084_s1, %s6084_s1 }
 0x175   : > { %p6087_p8 = pnand %p6085_p7, %p6763_p0  ;;  %p6094_p6 = por %p6093_p1, %p6092_p13 }
 0x177   : > { %p6088_p11 = pneg %p6087_p8 }
 0x179   : > { %p6095_p9 = pnand %p6094_p6, %p6088_p11 }
 0x17b   : > { %6098 = shalt.err (!%p6095_p9)
}
 0x17c   : > { %5557 = dma.hbm_to_vmem [thread:$0]  (!%p6747_p12), %s7762_s24, 2048, %s676_s0, [#allocation6], %s6526_s29, %s6526_s29, %s6527_s28  }
 0x17d   : > { %s6538_s25 = smov [#allocation10]   ;;  %s6539_s27 = smov [#allocation13]  }
 0x17e   : > { %s701_s30 = sshll.u32 %s6538_s25, 4  ;;  %s727_s10 = sshll.u32 %s6539_s27, 4  ;;  %s702_s30 = int_to_ptr.vmem [resolvable:$true] %s701_s30  ;;  %s728_s10 = int_to_ptr.vmem [resolvable:$true] %s727_s10 }
 0x17f   : > { %s7763_s7 = sld [smem:[#allocation71_spill]] }
 0x185   : > { %s7764_s5 = smov %s7763_s7  ;;  %s6099_s1 = scalar_lea.hbm %s7763_s7, 2048 }
 0x186   : > { %p6100_p5 = scmp.ne.s32.totalorder %s7764_s5, %s6099_s1  ;;  %p6106_p3 = scmp.lt.u32.totalorder %s6099_s1, %s7764_s5 }
 0x188   : > { %p6102_p10 = pnand %p6100_p5, %p6763_p0 }
 0x18a   : > { %p6103_p2 = pneg %p6102_p10 }
 0x18c   : > { %p6108_p4 = pnand %p6106_p3, %p6103_p2 }
 0x18e   : > { %6111 = shalt.err (!%p6108_p4)
}
 0x18f   : > { %s6112_s0 = scalar_lea.vmem %s702_s30, 2048  ;;  %p6120_p13 = scmp.lt.s32.totalorder %s702_s30, %s702_s30 }
 0x190   : > { %p6113_p7 = scmp.ne.s32.totalorder %s702_s30, %s6112_s0  ;;  %p6121_p1 = scmp.lt.s32.totalorder %s6112_s0, %s6112_s0 }
 0x192   : > { %p6115_p8 = pnand %p6113_p7, %p6763_p0  ;;  %p6122_p6 = por %p6121_p1, %p6120_p13 }
 0x194   : > { %p6116_p11 = pneg %p6115_p8 }
 0x196   : > { %p6123_p9 = pnand %p6122_p6, %p6116_p11 }
 0x198   : > { %6126 = shalt.err (!%p6123_p9)
}
 0x199   : > { %5563 = dma.hbm_to_vmem [thread:$0]  (!%p6747_p12), %s7764_s5, 2048, %s702_s30, [#allocation9], %s6526_s29, %s6526_s29, %s6527_s28  }
 0x19a   : > { %s7765_s25 = sld [smem:[#allocation73_spill]] }
 0x1a0   : > { %s6127_s27 = scalar_lea.hbm %s7765_s25, 2048 }
 0x1a1   : > { %p6128_p5 = scmp.ne.s32.totalorder %s7765_s25, %s6127_s27  ;;  %p6134_p3 = scmp.lt.u32.totalorder %s6127_s27, %s7765_s25 }
 0x1a3   : > { %p6130_p10 = pnand %p6128_p5, %p6763_p0 }
 0x1a5   : > { %p6131_p2 = pneg %p6130_p10 }
 0x1a7   : > { %p6136_p4 = pnand %p6134_p3, %p6131_p2 }
 0x1a9   : > { %6139 = shalt.err (!%p6136_p4)
}
 0x1aa   : > { %s6140_s6 = scalar_lea.vmem %s728_s10, 2048  ;;  %p6148_p13 = scmp.lt.s32.totalorder %s728_s10, %s728_s10 }
 0x1ab   : > { %p6141_p7 = scmp.ne.s32.totalorder %s728_s10, %s6140_s6  ;;  %p6149_p1 = scmp.lt.s32.totalorder %s6140_s6, %s6140_s6 }
 0x1ad   : > { %p6143_p8 = pnand %p6141_p7, %p6763_p0  ;;  %p6150_p6 = por %p6149_p1, %p6148_p13 }
 0x1af   : > { %p6144_p11 = pneg %p6143_p8 }
 0x1b1   : > { %p6151_p9 = pnand %p6150_p6, %p6144_p11 }
 0x1b3   : > { %6154 = shalt.err (!%p6151_p9)
}
 0x1b4   : > { %5569 = dma.hbm_to_vmem [thread:$0]  (!%p6747_p12), %s7765_s25, 2048, %s728_s10, [#allocation12], %s6526_s29, %s6526_s29, %s6527_s28  }
 0x1b5   : > { %s6540_s11 = smov [#allocation16]   ;;  %s6541_s9 = smov [#allocation19]  }
 0x1b6   : > { %s753_s2 = sshll.u32 %s6540_s11, 4  ;;  %s779_s8 = sshll.u32 %s6541_s9, 4  ;;  %s754_s2 = int_to_ptr.vmem [resolvable:$true] %s753_s2  ;;  %s780_s8 = int_to_ptr.vmem [resolvable:$true] %s779_s8 }
 0x1b7   : > { %s7766_s22 = sld [smem:[#allocation75_spill]] }
 0x1bd   : > { %s6155_s7 = scalar_lea.hbm %s7766_s22, 2048 }
 0x1be   : > { %p6156_p5 = scmp.ne.s32.totalorder %s7766_s22, %s6155_s7  ;;  %p6162_p3 = scmp.lt.u32.totalorder %s6155_s7, %s7766_s22 }
 0x1c0   : > { %p6158_p10 = pnand %p6156_p5, %p6763_p0 }
 0x1c2   : > { %p6159_p2 = pneg %p6158_p10 }
 0x1c4   : > { %p6164_p4 = pnand %p6162_p3, %p6159_p2 }
 0x1c6   : > { %6167 = shalt.err (!%p6164_p4)
}
 0x1c7   : > { %s6168_s10 = scalar_lea.vmem %s754_s2, 2048  ;;  %p6176_p13 = scmp.lt.s32.totalorder %s754_s2, %s754_s2 }
 0x1c8   : > { %p6169_p7 = scmp.ne.s32.totalorder %s754_s2, %s6168_s10  ;;  %p6177_p1 = scmp.lt.s32.totalorder %s6168_s10, %s6168_s10 }
 0x1ca   : > { %p6171_p8 = pnand %p6169_p7, %p6763_p0  ;;  %p6178_p6 = por %p6177_p1, %p6176_p13 }
 0x1cc   : > { %p6172_p11 = pneg %p6171_p8 }
 0x1ce   : > { %p6179_p9 = pnand %p6178_p6, %p6172_p11 }
 0x1d0   : > { %6182 = shalt.err (!%p6179_p9)
}
 0x1d1   : > { %5575 = dma.hbm_to_vmem [thread:$0]  (!%p6747_p12), %s7766_s22, 2048, %s754_s2, [#allocation15], %s6526_s29, %s6526_s29, %s6527_s28  }
 0x1d2   : > { %s7767_s12 = sld [smem:[#allocation77_spill]] }
 0x1d8   : > { %s6183_s27 = scalar_lea.hbm %s7767_s12, 2048 }
 0x1d9   : > { %p6184_p5 = scmp.ne.s32.totalorder %s7767_s12, %s6183_s27  ;;  %p6190_p3 = scmp.lt.u32.totalorder %s6183_s27, %s7767_s12 }
 0x1db   : > { %p6186_p10 = pnand %p6184_p5, %p6763_p0 }
 0x1dd   : > { %p6187_p2 = pneg %p6186_p10 }
 0x1df   : > { %p6192_p4 = pnand %p6190_p3, %p6187_p2 }
 0x1e1   : > { %6195 = shalt.err (!%p6192_p4)
}
 0x1e2   : > { %s6196_s30 = scalar_lea.vmem %s780_s8, 2048  ;;  %p6204_p13 = scmp.lt.s32.totalorder %s780_s8, %s780_s8 }
 0x1e3   : > { %p6197_p7 = scmp.ne.s32.totalorder %s780_s8, %s6196_s30  ;;  %p6205_p1 = scmp.lt.s32.totalorder %s6196_s30, %s6196_s30 }
 0x1e5   : > { %p6199_p8 = pnand %p6197_p7, %p6763_p0  ;;  %p6206_p6 = por %p6205_p1, %p6204_p13 }
 0x1e7   : > { %p6200_p11 = pneg %p6199_p8 }
 0x1e9   : > { %p6207_p9 = pnand %p6206_p6, %p6200_p11 }
 0x1eb   : > { %6210 = shalt.err (!%p6207_p9)
}
 0x1ec   : > { %5581 = dma.hbm_to_vmem [thread:$0]  (!%p6747_p12), %s7767_s12, 2048, %s780_s8, [#allocation18], %s6526_s29, %s6526_s29, %s6527_s28  }
 0x1ed   : > { %s6542_s5 = smov [#allocation22]   ;;  %s6543_s11 = smov [#allocation25]  }
 0x1ee   : > { %s805_s0 = sshll.u32 %s6542_s5, 4  ;;  %s831_s9 = sshll.u32 %s6543_s11, 4  ;;  %s806_s0 = int_to_ptr.vmem [resolvable:$true] %s805_s0  ;;  %s832_s9 = int_to_ptr.vmem [resolvable:$true] %s831_s9 }
 0x1ef   : > { %s6211_s7 = scalar_lea.hbm %s7673_s14, 2048 }
 0x1f0   : > { %p6212_p5 = scmp.ne.s32.totalorder %s7673_s14, %s6211_s7  ;;  %p6218_p3 = scmp.lt.u32.totalorder %s6211_s7, %s7673_s14 }
 0x1f2   : > { %p6214_p10 = pnand %p6212_p5, %p6763_p0 }
 0x1f4   : > { %p6215_p2 = pneg %p6214_p10 }
 0x1f6   : > { %p6220_p4 = pnand %p6218_p3, %p6215_p2 }
 0x1f8   : > { %6223 = shalt.err (!%p6220_p4)
}
 0x1f9   : > { %s6224_s8 = scalar_lea.vmem %s806_s0, 2048  ;;  %p6232_p13 = scmp.lt.s32.totalorder %s806_s0, %s806_s0 }
 0x1fa   : > { %p6225_p7 = scmp.ne.s32.totalorder %s806_s0, %s6224_s8  ;;  %p6233_p1 = scmp.lt.s32.totalorder %s6224_s8, %s6224_s8 }
 0x1fc   : > { %p6227_p8 = pnand %p6225_p7, %p6763_p0  ;;  %p6234_p6 = por %p6233_p1, %p6232_p13 }
 0x1fe   : > { %p6228_p11 = pneg %p6227_p8 }
 0x200   : > { %p6235_p9 = pnand %p6234_p6, %p6228_p11 }
 0x202   : > { %6238 = shalt.err (!%p6235_p9)
}
 0x203   : > { %5587 = dma.hbm_to_vmem [thread:$0]  (!%p6747_p12), %s7673_s14, 2048, %s806_s0, [#allocation21], %s6526_s29, %s6526_s29, %s6527_s28  }
 0x204   : > { %s6239_s26 = scalar_lea.hbm %s7675_s16, 2048 }
 0x205   : > { %p6240_p5 = scmp.ne.s32.totalorder %s7675_s16, %s6239_s26  ;;  %p6246_p3 = scmp.lt.u32.totalorder %s6239_s26, %s7675_s16 }
 0x207   : > { %p6242_p10 = pnand %p6240_p5, %p6763_p0 }
 0x209   : > { %p6243_p2 = pneg %p6242_p10 }
 0x20b   : > { %p6248_p4 = pnand %p6246_p3, %p6243_p2 }
 0x20d   : > { %6251 = shalt.err (!%p6248_p4)
}
 0x20e   : > { %s6252_s2 = scalar_lea.vmem %s832_s9, 2048  ;;  %p6260_p13 = scmp.lt.s32.totalorder %s832_s9, %s832_s9 }
 0x20f   : > { %p6253_p7 = scmp.ne.s32.totalorder %s832_s9, %s6252_s2  ;;  %p6261_p1 = scmp.lt.s32.totalorder %s6252_s2, %s6252_s2 }
 0x211   : > { %p6255_p8 = pnand %p6253_p7, %p6763_p0  ;;  %p6262_p6 = por %p6261_p1, %p6260_p13 }
 0x213   : > { %p6256_p11 = pneg %p6255_p8 }
 0x215   : > { %p6263_p9 = pnand %p6262_p6, %p6256_p11 }
 0x217   : > { %6266 = shalt.err (!%p6263_p9)
}
 0x218   : > { %5593 = dma.hbm_to_vmem [thread:$0]  (!%p6747_p12), %s7675_s16, 2048, %s832_s9, [#allocation24], %s6526_s29, %s6526_s29, %s6527_s28  }
 0x219   : > { %s6544_s10 = smov [#allocation28]   ;;  %s6545_s11 = smov [#allocation31]  }
 0x21a   : > { %s857_s5 = sshll.u32 %s6544_s10, 4  ;;  %s883_s27 = sshll.u32 %s6545_s11, 4  ;;  %s858_s5 = int_to_ptr.vmem [resolvable:$true] %s857_s5  ;;  %s884_s27 = int_to_ptr.vmem [resolvable:$true] %s883_s27 }
 0x21b   : > { %s6267_s1 = scalar_lea.hbm %s7677_s18, 2048 }
 0x21c   : > { %p6268_p5 = scmp.ne.s32.totalorder %s7677_s18, %s6267_s1  ;;  %p6274_p3 = scmp.lt.u32.totalorder %s6267_s1, %s7677_s18 }
 0x21e   : > { %p6270_p10 = pnand %p6268_p5, %p6763_p0 }
 0x220   : > { %p6271_p2 = pneg %p6270_p10 }
 0x222   : > { %p6276_p4 = pnand %p6274_p3, %p6271_p2 }
 0x224   : > { %6279 = shalt.err (!%p6276_p4)
}
 0x225   : > { %s6280_s9 = scalar_lea.vmem %s858_s5, 2048  ;;  %p6288_p13 = scmp.lt.s32.totalorder %s858_s5, %s858_s5 }
 0x226   : > { %p6281_p7 = scmp.ne.s32.totalorder %s858_s5, %s6280_s9  ;;  %p6289_p1 = scmp.lt.s32.totalorder %s6280_s9, %s6280_s9 }
 0x228   : > { %p6283_p8 = pnand %p6281_p7, %p6763_p0  ;;  %p6290_p6 = por %p6289_p1, %p6288_p13 }
 0x22a   : > { %p6284_p11 = pneg %p6283_p8 }
 0x22c   : > { %p6291_p9 = pnand %p6290_p6, %p6284_p11 }
 0x22e   : > { %6294 = shalt.err (!%p6291_p9)
}
 0x22f   : > { %5599 = dma.hbm_to_vmem [thread:$0]  (!%p6747_p12), %s7677_s18, 2048, %s858_s5, [#allocation27], %s6526_s29, %s6526_s29, %s6527_s28  }
 0x230   : > { %s6295_s7 = scalar_lea.hbm %s7679_s20, 2048 }
 0x231   : > { %p6296_p5 = scmp.ne.s32.totalorder %s7679_s20, %s6295_s7  ;;  %p6302_p3 = scmp.lt.u32.totalorder %s6295_s7, %s7679_s20 }
 0x233   : > { %p6298_p10 = pnand %p6296_p5, %p6763_p0 }
 0x235   : > { %p6299_p2 = pneg %p6298_p10 }
 0x237   : > { %p6304_p4 = pnand %p6302_p3, %p6299_p2 }
 0x239   : > { %6307 = shalt.err (!%p6304_p4)
}
 0x23a   : > { %s6308_s0 = scalar_lea.vmem %s884_s27, 2048  ;;  %p6316_p13 = scmp.lt.s32.totalorder %s884_s27, %s884_s27 }
 0x23b   : > { %p6309_p7 = scmp.ne.s32.totalorder %s884_s27, %s6308_s0  ;;  %p6317_p1 = scmp.lt.s32.totalorder %s6308_s0, %s6308_s0 }
 0x23d   : > { %p6311_p8 = pnand %p6309_p7, %p6763_p0  ;;  %p6318_p6 = por %p6317_p1, %p6316_p13 }
 0x23f   : > { %p6312_p11 = pneg %p6311_p8 }
 0x241   : > { %p6319_p9 = pnand %p6318_p6, %p6312_p11 }
 0x243   : > { %6322 = shalt.err (!%p6319_p9)
}
 0x244   : > { %5605 = dma.hbm_to_vmem [thread:$0]  (!%p6747_p12), %s7679_s20, 2048, %s884_s27, [#allocation30], %s6526_s29, %s6526_s29, %s6527_s28  }
 0x245   : > { %s6546_s8 = smov [#allocation34]   ;;  %s6547_s11 = smov [#allocation37]  }
 0x246   : > { %s909_s10 = sshll.u32 %s6546_s8, 4  ;;  %s935_s26 = sshll.u32 %s6547_s11, 4  ;;  %s910_s10 = int_to_ptr.vmem [resolvable:$true] %s909_s10  ;;  %s936_s26 = int_to_ptr.vmem [resolvable:$true] %s935_s26 }
 0x247   : > { %s7768_s6 = sld [smem:[#allocation78_spill]] }
 0x24d   : > { %s6323_s30 = scalar_lea.hbm %s7768_s6, 2048 }
 0x24e   : > { %p6324_p5 = scmp.ne.s32.totalorder %s7768_s6, %s6323_s30  ;;  %p6330_p3 = scmp.lt.u32.totalorder %s6323_s30, %s7768_s6 }
 0x250   : > { %p6326_p10 = pnand %p6324_p5, %p6763_p0 }
 0x252   : > { %p6327_p2 = pneg %p6326_p10 }
 0x254   : > { %p6332_p4 = pnand %p6330_p3, %p6327_p2 }
 0x256   : > { %6335 = shalt.err (!%p6332_p4)
}
 0x257   : > { %s6336_s27 = scalar_lea.vmem %s910_s10, 2048  ;;  %p6344_p13 = scmp.lt.s32.totalorder %s910_s10, %s910_s10 }
 0x258   : > { %p6337_p7 = scmp.ne.s32.totalorder %s910_s10, %s6336_s27  ;;  %p6345_p1 = scmp.lt.s32.totalorder %s6336_s27, %s6336_s27 }
 0x25a   : > { %p6339_p8 = pnand %p6337_p7, %p6763_p0  ;;  %p6346_p6 = por %p6345_p1, %p6344_p13 }
 0x25c   : > { %p6340_p11 = pneg %p6339_p8 }
 0x25e   : > { %p6347_p9 = pnand %p6346_p6, %p6340_p11 }
 0x260   : > { %6350 = shalt.err (!%p6347_p9)
}
 0x261   : > { %5611 = dma.hbm_to_vmem [thread:$0]  (!%p6747_p12), %s7768_s6, 2048, %s910_s10, [#allocation33], %s6526_s29, %s6526_s29, %s6527_s28  }
 0x262   : > { %s7769_s7 = sld [smem:[#allocation79_spill]] }
 0x268   : > { %s7770_s1 = smov %s7769_s7  ;;  %s6351_s30 = scalar_lea.hbm %s7769_s7, 2048 }
 0x269   : > { %p6352_p5 = scmp.ne.s32.totalorder %s7770_s1, %s6351_s30  ;;  %p6358_p3 = scmp.lt.u32.totalorder %s6351_s30, %s7770_s1 }
 0x26b   : > { %p6354_p10 = pnand %p6352_p5, %p6763_p0 }
 0x26d   : > { %p6355_p2 = pneg %p6354_p10 }
 0x26f   : > { %p6360_p4 = pnand %p6358_p3, %p6355_p2 }
 0x271   : > { %6363 = shalt.err (!%p6360_p4)
}
 0x272   : > { %s6364_s12 = scalar_lea.vmem %s936_s26, 2048  ;;  %p6372_p13 = scmp.lt.s32.totalorder %s936_s26, %s936_s26 }
 0x273   : > { %p6365_p7 = scmp.ne.s32.totalorder %s936_s26, %s6364_s12  ;;  %p6373_p1 = scmp.lt.s32.totalorder %s6364_s12, %s6364_s12 }
 0x275   : > { %p6367_p8 = pnand %p6365_p7, %p6763_p0  ;;  %p6374_p6 = por %p6373_p1, %p6372_p13 }
 0x277   : > { %p6368_p11 = pneg %p6367_p8 }
 0x279   : > { %p6375_p9 = pnand %p6374_p6, %p6368_p11 }
 0x27b   : > { %6378 = shalt.err (!%p6375_p9)
}
 0x27c   : > { %5617 = dma.hbm_to_vmem [thread:$0]  (!%p6747_p12), %s7770_s1, 2048, %s936_s26, [#allocation36], %s6526_s29, %s6526_s29, %s6527_s28  }
 0x27d   : > { %s6548_s8 = smov [#allocation38]   ;;  %s7771_s2 = sld [smem:[#allocation80_spill]] }
 0x27e   : > { %s948_s11 = sshll.u32 %s6548_s8, 4  ;;  %s949_s11 = int_to_ptr.vmem [resolvable:$true] %s948_s11 }
 0x283   : > { %s6379_s0 = scalar_lea.hbm %s7771_s2, 2048 }
 0x284   : > { %p6380_p5 = scmp.ne.s32.totalorder %s7771_s2, %s6379_s0  ;;  %p6386_p3 = scmp.lt.u32.totalorder %s6379_s0, %s7771_s2 }
 0x286   : > { %p6382_p10 = pnand %p6380_p5, %p6763_p0 }
 0x288   : > { %p6383_p2 = pneg %p6382_p10 }
 0x28a   : > { %p6388_p4 = pnand %p6386_p3, %p6383_p2 }
 0x28c   : > { %6391 = shalt.err (!%p6388_p4)
}
 0x28d   : > { %s6392_s26 = scalar_lea.vmem %s949_s11, 2048  ;;  %p6400_p13 = scmp.lt.s32.totalorder %s949_s11, %s949_s11 }
 0x28e   : > { %p6393_p7 = scmp.ne.s32.totalorder %s949_s11, %s6392_s26  ;;  %p6401_p1 = scmp.lt.s32.totalorder %s6392_s26, %s6392_s26 }
 0x290   : > { %p6395_p8 = pnand %p6393_p7, %p6763_p0  ;;  %p6402_p6 = por %p6401_p1, %p6400_p13 }
 0x292   : > { %p6396_p11 = pneg %p6395_p8 }
 0x294   : > { %p6403_p9 = pnand %p6402_p6, %p6396_p11 }
 0x296   : > { %6406 = shalt.err (!%p6403_p9)
}
 0x297   : > { %5620 = dma.hbm_to_vmem [thread:$0]  (!%p6747_p12), %s7771_s2, 2048, %s949_s11, [#allocation39], %s6526_s29, %s6526_s29, %s6527_s28  }
 0x298   : > { %s7772_s9 = sld [smem:[#allocation64_spill]] }
 0x29e   : > { %p7773_p5 = scmp.ne.s32.totalorder %s7772_s9, 0 }
 0x29f   : > { %s7774_s3 = sld [smem:[#allocation59_spill]] (!%p7773_p5) }
 0x2a0   : > { %971 = sbr.rel (%p7773_p5) target bundleno = 3350 (0xd16), region = 124 }
 0x2a5   : > { %p7775_p0 = scmp.eq.s32.totalorder (!%p7773_p5), %s7774_s3, 0 }
 0x2a7   : > { %6452 = dma.done.wait (%p7775_p0), [#allocation3], 2048   ;;  %p7776_p10 = pmov %p7775_p0 }
 0x2a8   : > { %p7777_p2 = pmov %p7775_p0 }
 0x2a9   : > { %6454 = vsyncadd (%p7776_p10), [#allocation3], 4294965248 }
 0x2aa   : > { %6456 = dma.done.wait (%p7777_p2), [#allocation6], 4096   ;;  %p7778_p3 = pmov %p7775_p0 }
 0x2ab   : > { %p7779_p4 = pmov %p7775_p0 }
 0x2ac   : > { %6458 = vsyncadd (%p7778_p3), [#allocation6], 4294963200 }
 0x2ad   : > { %6460 = dma.done.wait (%p7779_p4), [#allocation9], 4096   ;;  %p7780_p12 = pmov %p7775_p0 }
 0x2ae   : > { %p7781_p7 = pmov %p7775_p0 }
 0x2af   : > { %6462 = vsyncadd (%p7780_p12), [#allocation9], 4294963200 }
 0x2b0   : > { %6464 = dma.done.wait (%p7781_p7), [#allocation12], 4096   ;;  %p7782_p8 = pmov %p7775_p0 }
 0x2b1   : > { %p7783_p11 = pmov %p7775_p0 }
 0x2b2   : > { %6466 = vsyncadd (%p7782_p8), [#allocation12], 4294963200 }
 0x2b3   : > { %6468 = dma.done.wait (%p7783_p11), [#allocation15], 4096   ;;  %p7784_p13 = pmov %p7775_p0 }
 0x2b4   : > { %p7785_p1 = pmov %p7775_p0 }
 0x2b5   : > { %6470 = vsyncadd (%p7784_p13), [#allocation15], 4294963200 }
 0x2b6   : > { %6472 = dma.done.wait (%p7785_p1), [#allocation18], 4096   ;;  %p7786_p6 = pmov %p7775_p0 }
 0x2b7   : > { %p7787_p9 = pmov %p7775_p0 }
 0x2b8   : > { %6474 = vsyncadd (%p7786_p6), [#allocation18], 4294963200 }
 0x2b9   : > { %6476 = dma.done.wait (%p7787_p9), [#allocation21], 4096   ;;  %p7788_p5 = pmov %p7775_p0 }
 0x2bb   : > { %6478 = vsyncadd (%p7788_p5), [#allocation21], 4294963200 }
 0x2bc   : > { %6480 = dma.done.wait (%p7775_p0), [#allocation24], 4096   ;;  %p7789_p10 = pmov %p7775_p0 }
 0x2bd   : > { %p7790_p2 = pmov %p7775_p0 }
 0x2be   : > { %6482 = vsyncadd (%p7789_p10), [#allocation24], 4294963200 }
 0x2bf   : > { %6484 = dma.done.wait (%p7790_p2), [#allocation27], 4096   ;;  %p7791_p3 = pmov %p7775_p0 }
 0x2c0   : > { %p7792_p4 = pmov %p7775_p0 }
 0x2c1   : > { %6486 = vsyncadd (%p7791_p3), [#allocation27], 4294963200 }
 0x2c2   : > { %6488 = dma.done.wait (%p7792_p4), [#allocation30], 4096   ;;  %p7793_p12 = pmov %p7775_p0 }
 0x2c3   : > { %p7794_p7 = pmov %p7775_p0 }
 0x2c4   : > { %6490 = vsyncadd (%p7793_p12), [#allocation30], 4294963200 }
 0x2c5   : > { %6492 = dma.done.wait (%p7794_p7), [#allocation33], 4096   ;;  %p7795_p8 = pmov %p7775_p0 }
 0x2c6   : > { %p7796_p11 = pmov %p7775_p0 }
 0x2c7   : > { %6494 = vsyncadd (%p7795_p8), [#allocation33], 4294963200 }
 0x2c8   : > { %6496 = dma.done.wait (%p7796_p11), [#allocation36], 4096   ;;  %p7797_p13 = pmov %p7775_p0 }
 0x2c9   : > { %p7798_p1 = pmov %p7775_p0 }
 0x2ca   : > { %6498 = vsyncadd (%p7797_p13), [#allocation36], 4294963200 }
 0x2cb   : > { %6500 = dma.done.wait (%p7798_p1), [#allocation39], 2048   ;;  %p7799_p6 = pmov %p7775_p0 }
 0x2cc   : > { %v6549_v0 = vmov 0.0|0.0   ;;  %vm6550_vm0 = vmmov 0   ;;  %v6551_v1 = vmov 0.0   ;;  %v1227_v2 = vld [vmem:[#allocation2] sm:$0xff]  ;;  %v1228_v3 = vld [vmem:[#allocation2 + $0x8] sm:$0xff]  ;;  %v1229_v4 = vld [vmem:[#allocation2 + $0x10] sm:$0xff] }
 0x2cd   : > { %6502 = vsyncadd (%p7799_p6), [#allocation39], 4294965248  ;;  %4886 = vmatprep.subr.bf16.mxu1 %v6549_v0  ;;  %4089 = vmatprep.mubr.msk.f32.mxu1 %vm6550_vm0, %v6551_v1  ;;  %v4887_v5 = vpack.c.bf16 %v1228_v3, %v1227_v2  ;;  %v1230_v6 = vld [vmem:[#allocation2 + $0x18] sm:$0xff]  ;;  %v1231_v8 = vld [vmem:[#allocation2 + $0x20] sm:$0xff]  ;;  %p1132_p9 = scmp.lt.s32.totalorder %s7774_s3, 1  ;;  %s7800_s11 = sld [smem:[#allocation65_spill]] }
 0x2ce   : > { %4862 = vmatprep.subr.bf16.mxu0 %v6549_v0  ;;  %4054 = vmatprep.mubr.msk.f32.mxu0 %vm6550_vm0, %v6551_v1  ;;  %v4890_v7 = vpack.c.bf16 %v1230_v6, %v1229_v4  ;;  %v1232_v9 = vld [vmem:[#allocation2 + $0x28] sm:$0xff]  ;;  %v1141_v10 = vld [vmem:[#allocation5] sm:$0xff]  ;;  %v1143_v12 = vld [vmem:[#allocation5 + $0x10] sm:$0xff]  ;;  %s7801_s5 = sld [smem:[#allocation66_spill]]  ;;  %s3611_s30 = sshll.u32 %s7774_s3, 6 }
 0x2cf   : > { %4888 = vmatpush3.bf16.msra.mxu1 %v4887_v5  ;;  %v1142_v11 = vld [vmem:[#allocation5 + $0x8] sm:$0xff]  ;;  %v1144_v13 = vld [vmem:[#allocation5 + $0x18] sm:$0xff]  ;;  %v4893_v14 = vpack.c.bf16 %v1232_v9, %v1231_v8  ;;  %v1233_v16 = vld [vmem:[#allocation2 + $0x30] sm:$0xff]  ;;  %s1133_s4 = scalar_select %p1132_p9, %s7774_s3, 1 }
 0x2d0   : > { %4889 = vmatprep.subr.bf16.mxu1 %v6549_v0  ;;  %v4863_v15 = vpack.c.bf16 %v1142_v11, %v1141_v10  ;;  %v1234_v17 = vld [vmem:[#allocation2 + $0x38] sm:$0xff]  ;;  %v4866_v18 = vpack.c.bf16 %v1144_v13, %v1143_v12  ;;  %v1145_v19 = vld [vmem:[#allocation5 + $0x20] sm:$0xff]  ;;  %v1146_v20 = vld [vmem:[#allocation5 + $0x28] sm:$0xff]  ;;  %s7804_s12 = sld [smem:[#allocation81_spill]]  ;;  %s6552_s3 = smov [#allocation40]  }
 0x2d1   : > { %v4896_v21 = vpack.c.bf16 %v1234_v17, %v1233_v16  ;;  %v1235_v22 = vld [vmem:[#allocation2 + $0x40] sm:$0xff]  ;;  %v1236_v23 = vld [vmem:[#allocation2 + $0x48] sm:$0xff]  ;;  %v4869_v24 = vpack.c.bf16 %v1146_v20, %v1145_v19  ;;  %v1147_v25 = vld [vmem:[#allocation5 + $0x30] sm:$0xff]  ;;  %s3609_s29 = sshll.u32 %s1133_s4, 2  ;;  %s7802_s4 = sld [smem:[#allocation56_spill]] }
 0x2d2   : > { %4864 = vmatpush3.bf16.msra.mxu0 %v4863_v15  ;;  %v1148_v26 = vld [vmem:[#allocation5 + $0x38] sm:$0xff]  ;;  %v4899_v27 = vpack.c.bf16 %v1236_v23, %v1235_v22  ;;  %v1237_v28 = vld [vmem:[#allocation2 + $0x50] sm:$0xff]  ;;  %v1149_v31 = vld [vmem:[#allocation5 + $0x40] sm:$0xff]  ;;  %s6411_s9 = sshll.u32 %s6552_s3, 4  ;;  %s6412_s9 = int_to_ptr.vmem [resolvable:$false] %s6411_s9 }
 0x2d3   : > { %4891 = vmatpush3.bf16.msra.mxu1 %v4890_v7  ;;  %4865 = vmatprep.subr.bf16.mxu0 %v6549_v0  ;;  %v1238_v29 = vld [vmem:[#allocation2 + $0x58] sm:$0xff]  ;;  %v4872_v30 = vpack.c.bf16 %v1148_v26, %v1147_v25  ;;  %v1150_v32 = vld [vmem:[#allocation5 + $0x48] sm:$0xff]  ;;  %v1239_v34 = vld [vmem:[#allocation2 + $0x60] sm:$0xff]  ;;  %s1135_s7 = scalar_lea.vmem %s7800_s11, %s3609_s29  ;;  %s7803_s29 = sld [smem:[#allocation62_spill]] }
 0x2d4   : > { %4892 = vmatprep.subr.bf16.mxu1 %v6549_v0  ;;  %v4902_v33 = vpack.c.bf16 %v1238_v29, %v1237_v28  ;;  %v1240_v35 = vld [vmem:[#allocation2 + $0x68] sm:$0xff]  ;;  %v4875_v36 = vpack.c.bf16 %v1150_v32, %v1149_v31  ;;  %v1151_v37 = vld [vmem:[#allocation5 + $0x50] sm:$0xff]  ;;  %v1152_v38 = vld [vmem:[#allocation5 + $0x58] sm:$0xff] }
 0x2d5   : > { %v4905_v39 = vpack.c.bf16 %v1240_v35, %v1239_v34  ;;  %v1241_v40 = vld [vmem:[#allocation2 + $0x70] sm:$0xff]  ;;  %v1242_v41 = vld [vmem:[#allocation2 + $0x78] sm:$0xff]  ;;  %v4878_v42 = vpack.c.bf16 %v1152_v38, %v1151_v37  ;;  %v1153_v43 = vld [vmem:[#allocation5 + $0x60] sm:$0xff] }
 0x2d6   : > { %4867 = vmatpush3.bf16.msra.mxu0 %v4866_v18  ;;  %v1154_v44 = vld [vmem:[#allocation5 + $0x68] sm:$0xff]  ;;  %v4908_v45 = vpack.c.bf16 %v1242_v41, %v1241_v40  ;;  %v1399_v46 = vld [vmem:[#allocation7] sm:$0xff]  ;;  %v1155_v49 = vld [vmem:[#allocation5 + $0x70] sm:$0xff]  ;;  %s7619_s26 = scalar_lea.hbm %s7804_s12, %s3611_s30 }
 0x2d7   : > { %4894 = vmatpush3.bf16.msra.mxu1 %v4893_v14  ;;  %4868 = vmatprep.subr.bf16.mxu0 %v6549_v0  ;;  %v1400_v47 = vld [vmem:[#allocation7 + $0x8] sm:$0xff]  ;;  %v4881_v48 = vpack.c.bf16 %v1154_v44, %v1153_v43  ;;  %v1156_v50 = vld [vmem:[#allocation5 + $0x78] sm:$0xff]  ;;  %v1401_v53 = vld [vmem:[#allocation7 + $0x10] sm:$0xff]  ;;  %s1129_s28 = sand.u32 1, %s7802_s4   ;;  %s6413_s4 = scalar_lea.vmem %s6412_s9, 128 }
 0x2d8   : > { %4895 = vmatprep.subr.bf16.mxu1 %v6549_v0  ;;  %v1136_v51 = vld [vmem:[%s1135_s7] sm:$0xf]  ;;  %v4935_v52 = vpack.c.bf16 %v1400_v47, %v1399_v46  ;;  %v4884_v55 = vpack.c.bf16 %v1156_v50, %v1155_v49  ;;  %v1313_v56 = vld [vmem:[#allocation8] sm:$0xff]  ;;  %v1314_v57 = vld [vmem:[#allocation8 + $0x8] sm:$0xff]  ;;  %s3608_s8 = sshll.u32 %s1129_s28, 2  ;;  %s3253_s6 = scalar_lea.sflag [#allocation4], %s1129_s28 }
 0x2d9   : > { %v1402_v54 = vld [vmem:[#allocation7 + $0x18] sm:$0xff]  ;;  %v1403_v59 = vld [vmem:[#allocation7 + $0x20] sm:$0xff]  ;;  %v1404_v60 = vld [vmem:[#allocation7 + $0x28] sm:$0xff]  ;;  %v4911_v61 = vpack.c.bf16 %v1314_v57, %v1313_v56  ;;  %s1131_s11 = scalar_lea.vmem [#allocation40], %s3608_s8  ;;  %p7805_p0 = scmp.ne.s32.totalorder %s7803_s29, 0 }
 0x2da   : > { %4870 = vmatpush3.bf16.msra.mxu0 %v4869_v24  ;;  %v4938_v58 = vpack.c.bf16 %v1402_v54, %v1401_v53  ;;  %v1315_v62 = vld [vmem:[#allocation8 + $0x10] sm:$0xff]  ;;  %v1316_v63 = vld [vmem:[#allocation8 + $0x18] sm:$0xff]  ;;  %v4941_v2 = vpack.c.bf16 %v1404_v60, %v1403_v59  ;;  %v1317_v6 = vld [vmem:[#allocation8 + $0x20] sm:$0xff]  ;;  %s3266_s7 = sshll.u32 %s1131_s11, 4  ;;  %s7614_s7 = int_to_ptr.vmem [resolvable:$true] %s3266_s7 }
 0x2db   : > { %4897 = vmatpush3.bf16.msra.mxu1 %v4896_v21  ;;  %4871 = vmatprep.subr.bf16.mxu0 %v6549_v0  ;;  %v1405_v3 = vld [vmem:[#allocation7 + $0x30] sm:$0xff]  ;;  %v1406_v4 = vld [vmem:[#allocation7 + $0x38] sm:$0xff]  ;;  %v4914_v5 = vpack.c.bf16 %v1316_v63, %v1315_v62  ;;  %v1318_v7 = vld [vmem:[#allocation8 + $0x28] sm:$0xff]  ;;  %s6407_s10 = scalar_lea.vmem %s7614_s7, 64  ;;  %p6414_p3 = scmp.lt.s32.totalorder %s7614_s7, %s6412_s9 }
 0x2dc   : > { %4898 = vmatprep.subr.bf16.mxu1 %v6549_v0  ;;  %v4944_v8 = vpack.c.bf16 %v1406_v4, %v1405_v3  ;;  %v1407_v9 = vld [vmem:[#allocation7 + $0x40] sm:$0xff]  ;;  %v1408_v10 = vld [vmem:[#allocation7 + $0x48] sm:$0xff]  ;;  %v4917_v11 = vpack.c.bf16 %v1318_v7, %v1317_v6  ;;  %v1319_v12 = vld [vmem:[#allocation8 + $0x30] sm:$0xff]  ;;  %p6408_p5 = scmp.ne.s32.totalorder %s7614_s7, %s6407_s10  ;;  %p6415_p4 = scmp.lt.s32.totalorder %s6413_s4, %s6407_s10 }
 0x2dd   : > { %v1320_v13 = vld [vmem:[#allocation8 + $0x38] sm:$0xff]  ;;  %v4947_v14 = vpack.c.bf16 %v1408_v10, %v1407_v9  ;;  %v1409_v15 = vld [vmem:[#allocation7 + $0x50] sm:$0xff]  ;;  %v1321_v18 = vld [vmem:[#allocation8 + $0x40] sm:$0xff] }
 0x2de   : > { %4873 = vmatpush3.bf16.msra.mxu0 %v4872_v30  ;;  %v1410_v16 = vld [vmem:[#allocation7 + $0x58] sm:$0xff]  ;;  %v4920_v17 = vpack.c.bf16 %v1320_v13, %v1319_v12  ;;  %v1322_v19 = vld [vmem:[#allocation8 + $0x48] sm:$0xff]  ;;  %v1411_v21 = vld [vmem:[#allocation7 + $0x60] sm:$0xff]  ;;  %p6409_p10 = pnand %p6408_p5, %p7805_p0  ;;  %p6416_p12 = por %p6415_p4, %p6414_p3 }
 0x2df   : > { %4900 = vmatpush3.bf16.msra.mxu1 %v4899_v27  ;;  %4874 = vmatprep.subr.bf16.mxu0 %v6549_v0  ;;  %v4950_v20 = vpack.c.bf16 %v1410_v16, %v1409_v15  ;;  %v1412_v22 = vld [vmem:[#allocation7 + $0x68] sm:$0xff]  ;;  %v4923_v23 = vpack.c.bf16 %v1322_v19, %v1321_v18  ;;  %v1323_v24 = vld [vmem:[#allocation8 + $0x50] sm:$0xff]  ;;  %v1324_v25 = vld [vmem:[#allocation8 + $0x58] sm:$0xff] }
 0x2e0   : > { %4901 = vmatprep.subr.bf16.mxu1 %v6549_v0  ;;  %v4953_v26 = vpack.c.bf16 %v1412_v22, %v1411_v21  ;;  %v1413_v27 = vld [vmem:[#allocation7 + $0x70] sm:$0xff]  ;;  %v1414_v28 = vld [vmem:[#allocation7 + $0x78] sm:$0xff]  ;;  %v4926_v29 = vpack.c.bf16 %v1324_v25, %v1323_v24  ;;  %v1325_v30 = vld [vmem:[#allocation8 + $0x60] sm:$0xff]  ;;  %p6410_p2 = pneg %p6409_p10 }
 0x2e1   : > { %v1326_v31 = vld [vmem:[#allocation8 + $0x68] sm:$0xff]  ;;  %v4956_v32 = vpack.c.bf16 %v1414_v28, %v1413_v27  ;;  %v1327_v34 = vld [vmem:[#allocation8 + $0x70] sm:$0xff]  ;;  %v1328_v35 = vld [vmem:[#allocation8 + $0x78] sm:$0xff] }
 0x2e2   : > { %4876 = vmatpush3.bf16.msra.mxu0 %v4875_v36  ;;  %v4932_v36 = vpack.c.bf16 %v1328_v35, %v1327_v34  ;;  %v1485_v37 = vld [vmem:[#allocation11] sm:$0xff]  ;;  %v1486_v38 = vld [vmem:[#allocation11 + $0x8] sm:$0xff]  ;;  %v1487_v43 = vld [vmem:[#allocation11 + $0x10] sm:$0xff]  ;;  %p6417_p7 = pnand %p6416_p12, %p6410_p2 }
 0x2e3   : > { %4903 = vmatpush3.bf16.msra.mxu1 %v4902_v33  ;;  %4877 = vmatprep.subr.bf16.mxu0 %v6549_v0  ;;  %v4929_v33 = vpack.c.bf16 %v1326_v31, %v1325_v30  ;;  %v1572_v40 = vld [vmem:[#allocation10 + $0x8] sm:$0xff]  ;;  %v4959_v41 = vpack.c.bf16 %v1486_v38, %v1485_v37  ;;  %v1488_v44 = vld [vmem:[#allocation11 + $0x18] sm:$0xff]  ;;  %v1575_v53 = vld [vmem:[#allocation10 + $0x20] sm:$0xff] }
 0x2e4   : > { %4904 = vmatprep.subr.bf16.mxu1 %v6549_v0  ;;  %v1574_v46 = vld [vmem:[#allocation10 + $0x18] sm:$0xff]  ;;  %v4962_v49 = vpack.c.bf16 %v1488_v44, %v1487_v43  ;;  %v1576_v54 = vld [vmem:[#allocation10 + $0x28] sm:$0xff]  ;;  %v1491_v57 = vld [vmem:[#allocation11 + $0x30] sm:$0xff] }
 0x2e5   : > { %v4989_v56 = vpack.c.bf16 %v1576_v54, %v1575_v53  ;;  %v1492_v59 = vld [vmem:[#allocation11 + $0x38] sm:$0xff]  ;;  %v1577_v60 = vld [vmem:[#allocation10 + $0x30] sm:$0xff]  ;;  %v1493_v3 = vld [vmem:[#allocation11 + $0x40] sm:$0xff] }
 0x2e6   : > { %4879 = vmatpush3.bf16.msra.mxu0 %v4878_v42  ;;  %v4968_v63 = vpack.c.bf16 %v1492_v59, %v1491_v57  ;;  %v1494_v4 = vld [vmem:[#allocation11 + $0x48] sm:$0xff]  ;;  %v1495_v9 = vld [vmem:[#allocation11 + $0x50] sm:$0xff]  ;;  %v1496_v10 = vld [vmem:[#allocation11 + $0x58] sm:$0xff] }
 0x2e7   : > { %4906 = vmatpush3.bf16.msra.mxu1 %v4905_v39  ;;  %4880 = vmatprep.subr.bf16.mxu0 %v6549_v0  ;;  %v1571_v39 = vld [vmem:[#allocation10] sm:$0xff]  ;;  %v1580_v6 = vld [vmem:[#allocation10 + $0x48] sm:$0xff]  ;;  %v4971_v7 = vpack.c.bf16 %v1494_v4, %v1493_v3  ;;  %v1582_v12 = vld [vmem:[#allocation10 + $0x58] sm:$0xff]  ;;  %v4974_v13 = vpack.c.bf16 %v1496_v10, %v1495_v9 }
 0x2e8   : > { %4907 = vmatprep.subr.bf16.mxu1 %v6549_v0  ;;  %v4983_v42 = vpack.c.bf16 %v1572_v40, %v1571_v39  ;;  %v1497_v15 = vld [vmem:[#allocation11 + $0x60] sm:$0xff]  ;;  %v1498_v16 = vld [vmem:[#allocation11 + $0x68] sm:$0xff]  ;;  %v1499_v21 = vld [vmem:[#allocation11 + $0x70] sm:$0xff] }
 0x2e9   : > { %v1584_v18 = vld [vmem:[#allocation10 + $0x68] sm:$0xff]  ;;  %v4977_v19 = vpack.c.bf16 %v1498_v16, %v1497_v15  ;;  %v1500_v22 = vld [vmem:[#allocation11 + $0x78] sm:$0xff]  ;;  %v1657_v27 = vld [vmem:[#allocation14] sm:$0xff] }
 0x2ea   : > { %4882 = vmatpush3.bf16.msra.mxu0 %v4881_v48  ;;  %v1586_v24 = vld [vmem:[#allocation10 + $0x78] sm:$0xff]  ;;  %v4980_v25 = vpack.c.bf16 %v1500_v22, %v1499_v21  ;;  %v1658_v28 = vld [vmem:[#allocation14 + $0x8] sm:$0xff]  ;;  %v1745_v35 = vld [vmem:[#allocation13 + $0x10] sm:$0xff] }
 0x2eb   : > { %4909 = vmatpush3.bf16.msra.mxu1 %v4908_v45  ;;  %4883 = vmatprep.subr.bf16.mxu0 %v6549_v0  ;;  %v1573_v45 = vld [vmem:[#allocation10 + $0x10] sm:$0xff]  ;;  %v1744_v30 = vld [vmem:[#allocation13 + $0x8] sm:$0xff]  ;;  %v5007_v31 = vpack.c.bf16 %v1658_v28, %v1657_v27  ;;  %v1660_v34 = vld [vmem:[#allocation14 + $0x18] sm:$0xff] }
 0x2ec   : > { %4934 = vmatprep.subr.bf16.mxu1 %v6549_v0  ;;  %v4986_v50 = vpack.c.bf16 %v1574_v46, %v1573_v45  ;;  %v1661_v43 = vld [vmem:[#allocation14 + $0x20] sm:$0xff]  ;;  %v1662_v44 = vld [vmem:[#allocation14 + $0x28] sm:$0xff]  ;;  %v1754_v3 = vld [vmem:[#allocation13 + $0x58] sm:$0xff] }
 0x2ed   : > { %v1747_v45 = vld [vmem:[#allocation13 + $0x20] sm:$0xff]  ;;  %v1748_v46 = vld [vmem:[#allocation13 + $0x28] sm:$0xff]  ;;  %v1758_v15 = vld [vmem:[#allocation13 + $0x78] sm:$0xff] }
 0x2ee   : > { %4090 = vmatmul.mubr.f32.vlgmr.msra.gmra.mrb[0].mxu1 %v1136_v51  ;;  %4885 = vmatpush3.bf16.msra.mxu0 %v4884_v55  ;;  %v1751_v57 = vld [vmem:[#allocation13 + $0x40] sm:$0xff]  ;;  %v1752_v59 = vld [vmem:[#allocation13 + $0x48] sm:$0xff]  ;;  %v1918_v27 = vld [vmem:[#allocation16 + $0x18] sm:$0xff] }
 0x2ef   : > { %4936 = vmatpush3.bf16.msra.mxu1 %v4935_v52  ;;  %4159 = vmatprep.mubr.msk.f32.mxu1 %vm6550_vm0, %v6551_v1  ;;  %v1490_v52 = vld [vmem:[#allocation11 + $0x28] sm:$0xff] }
 0x2f0   : > { %4937 = vmatprep.subr.bf16.mxu1 %v6549_v0  ;;  %4910 = vmatprep.subr.bf16.mxu0 %v6549_v0  ;;  %v1756_v9 = vld [vmem:[#allocation13 + $0x68] sm:$0xff] }
 0x2f1   : > { %4055 = vmatmul.mubr.f32.vlgmr.msra.gmra.mrb[0].mxu0 %v1136_v51  ;;  %v1489_v51 = vld [vmem:[#allocation11 + $0x20] sm:$0xff]  ;;  %v1916_v21 = vld [vmem:[#allocation16 + $0x8] sm:$0xff] }
 0x2f2   : > { %4912 = vmatpush3.bf16.msra.mxu0 %v4911_v61  ;;  %4124 = vmatprep.mubr.msk.f32.mxu0 %vm6550_vm0, %v6551_v1  ;;  %v4965_v55 = vpack.c.bf16 %v1490_v52, %v1489_v51  ;;  %v1578_v61 = vld [vmem:[#allocation10 + $0x38] sm:$0xff]  ;;  %v1749_v51 = vld [vmem:[#allocation13 + $0x30] sm:$0xff] }
 0x2f3   : > { %4939 = vmatpush3.bf16.msra.mxu1 %v4938_v58  ;;  %4913 = vmatprep.subr.bf16.mxu0 %v6549_v0  ;;  %v1750_v52 = vld [vmem:[#allocation13 + $0x38] sm:$0xff] }
 0x2f4   : > { %4940 = vmatprep.subr.bf16.mxu1 %v6549_v0  ;;  %v5040_v54 = vpack.c.bf16 %v1750_v52, %v1749_v51 }
 0x2f6   : > { %4915 = vmatpush3.bf16.msra.mxu0 %v4914_v5  ;;  %v1579_v5 = vld [vmem:[#allocation10 + $0x40] sm:$0xff] }
 0x2f7   : > { %4942 = vmatpush3.bf16.msra.mxu1 %v4941_v2  ;;  %4916 = vmatprep.subr.bf16.mxu0 %v6549_v0  ;;  %v4992_v2 = vpack.c.bf16 %v1578_v61, %v1577_v60  ;;  %v5043_v61 = vpack.c.bf16 %v1752_v59, %v1751_v57 }
 0x2f8   : > { %4943 = vmatprep.subr.bf16.mxu1 %v6549_v0 }
 0x2fa   : > { %4918 = vmatpush3.bf16.msra.mxu0 %v4917_v11  ;;  %v1581_v11 = vld [vmem:[#allocation10 + $0x50] sm:$0xff] }
 0x2fb   : > { %4945 = vmatpush3.bf16.msra.mxu1 %v4944_v8  ;;  %4919 = vmatprep.subr.bf16.mxu0 %v6549_v0  ;;  %v4995_v8 = vpack.c.bf16 %v1580_v6, %v1579_v5  ;;  %v1669_v6 = vld [vmem:[#allocation14 + $0x60] sm:$0xff] }
 0x2fc   : > { %4946 = vmatprep.subr.bf16.mxu1 %v6549_v0 }
 0x2fe   : > { %4921 = vmatpush3.bf16.msra.mxu0 %v4920_v17  ;;  %v1583_v17 = vld [vmem:[#allocation10 + $0x60] sm:$0xff] }
 0x2ff   : > { %4948 = vmatpush3.bf16.msra.mxu1 %v4947_v14  ;;  %4922 = vmatprep.subr.bf16.mxu0 %v6549_v0  ;;  %v4998_v14 = vpack.c.bf16 %v1582_v12, %v1581_v11  ;;  %v1671_v12 = vld [vmem:[#allocation14 + $0x70] sm:$0xff] }
 0x300   : > { %4949 = vmatprep.subr.bf16.mxu1 %v6549_v0 }
 0x302   : > { %4924 = vmatpush3.bf16.msra.mxu0 %v4923_v23  ;;  %v1585_v23 = vld [vmem:[#allocation10 + $0x70] sm:$0xff] }
 0x303   : > { %4951 = vmatpush3.bf16.msra.mxu1 %v4950_v20  ;;  %4925 = vmatprep.subr.bf16.mxu0 %v6549_v0  ;;  %v5001_v20 = vpack.c.bf16 %v1584_v18, %v1583_v17  ;;  %v1829_v18 = vld [vmem:[#allocation17] sm:$0xff] }
 0x304   : > { %4952 = vmatprep.subr.bf16.mxu1 %v6549_v0 }
 0x306   : > { %4927 = vmatpush3.bf16.msra.mxu0 %v4926_v29  ;;  %v1743_v29 = vld [vmem:[#allocation13] sm:$0xff] }
 0x307   : > { %4954 = vmatpush3.bf16.msra.mxu1 %v4953_v26  ;;  %4928 = vmatprep.subr.bf16.mxu0 %v6549_v0  ;;  %v5004_v26 = vpack.c.bf16 %v1586_v24, %v1585_v23  ;;  %v1831_v24 = vld [vmem:[#allocation17 + $0x10] sm:$0xff] }
 0x308   : > { %4955 = vmatprep.subr.bf16.mxu1 %v6549_v0 }
 0x30a   : > { %4930 = vmatpush3.bf16.msra.mxu0 %v4929_v33  ;;  %v1659_v33 = vld [vmem:[#allocation14 + $0x10] sm:$0xff] }
 0x30b   : > { %4957 = vmatpush3.bf16.msra.mxu1 %v4956_v32  ;;  %4931 = vmatprep.subr.bf16.mxu0 %v6549_v0  ;;  %v5031_v32 = vpack.c.bf16 %v1744_v30, %v1743_v29 }
 0x30c   : > { %4982 = vmatprep.subr.bf16.mxu1 %v6549_v0 }
 0x30e   : > { %4933 = vmatpush3.bf16.msra.mxu0 %v4932_v36  ;;  %v1746_v36 = vld [vmem:[#allocation13 + $0x18] sm:$0xff] }
 0x30f   : > { %4958 = vmatprep.subr.bf16.mxu0 %v6549_v0 }
 0x3c1   : > { %v1309_v47 = vpop.f32.mrb[0].mxu1 }
 0x3c2   : > { %v4091_v48 = vpop.f32.mrb[1].mxu1  ;;  %4125 = vmatmul.mubr.f32.vlgmr.msra.gmra.mrb[2].mxu0 %v1309_v47  ;;  %4160 = vmatmul.mubr.f32.vlgmr.msra.gmra.mrb[2].mxu1 %v1309_v47  ;;  %v5013_v47 = vpack.c.bf16 %v1662_v44, %v1661_v43  ;;  %v1921_v43 = vld [vmem:[#allocation16 + $0x30] sm:$0xff]  ;;  %v1922_v44 = vld [vmem:[#allocation16 + $0x38] sm:$0xff] }
 0x3c3   : > { %4960 = vmatpush3.bf16.msra.mxu0 %v4959_v41  ;;  %4984 = vmatpush3.bf16.msra.mxu1 %v4983_v42  ;;  %v5010_v41 = vpack.c.bf16 %v1660_v34, %v1659_v33  ;;  %v5034_v42 = vpack.c.bf16 %v1746_v36, %v1745_v35  ;;  %v5037_v48 = vpack.c.bf16 %v1748_v46, %v1747_v45  ;;  %v1833_v34 = vld [vmem:[#allocation17 + $0x20] sm:$0xff]  ;;  %v1834_v35 = vld [vmem:[#allocation17 + $0x28] sm:$0xff] }
 0x3c4   : > { %4961 = vmatprep.subr.bf16.mxu0 %v6549_v0  ;;  %4985 = vmatprep.subr.bf16.mxu1 %v6549_v0  ;;  %v7383_v58 = vpop.f32.mrb[0].mxu0  ;;  %v1919_v36 = vld [vmem:[#allocation16 + $0x20] sm:$0xff]  ;;  %v5088_v46 = vpack.c.bf16 %v1922_v44, %v1921_v43  ;;  %v2010_v43 = vld [vmem:[#allocation20 + $0x48] sm:$0xff] }
 0x3c5   : > { %4194 = vmatprep.mubr.msk.f32.mxu0 %vm6550_vm0, %v6551_v1  ;;  %4229 = vmatprep.mubr.msk.f32.mxu1 %vm6550_vm0, %v6551_v1  ;;  %v4056_v62 = vpop.f32.mrb[1].mxu0 }
 0x3c6   : > { %v1667_v62 = vld [vmem:[#allocation14 + $0x50] sm:$0xff] }
 0x3c7   : > { %4963 = vmatpush3.bf16.msra.mxu0 %v4962_v49  ;;  %4987 = vmatpush3.bf16.msra.mxu1 %v4986_v50  ;;  %v1663_v49 = vld [vmem:[#allocation14 + $0x30] sm:$0xff]  ;;  %v1664_v50 = vld [vmem:[#allocation14 + $0x38] sm:$0xff] }
 0x3c8   : > { %4964 = vmatprep.subr.bf16.mxu0 %v6549_v0  ;;  %4988 = vmatprep.subr.bf16.mxu1 %v6549_v0  ;;  %v5016_v53 = vpack.c.bf16 %v1664_v50, %v1663_v49  ;;  %v1923_v49 = vld [vmem:[#allocation16 + $0x40] sm:$0xff]  ;;  %v1924_v50 = vld [vmem:[#allocation16 + $0x48] sm:$0xff] }
 0x3c9   : > { %v5091_v52 = vpack.c.bf16 %v1924_v50, %v1923_v49  ;;  %v2012_v49 = vld [vmem:[#allocation20 + $0x58] sm:$0xff] }
 0x3cb   : > { %4966 = vmatpush3.bf16.msra.mxu0 %v4965_v55  ;;  %4990 = vmatpush3.bf16.msra.mxu1 %v4989_v56  ;;  %v1665_v55 = vld [vmem:[#allocation14 + $0x40] sm:$0xff]  ;;  %v1666_v56 = vld [vmem:[#allocation14 + $0x48] sm:$0xff] }
 0x3cc   : > { %4967 = vmatprep.subr.bf16.mxu0 %v6549_v0  ;;  %4991 = vmatprep.subr.bf16.mxu1 %v6549_v0  ;;  %v5019_v60 = vpack.c.bf16 %v1666_v56, %v1665_v55  ;;  %v1925_v55 = vld [vmem:[#allocation16 + $0x50] sm:$0xff]  ;;  %v1926_v56 = vld [vmem:[#allocation16 + $0x58] sm:$0xff] }
 0x3cd   : > { %v5094_v59 = vpack.c.bf16 %v1926_v56, %v1925_v55  ;;  %v2014_v55 = vld [vmem:[#allocation20 + $0x68] sm:$0xff] }
 0x3cf   : > { %4969 = vmatpush3.bf16.msra.mxu0 %v4968_v63  ;;  %4993 = vmatpush3.bf16.msra.mxu1 %v4992_v2  ;;  %v1668_v63 = vld [vmem:[#allocation14 + $0x58] sm:$0xff]  ;;  %v1753_v2 = vld [vmem:[#allocation13 + $0x50] sm:$0xff] }
 0x3d0   : > { %4970 = vmatprep.subr.bf16.mxu0 %v6549_v0  ;;  %4994 = vmatprep.subr.bf16.mxu1 %v6549_v0  ;;  %v5022_v4 = vpack.c.bf16 %v1668_v63, %v1667_v62  ;;  %v5046_v5 = vpack.c.bf16 %v1754_v3, %v1753_v2  ;;  %v1927_v62 = vld [vmem:[#allocation16 + $0x60] sm:$0xff]  ;;  %v1928_v63 = vld [vmem:[#allocation16 + $0x68] sm:$0xff] }
 0x3d1   : > { %v5097_v3 = vpack.c.bf16 %v1928_v63, %v1927_v62  ;;  %v2016_v62 = vld [vmem:[#allocation20 + $0x78] sm:$0xff] }
 0x3d3   : > { %4972 = vmatpush3.bf16.msra.mxu0 %v4971_v7  ;;  %4996 = vmatpush3.bf16.msra.mxu1 %v4995_v8  ;;  %v1670_v7 = vld [vmem:[#allocation14 + $0x68] sm:$0xff]  ;;  %v1755_v8 = vld [vmem:[#allocation13 + $0x60] sm:$0xff] }
 0x3d4   : > { %4973 = vmatprep.subr.bf16.mxu0 %v6549_v0  ;;  %4997 = vmatprep.subr.bf16.mxu1 %v6549_v0  ;;  %v5025_v10 = vpack.c.bf16 %v1670_v7, %v1669_v6  ;;  %v5049_v11 = vpack.c.bf16 %v1756_v9, %v1755_v8  ;;  %v1929_v6 = vld [vmem:[#allocation16 + $0x70] sm:$0xff]  ;;  %v1930_v7 = vld [vmem:[#allocation16 + $0x78] sm:$0xff] }
 0x3d5   : > { %v5100_v9 = vpack.c.bf16 %v1930_v7, %v1929_v6  ;;  %v2236_v6 = vld [vmem:[#allocation38 + $0x8] sm:$0xff] }
 0x3d7   : > { %4975 = vmatpush3.bf16.msra.mxu0 %v4974_v13  ;;  %4999 = vmatpush3.bf16.msra.mxu1 %v4998_v14  ;;  %v1672_v13 = vld [vmem:[#allocation14 + $0x78] sm:$0xff]  ;;  %v1757_v14 = vld [vmem:[#allocation13 + $0x70] sm:$0xff] }
 0x3d8   : > { %4976 = vmatprep.subr.bf16.mxu0 %v6549_v0  ;;  %5000 = vmatprep.subr.bf16.mxu1 %v6549_v0  ;;  %v5028_v16 = vpack.c.bf16 %v1672_v13, %v1671_v12  ;;  %v5052_v17 = vpack.c.bf16 %v1758_v15, %v1757_v14  ;;  %v2001_v12 = vld [vmem:[#allocation20] sm:$0xff]  ;;  %v2002_v13 = vld [vmem:[#allocation20 + $0x8] sm:$0xff] }
 0x3d9   : > { %v5103_v15 = vpack.c.bf16 %v2002_v13, %v2001_v12  ;;  %v2237_v13 = vld [vmem:[#allocation38 + $0x10] sm:$0xff] }
 0x3db   : > { %4978 = vmatpush3.bf16.msra.mxu0 %v4977_v19  ;;  %5002 = vmatpush3.bf16.msra.mxu1 %v5001_v20  ;;  %v1830_v19 = vld [vmem:[#allocation17 + $0x8] sm:$0xff]  ;;  %v1915_v20 = vld [vmem:[#allocation16] sm:$0xff] }
 0x3dc   : > { %4979 = vmatprep.subr.bf16.mxu0 %v6549_v0  ;;  %5003 = vmatprep.subr.bf16.mxu1 %v6549_v0  ;;  %v5055_v22 = vpack.c.bf16 %v1830_v19, %v1829_v18  ;;  %v5079_v23 = vpack.c.bf16 %v1916_v21, %v1915_v20  ;;  %v2003_v18 = vld [vmem:[#allocation20 + $0x10] sm:$0xff]  ;;  %v2004_v19 = vld [vmem:[#allocation20 + $0x18] sm:$0xff] }
 0x3df   : > { %4981 = vmatpush3.bf16.msra.mxu0 %v4980_v25  ;;  %5005 = vmatpush3.bf16.msra.mxu1 %v5004_v26  ;;  %v1832_v25 = vld [vmem:[#allocation17 + $0x18] sm:$0xff]  ;;  %v1917_v26 = vld [vmem:[#allocation16 + $0x10] sm:$0xff] }
 0x3e0   : > { %5006 = vmatprep.subr.bf16.mxu0 %v6549_v0  ;;  %5030 = vmatprep.subr.bf16.mxu1 %v6549_v0  ;;  %v5082_v33 = vpack.c.bf16 %v1918_v27, %v1917_v26  ;;  %v2091_v26 = vld [vmem:[#allocation19 + $0x20] sm:$0xff]  ;;  %v2092_v27 = vld [vmem:[#allocation19 + $0x28] sm:$0xff] }
 0x495   : > { %v7399_v37 = vpop.f32.mrb[2].mxu0  ;;  %v1481_v38 = vpop.f32.mrb[2].mxu1 }
 0x496   : > { %v4126_v39 = vpop.f32.mrb[3].mxu0  ;;  %v4161_v40 = vpop.f32.mrb[3].mxu1  ;;  %4195 = vmatmul.mubr.f32.vlgmr.msra.gmra.mrb[4].mxu0 %v1481_v38  ;;  %4230 = vmatmul.mubr.f32.vlgmr.msra.gmra.mrb[4].mxu1 %v1481_v38  ;;  %v1920_v38 = vld [vmem:[#allocation16 + $0x28] sm:$0xff] }
 0x497   : > { %5008 = vmatpush3.bf16.msra.mxu0 %v5007_v31  ;;  %5032 = vmatpush3.bf16.msra.mxu1 %v5031_v32  ;;  %v5058_v32 = vpack.c.bf16 %v1832_v25, %v1831_v24  ;;  %v5061_v39 = vpack.c.bf16 %v1834_v35, %v1833_v34  ;;  %v5085_v40 = vpack.c.bf16 %v1920_v38, %v1919_v36  ;;  %v2094_v34 = vld [vmem:[#allocation19 + $0x38] sm:$0xff]  ;;  %v2007_v35 = vld [vmem:[#allocation20 + $0x30] sm:$0xff] }
 0x498   : > { %5009 = vmatprep.subr.bf16.mxu0 %v6549_v0  ;;  %5033 = vmatprep.subr.bf16.mxu1 %v6549_v0  ;;  %v5106_v25 = vpack.c.bf16 %v2004_v19, %v2003_v18  ;;  %v2008_v36 = vld [vmem:[#allocation20 + $0x38] sm:$0xff]  ;;  %v2411_v18 = vld [vmem:[#allocation35 + $0x20] sm:$0xff]  ;;  %v2412_v19 = vld [vmem:[#allocation35 + $0x28] sm:$0xff] }
 0x499   : > { %4264 = vmatprep.mubr.msk.f32.mxu0 %vm6550_vm0, %v6551_v1  ;;  %4299 = vmatprep.mubr.msk.f32.mxu1 %vm6550_vm0, %v6551_v1 }
 0x49b   : > { %5011 = vmatpush3.bf16.msra.mxu0 %v5010_v41  ;;  %5035 = vmatpush3.bf16.msra.mxu1 %v5034_v42  ;;  %v1835_v41 = vld [vmem:[#allocation17 + $0x30] sm:$0xff]  ;;  %v1836_v42 = vld [vmem:[#allocation17 + $0x38] sm:$0xff] }
 0x49c   : > { %5012 = vmatprep.subr.bf16.mxu0 %v6549_v0  ;;  %5036 = vmatprep.subr.bf16.mxu1 %v6549_v0  ;;  %v5064_v45 = vpack.c.bf16 %v1836_v42, %v1835_v41  ;;  %v2096_v41 = vld [vmem:[#allocation19 + $0x48] sm:$0xff]  ;;  %v2009_v42 = vld [vmem:[#allocation20 + $0x40] sm:$0xff] }
 0x49f   : > { %5014 = vmatpush3.bf16.msra.mxu0 %v5013_v47  ;;  %5038 = vmatpush3.bf16.msra.mxu1 %v5037_v48  ;;  %v1837_v47 = vld [vmem:[#allocation17 + $0x40] sm:$0xff]  ;;  %v1838_v48 = vld [vmem:[#allocation17 + $0x48] sm:$0xff] }
 0x4a0   : > { %5015 = vmatprep.subr.bf16.mxu0 %v6549_v0  ;;  %5039 = vmatprep.subr.bf16.mxu1 %v6549_v0  ;;  %v5067_v51 = vpack.c.bf16 %v1838_v48, %v1837_v47  ;;  %v2098_v47 = vld [vmem:[#allocation19 + $0x58] sm:$0xff]  ;;  %v2011_v48 = vld [vmem:[#allocation20 + $0x50] sm:$0xff] }
 0x4a3   : > { %5017 = vmatpush3.bf16.msra.mxu0 %v5016_v53  ;;  %5041 = vmatpush3.bf16.msra.mxu1 %v5040_v54  ;;  %v1839_v53 = vld [vmem:[#allocation17 + $0x50] sm:$0xff]  ;;  %v1840_v54 = vld [vmem:[#allocation17 + $0x58] sm:$0xff] }
 0x4a4   : > { %5018 = vmatprep.subr.bf16.mxu0 %v6549_v0  ;;  %5042 = vmatprep.subr.bf16.mxu1 %v6549_v0  ;;  %v5070_v57 = vpack.c.bf16 %v1840_v54, %v1839_v53  ;;  %v2100_v53 = vld [vmem:[#allocation19 + $0x68] sm:$0xff]  ;;  %v2013_v54 = vld [vmem:[#allocation20 + $0x60] sm:$0xff] }
 0x4a7   : > { %5020 = vmatpush3.bf16.msra.mxu0 %v5019_v60  ;;  %5044 = vmatpush3.bf16.msra.mxu1 %v5043_v61  ;;  %v1841_v60 = vld [vmem:[#allocation17 + $0x60] sm:$0xff]  ;;  %v1842_v61 = vld [vmem:[#allocation17 + $0x68] sm:$0xff] }
 0x4a8   : > { %5021 = vmatprep.subr.bf16.mxu0 %v6549_v0  ;;  %5045 = vmatprep.subr.bf16.mxu1 %v6549_v0  ;;  %v5073_v2 = vpack.c.bf16 %v1842_v61, %v1841_v60  ;;  %v2102_v60 = vld [vmem:[#allocation19 + $0x78] sm:$0xff]  ;;  %v2015_v61 = vld [vmem:[#allocation20 + $0x70] sm:$0xff] }
 0x4ab   : > { %5023 = vmatpush3.bf16.msra.mxu0 %v5022_v4  ;;  %5047 = vmatpush3.bf16.msra.mxu1 %v5046_v5  ;;  %v1843_v4 = vld [vmem:[#allocation17 + $0x70] sm:$0xff]  ;;  %v1844_v5 = vld [vmem:[#allocation17 + $0x78] sm:$0xff] }
 0x4ac   : > { %5024 = vmatprep.subr.bf16.mxu0 %v6549_v0  ;;  %5048 = vmatprep.subr.bf16.mxu1 %v6549_v0  ;;  %v5076_v8 = vpack.c.bf16 %v1844_v5, %v1843_v4  ;;  %v2408_v4 = vld [vmem:[#allocation35 + $0x8] sm:$0xff]  ;;  %v2235_v5 = vld [vmem:[#allocation38] sm:$0xff] }
 0x4af   : > { %5026 = vmatpush3.bf16.msra.mxu0 %v5025_v10  ;;  %5050 = vmatpush3.bf16.msra.mxu1 %v5049_v11  ;;  %v2087_v10 = vld [vmem:[#allocation19] sm:$0xff]  ;;  %v2088_v11 = vld [vmem:[#allocation19 + $0x8] sm:$0xff] }
 0x4b0   : > { %5027 = vmatprep.subr.bf16.mxu0 %v6549_v0  ;;  %5051 = vmatprep.subr.bf16.mxu1 %v6549_v0  ;;  %v5127_v14 = vpack.c.bf16 %v2088_v11, %v2087_v10  ;;  %v5151_v10 = vpack.c.bf16 %v2236_v6, %v2235_v5  ;;  %v2397_v6 = vld [vmem:[#allocation34 + $0x30] sm:$0xff] }
 0x4b3   : > { %5029 = vmatpush3.bf16.msra.mxu0 %v5028_v16  ;;  %5053 = vmatpush3.bf16.msra.mxu1 %v5052_v17  ;;  %v2089_v16 = vld [vmem:[#allocation19 + $0x10] sm:$0xff]  ;;  %v2090_v17 = vld [vmem:[#allocation19 + $0x18] sm:$0xff] }
 0x4b4   : > { %5054 = vmatprep.subr.bf16.mxu0 %v6549_v0  ;;  %5078 = vmatprep.subr.bf16.mxu1 %v6549_v0  ;;  %v5130_v24 = vpack.c.bf16 %v2090_v17, %v2089_v16 }
 0x569   : > { %v7421_v28 = vpop.f32.mrb[4].mxu0  ;;  %v1653_v29 = vpop.f32.mrb[4].mxu1 }
 0x56a   : > { %v4196_v30 = vpop.f32.mrb[5].mxu0  ;;  %v4231_v31 = vpop.f32.mrb[5].mxu1  ;;  %4265 = vmatmul.mubr.f32.vlgmr.msra.gmra.mrb[6].mxu0 %v1653_v29  ;;  %4300 = vmatmul.mubr.f32.vlgmr.msra.gmra.mrb[6].mxu1 %v1653_v29  ;;  %v2005_v29 = vld [vmem:[#allocation20 + $0x20] sm:$0xff] }
 0x56b   : > { %5056 = vmatpush3.bf16.msra.mxu0 %v5055_v22  ;;  %5080 = vmatpush3.bf16.msra.mxu1 %v5079_v23  ;;  %v2006_v30 = vld [vmem:[#allocation20 + $0x28] sm:$0xff]  ;;  %v5133_v31 = vpack.c.bf16 %v2092_v27, %v2091_v26  ;;  %v2414_v26 = vld [vmem:[#allocation35 + $0x38] sm:$0xff] }
 0x56c   : > { %5057 = vmatprep.subr.bf16.mxu0 %v6549_v0  ;;  %5081 = vmatprep.subr.bf16.mxu1 %v6549_v0 }
 0x56d   : > { %4334 = vmatprep.mubr.msk.f32.mxu0 %vm6550_vm0, %v6551_v1  ;;  %4369 = vmatprep.mubr.msk.f32.mxu1 %vm6550_vm0, %v6551_v1 }
 0x56f   : > { %5059 = vmatpush3.bf16.msra.mxu0 %v5058_v32  ;;  %5083 = vmatpush3.bf16.msra.mxu1 %v5082_v33  ;;  %v5109_v32 = vpack.c.bf16 %v2006_v30, %v2005_v29  ;;  %v2093_v33 = vld [vmem:[#allocation19 + $0x30] sm:$0xff]  ;;  %v2242_v30 = vld [vmem:[#allocation38 + $0x38] sm:$0xff] }
 0x570   : > { %5060 = vmatprep.subr.bf16.mxu0 %v6549_v0  ;;  %5084 = vmatprep.subr.bf16.mxu1 %v6549_v0  ;;  %v5136_v38 = vpack.c.bf16 %v2094_v34, %v2093_v33  ;;  %v2241_v29 = vld [vmem:[#allocation38 + $0x30] sm:$0xff]  ;;  %v2416_v33 = vld [vmem:[#allocation35 + $0x48] sm:$0xff] }
 0x571   : > { %v5160_v34 = vpack.c.bf16 %v2242_v30, %v2241_v29  ;;  %v1137_v29 = vld [vmem:[%s7801_s5] sm:$0xf]  ;;  %v1138_v30 = vld [vmem:[%s7801_s5 + $0x4] sm:$0xf] }
 0x573   : > { %5062 = vmatpush3.bf16.msra.mxu0 %v5061_v39  ;;  %5086 = vmatpush3.bf16.msra.mxu1 %v5085_v40  ;;  %v5112_v39 = vpack.c.bf16 %v2008_v36, %v2007_v35  ;;  %v2095_v40 = vld [vmem:[#allocation19 + $0x40] sm:$0xff]  ;;  %v2244_v36 = vld [vmem:[#allocation38 + $0x48] sm:$0xff] }
 0x574   : > { %5063 = vmatprep.subr.bf16.mxu0 %v6549_v0  ;;  %5087 = vmatprep.subr.bf16.mxu1 %v6549_v0  ;;  %v5139_v44 = vpack.c.bf16 %v2096_v41, %v2095_v40  ;;  %v2243_v35 = vld [vmem:[#allocation38 + $0x40] sm:$0xff]  ;;  %v2418_v40 = vld [vmem:[#allocation35 + $0x58] sm:$0xff] }
 0x575   : > { %v5163_v41 = vpack.c.bf16 %v2244_v36, %v2243_v35 }
 0x577   : > { %5065 = vmatpush3.bf16.msra.mxu0 %v5064_v45  ;;  %5089 = vmatpush3.bf16.msra.mxu1 %v5088_v46  ;;  %v5115_v45 = vpack.c.bf16 %v2010_v43, %v2009_v42  ;;  %v2097_v46 = vld [vmem:[#allocation19 + $0x50] sm:$0xff]  ;;  %v2246_v43 = vld [vmem:[#allocation38 + $0x58] sm:$0xff] }
 0x578   : > { %5066 = vmatprep.subr.bf16.mxu0 %v6549_v0  ;;  %5090 = vmatprep.subr.bf16.mxu1 %v6549_v0  ;;  %v5142_v50 = vpack.c.bf16 %v2098_v47, %v2097_v46  ;;  %v2245_v42 = vld [vmem:[#allocation38 + $0x50] sm:$0xff]  ;;  %v2420_v46 = vld [vmem:[#allocation35 + $0x68] sm:$0xff] }
 0x579   : > { %v5166_v47 = vpack.c.bf16 %v2246_v43, %v2245_v42  ;;  %v1140_v43 = vld [vmem:[%s7801_s5 + $0xc] sm:$0xf] }
 0x57b   : > { %5068 = vmatpush3.bf16.msra.mxu0 %v5067_v51  ;;  %5092 = vmatpush3.bf16.msra.mxu1 %v5091_v52  ;;  %v5118_v51 = vpack.c.bf16 %v2012_v49, %v2011_v48  ;;  %v2099_v52 = vld [vmem:[#allocation19 + $0x60] sm:$0xff]  ;;  %v2421_v49 = vld [vmem:[#allocation35 + $0x70] sm:$0xff] }
 0x57c   : > { %5069 = vmatprep.subr.bf16.mxu0 %v6549_v0  ;;  %5093 = vmatprep.subr.bf16.mxu1 %v6549_v0  ;;  %v5145_v56 = vpack.c.bf16 %v2100_v53, %v2099_v52  ;;  %v2247_v52 = vld [vmem:[#allocation38 + $0x60] sm:$0xff]  ;;  %v2248_v53 = vld [vmem:[#allocation38 + $0x68] sm:$0xff] }
 0x57f   : > { %5071 = vmatpush3.bf16.msra.mxu0 %v5070_v57  ;;  %5095 = vmatpush3.bf16.msra.mxu1 %v5094_v59  ;;  %v5121_v57 = vpack.c.bf16 %v2014_v55, %v2013_v54  ;;  %v2101_v59 = vld [vmem:[#allocation19 + $0x70] sm:$0xff]  ;;  %v5169_v54 = vpack.c.bf16 %v2248_v53, %v2247_v52  ;;  %v2222_v53 = vld [vmem:[#allocation37 + $0x18] sm:$0xff] }
 0x580   : > { %5072 = vmatprep.subr.bf16.mxu0 %v6549_v0  ;;  %5096 = vmatprep.subr.bf16.mxu1 %v6549_v0  ;;  %v5148_v63 = vpack.c.bf16 %v2102_v60, %v2101_v59  ;;  %v2249_v55 = vld [vmem:[#allocation38 + $0x70] sm:$0xff]  ;;  %v2391_v59 = vld [vmem:[#allocation34] sm:$0xff]  ;;  %v2392_v60 = vld [vmem:[#allocation34 + $0x8] sm:$0xff] }
 0x581   : > { %v2221_v52 = vld [vmem:[#allocation37 + $0x10] sm:$0xff] }
 0x583   : > { %5074 = vmatpush3.bf16.msra.mxu0 %v5073_v2  ;;  %5098 = vmatpush3.bf16.msra.mxu1 %v5097_v3  ;;  %v5124_v2 = vpack.c.bf16 %v2016_v62, %v2015_v61  ;;  %v2407_v3 = vld [vmem:[#allocation35] sm:$0xff]  ;;  %v2393_v61 = vld [vmem:[#allocation34 + $0x10] sm:$0xff]  ;;  %v5223_v62 = vpack.c.bf16 %v2392_v60, %v2391_v59  ;;  %v2226_v60 = vld [vmem:[#allocation37 + $0x38] sm:$0xff] }
 0x584   : > { %5075 = vmatprep.subr.bf16.mxu0 %v6549_v0  ;;  %5099 = vmatprep.subr.bf16.mxu1 %v6549_v0  ;;  %v5199_v7 = vpack.c.bf16 %v2408_v4, %v2407_v3  ;;  %v2395_v3 = vld [vmem:[#allocation34 + $0x20] sm:$0xff]  ;;  %v2396_v4 = vld [vmem:[#allocation34 + $0x28] sm:$0xff]  ;;  %v2225_v59 = vld [vmem:[#allocation37 + $0x30] sm:$0xff] }
 0x585   : > { %v5229_v5 = vpack.c.bf16 %v2396_v4, %v2395_v3 }
 0x587   : > { %5077 = vmatpush3.bf16.msra.mxu0 %v5076_v8  ;;  %5101 = vmatpush3.bf16.msra.mxu1 %v5100_v9  ;;  %v2409_v8 = vld [vmem:[#allocation35 + $0x10] sm:$0xff]  ;;  %v2410_v9 = vld [vmem:[#allocation35 + $0x18] sm:$0xff] }
 0x588   : > { %5126 = vmatprep.subr.bf16.mxu1 %v6549_v0  ;;  %5102 = vmatprep.subr.bf16.mxu0 %v6549_v0  ;;  %v5202_v17 = vpack.c.bf16 %v2410_v9, %v2409_v8  ;;  %v2399_v9 = vld [vmem:[#allocation34 + $0x40] sm:$0xff] }
 0x63d   : > { %v7443_v20 = vpop.f32.mrb[6].mxu0  ;;  %v1825_v21 = vpop.f32.mrb[6].mxu1 }
 0x63e   : > { %v4266_v22 = vpop.f32.mrb[7].mxu0  ;;  %v4301_v23 = vpop.f32.mrb[7].mxu1  ;;  %4335 = vmatmul.mubr.f32.vlgmr.msra.gmra.mrb[8].mxu0 %v1825_v21  ;;  %4370 = vmatmul.mubr.f32.vlgmr.msra.gmra.mrb[8].mxu1 %v1825_v21 }
 0x63f   : > { %5128 = vmatpush3.bf16.msra.mxu1 %v5127_v14  ;;  %5104 = vmatpush3.bf16.msra.mxu0 %v5103_v15  ;;  %v2238_v14 = vld [vmem:[#allocation38 + $0x18] sm:$0xff]  ;;  %v2239_v22 = vld [vmem:[#allocation38 + $0x20] sm:$0xff]  ;;  %v2240_v23 = vld [vmem:[#allocation38 + $0x28] sm:$0xff] }
 0x640   : > { %5129 = vmatprep.subr.bf16.mxu1 %v6549_v0  ;;  %5105 = vmatprep.subr.bf16.mxu0 %v6549_v0  ;;  %v5154_v21 = vpack.c.bf16 %v2238_v14, %v2237_v13  ;;  %v5157_v27 = vpack.c.bf16 %v2240_v23, %v2239_v22  ;;  %v2402_v13 = vld [vmem:[#allocation34 + $0x58] sm:$0xff]  ;;  %v2173_v22 = vlaneseq }
 0x641   : > { %4404 = vmatprep.mubr.msk.f32.mxu0 %vm6550_vm0, %v6551_v1  ;;  %4439 = vmatprep.mubr.msk.f32.mxu1 %vm6550_vm0, %v6551_v1 }
 0x642   : > { %v7498_v23 = vshrl.u32 %v2173_v22, 7  ;;  %v2579_v22 = vld [vmem:[#allocation32] sm:$0xff] }
 0x643   : > { %5131 = vmatpush3.bf16.msra.mxu1 %v5130_v24  ;;  %5107 = vmatpush3.bf16.msra.mxu0 %v5106_v25  ;;  %v5205_v24 = vpack.c.bf16 %v2412_v19, %v2411_v18  ;;  %v2413_v25 = vld [vmem:[#allocation35 + $0x30] sm:$0xff]  ;;  %v2406_v19 = vld [vmem:[#allocation34 + $0x78] sm:$0xff] }
 0x644   : > { %5132 = vmatprep.subr.bf16.mxu1 %v6549_v0  ;;  %5108 = vmatprep.subr.bf16.mxu0 %v6549_v0  ;;  %v2405_v18 = vld [vmem:[#allocation34 + $0x70] sm:$0xff] }
 0x647   : > { %5134 = vmatpush3.bf16.msra.mxu1 %v5133_v31  ;;  %5110 = vmatpush3.bf16.msra.mxu0 %v5109_v32  ;;  %v5208_v31 = vpack.c.bf16 %v2414_v26, %v2413_v25  ;;  %v2415_v32 = vld [vmem:[#allocation35 + $0x40] sm:$0xff]  ;;  %v2180_v25 = vsub.s32 1, %v7498_v23  ;;  %v2186_v26 = vsub.s32 2, %v7498_v23 }
 0x648   : > { %5135 = vmatprep.subr.bf16.mxu1 %v6549_v0  ;;  %5111 = vmatprep.subr.bf16.mxu0 %v6549_v0 }
 0x64b   : > { %5137 = vmatpush3.bf16.msra.mxu1 %v5136_v38  ;;  %5113 = vmatpush3.bf16.msra.mxu0 %v5112_v39  ;;  %v5211_v38 = vpack.c.bf16 %v2416_v33, %v2415_v32  ;;  %v2417_v39 = vld [vmem:[#allocation35 + $0x50] sm:$0xff] }
 0x64c   : > { %5138 = vmatprep.subr.bf16.mxu1 %v6549_v0  ;;  %5114 = vmatprep.subr.bf16.mxu0 %v6549_v0 }
 0x64f   : > { %5140 = vmatpush3.bf16.msra.mxu1 %v5139_v44  ;;  %5116 = vmatpush3.bf16.msra.mxu0 %v5115_v45  ;;  %v5214_v44 = vpack.c.bf16 %v2418_v40, %v2417_v39  ;;  %v2419_v45 = vld [vmem:[#allocation35 + $0x60] sm:$0xff] }
 0x650   : > { %5141 = vmatprep.subr.bf16.mxu1 %v6549_v0  ;;  %5117 = vmatprep.subr.bf16.mxu0 %v6549_v0  ;;  %v5217_v48 = vpack.c.bf16 %v2420_v46, %v2419_v45  ;;  %v1139_v39 = vld [vmem:[%s7801_s5 + $0x8] sm:$0xf] }
 0x651   : > { %v2219_v46 = vld [vmem:[#allocation37] sm:$0xff] }
 0x653   : > { %5143 = vmatpush3.bf16.msra.mxu1 %v5142_v50  ;;  %5119 = vmatpush3.bf16.msra.mxu0 %v5118_v51  ;;  %v2422_v50 = vld [vmem:[#allocation35 + $0x78] sm:$0xff] }
 0x654   : > { %5144 = vmatprep.subr.bf16.mxu1 %v6549_v0  ;;  %5120 = vmatprep.subr.bf16.mxu0 %v6549_v0  ;;  %v5220_v51 = vpack.c.bf16 %v2422_v50, %v2421_v49 }
 0x657   : > { %5146 = vmatpush3.bf16.msra.mxu1 %v5145_v56  ;;  %5122 = vmatpush3.bf16.msra.mxu0 %v5121_v57  ;;  %v2250_v56 = vld [vmem:[#allocation38 + $0x78] sm:$0xff] }
 0x658   : > { %5147 = vmatprep.subr.bf16.mxu1 %v6549_v0  ;;  %5123 = vmatprep.subr.bf16.mxu0 %v6549_v0  ;;  %v5172_v57 = vpack.c.bf16 %v2250_v56, %v2249_v55  ;;  %v2223_v55 = vld [vmem:[#allocation37 + $0x20] sm:$0xff]  ;;  %v2224_v56 = vld [vmem:[#allocation37 + $0x28] sm:$0xff] }
 0x65b   : > { %5149 = vmatpush3.bf16.msra.mxu1 %v5148_v63  ;;  %5125 = vmatpush3.bf16.msra.mxu0 %v5124_v2  ;;  %v2394_v63 = vld [vmem:[#allocation34 + $0x18] sm:$0xff] }
 0x65c   : > { %5198 = vmatprep.subr.bf16.mxu1 %v6549_v0  ;;  %5150 = vmatprep.subr.bf16.mxu0 %v6549_v0  ;;  %v5226_v2 = vpack.c.bf16 %v2394_v63, %v2393_v61  ;;  %v5184_v61 = vpack.c.bf16 %v2226_v60, %v2225_v59  ;;  %v2228_v63 = vld [vmem:[#allocation37 + $0x48] sm:$0xff]  ;;  %v2569_v60 = vld [vmem:[#allocation31 + $0x30] sm:$0xff] }
 0x711   : > { %v7465_v11 = vpop.f32.mrb[8].mxu0  ;;  %v1997_v12 = vpop.f32.mrb[8].mxu1 }
 0x712   : > { %v4336_v15 = vpop.f32.mrb[9].mxu0  ;;  %v4371_v16 = vpop.f32.mrb[9].mxu1  ;;  %4405 = vmatmul.mubr.f32.vlgmr.msra.gmra.mrb[10].mxu0 %v1997_v12  ;;  %4440 = vmatmul.mubr.f32.vlgmr.msra.gmra.mrb[10].mxu1 %v1997_v12  ;;  %v2401_v12 = vld [vmem:[#allocation34 + $0x50] sm:$0xff] }
 0x713   : > { %5200 = vmatpush3.bf16.msra.mxu1 %v5199_v7  ;;  %4544 = vmatprep.mubr.msk.f32.mxu1 %vm6550_vm0, %v6551_v1  ;;  %v2398_v7 = vld [vmem:[#allocation34 + $0x38] sm:$0xff]  ;;  %v5238_v14 = vpack.c.bf16 %v2402_v13, %v2401_v12  ;;  %v2403_v15 = vld [vmem:[#allocation34 + $0x60] sm:$0xff]  ;;  %v2404_v16 = vld [vmem:[#allocation34 + $0x68] sm:$0xff] }
 0x714   : > { %5201 = vmatprep.subr.bf16.mxu1 %v6549_v0  ;;  %5152 = vmatpush3.bf16.msra.mxu0 %v5151_v10  ;;  %v5232_v8 = vpack.c.bf16 %v2398_v7, %v2397_v6  ;;  %v2400_v10 = vld [vmem:[#allocation34 + $0x48] sm:$0xff]  ;;  %v2230_v6 = vld [vmem:[#allocation37 + $0x58] sm:$0xff] }
 0x715   : > { %5153 = vmatprep.subr.bf16.mxu0 %v6549_v0  ;;  %4474 = vmatprep.mubr.msk.f32.mxu0 %vm6550_vm0, %v6551_v1 }
 0x717   : > { %5203 = vmatpush3.bf16.msra.mxu1 %v5202_v17  ;;  %v5241_v17 = vpack.c.bf16 %v2404_v16, %v2403_v15  ;;  %v2233_v15 = vld [vmem:[#allocation37 + $0x70] sm:$0xff]  ;;  %v2234_v16 = vld [vmem:[#allocation37 + $0x78] sm:$0xff] }
 0x718   : > { %5204 = vmatprep.subr.bf16.mxu1 %v6549_v0  ;;  %5155 = vmatpush3.bf16.msra.mxu0 %v5154_v21  ;;  %v5244_v21 = vpack.c.bf16 %v2406_v19, %v2405_v18  ;;  %v5196_v19 = vpack.c.bf16 %v2234_v16, %v2233_v15  ;;  %v2753_v15 = vld [vmem:[#allocation29 + $0x10] sm:$0xff]  ;;  %v2754_v16 = vld [vmem:[#allocation29 + $0x18] sm:$0xff] }
 0x719   : > { %5156 = vmatprep.subr.bf16.mxu0 %v6549_v0 }
 0x71b   : > { %5206 = vmatpush3.bf16.msra.mxu1 %v5205_v24  ;;  %v2175_v24 = vsub.s32 0, %v7498_v23 }
 0x71c   : > { %5207 = vmatprep.subr.bf16.mxu1 %v6549_v0  ;;  %5158 = vmatpush3.bf16.msra.mxu0 %v5157_v27  ;;  %v2192_v27 = vsub.s32 3, %v7498_v23  ;;  %v2583_v23 = vld [vmem:[#allocation32 + $0x20] sm:$0xff] }
 0x71d   : > { %5159 = vmatprep.subr.bf16.mxu0 %v6549_v0 }
 0x71f   : > { %5209 = vmatpush3.bf16.msra.mxu1 %v5208_v31 }
 0x720   : > { %5210 = vmatprep.subr.bf16.mxu1 %v6549_v0  ;;  %5161 = vmatpush3.bf16.msra.mxu0 %v5160_v34 }
 0x721   : > { %5162 = vmatprep.subr.bf16.mxu0 %v6549_v0 }
 0x723   : > { %5212 = vmatpush3.bf16.msra.mxu1 %v5211_v38 }
 0x724   : > { %5213 = vmatprep.subr.bf16.mxu1 %v6549_v0  ;;  %5164 = vmatpush3.bf16.msra.mxu0 %v5163_v41 }
 0x725   : > { %5165 = vmatprep.subr.bf16.mxu0 %v6549_v0 }
 0x727   : > { %5215 = vmatpush3.bf16.msra.mxu1 %v5214_v44 }
 0x728   : > { %5216 = vmatprep.subr.bf16.mxu1 %v6549_v0  ;;  %5167 = vmatpush3.bf16.msra.mxu0 %v5166_v47  ;;  %v2220_v47 = vld [vmem:[#allocation37 + $0x8] sm:$0xff] }
 0x729   : > { %5168 = vmatprep.subr.bf16.mxu0 %v6549_v0  ;;  %v5175_v50 = vpack.c.bf16 %v2220_v47, %v2219_v46  ;;  %v2593_v47 = vld [vmem:[#allocation32 + $0x70] sm:$0xff] }
 0x72b   : > { %5218 = vmatpush3.bf16.msra.mxu1 %v5217_v48 }
 0x72c   : > { %5219 = vmatprep.subr.bf16.mxu1 %v6549_v0  ;;  %5170 = vmatpush3.bf16.msra.mxu0 %v5169_v54  ;;  %v5178_v54 = vpack.c.bf16 %v2222_v53, %v2221_v52  ;;  %v2565_v52 = vld [vmem:[#allocation31 + $0x10] sm:$0xff] }
 0x72d   : > { %5171 = vmatprep.subr.bf16.mxu0 %v6549_v0 }
 0x72f   : > { %5221 = vmatpush3.bf16.msra.mxu1 %v5220_v51 }
 0x730   : > { %5222 = vmatprep.subr.bf16.mxu1 %v6549_v0  ;;  %5173 = vmatpush3.bf16.msra.mxu0 %v5172_v57  ;;  %v5181_v57 = vpack.c.bf16 %v2224_v56, %v2223_v55  ;;  %v2567_v56 = vld [vmem:[#allocation31 + $0x20] sm:$0xff] }
 0x731   : > { %5174 = vmatprep.subr.bf16.mxu0 %v6549_v0 }
 0x732   : > { %4545 = vmatmul.mubr.f32.vlgmr.msra.gmra.mrb[12].mxu1 %v7465_v11  ;;  %v5235_v11 = vpack.c.bf16 %v2400_v10, %v2399_v9  ;;  %v2231_v10 = vld [vmem:[#allocation37 + $0x60] sm:$0xff] }
 0x733   : > { %4579 = vmatprep.mubr.msk.f32.mxu1 %vm6550_vm0, %v6551_v1  ;;  %5224 = vmatpush3.bf16.msra.mxu1 %v5223_v62  ;;  %v2227_v62 = vld [vmem:[#allocation37 + $0x40] sm:$0xff] }
 0x734   : > { %5225 = vmatprep.subr.bf16.mxu1 %v6549_v0 }
 0x737   : > { %5227 = vmatpush3.bf16.msra.mxu1 %v5226_v2  ;;  %v5187_v2 = vpack.c.bf16 %v2228_v63, %v2227_v62  ;;  %v2571_v62 = vld [vmem:[#allocation31 + $0x40] sm:$0xff]  ;;  %v2572_v63 = vld [vmem:[#allocation31 + $0x48] sm:$0xff] }
 0x738   : > { %5228 = vmatprep.subr.bf16.mxu1 %v6549_v0 }
 0x73b   : > { %5230 = vmatpush3.bf16.msra.mxu1 %v5229_v5  ;;  %v2229_v5 = vld [vmem:[#allocation37 + $0x50] sm:$0xff] }
 0x73c   : > { %5231 = vmatprep.subr.bf16.mxu1 %v6549_v0  ;;  %v5190_v7 = vpack.c.bf16 %v2230_v6, %v2229_v5  ;;  %v2575_v6 = vld [vmem:[#allocation31 + $0x60] sm:$0xff] }
 0x73f   : > { %5233 = vmatpush3.bf16.msra.mxu1 %v5232_v8 }
 0x740   : > { %5234 = vmatprep.subr.bf16.mxu1 %v6549_v0 }
 0x743   : > { %5236 = vmatpush3.bf16.msra.mxu1 %v5235_v11  ;;  %v2232_v11 = vld [vmem:[#allocation37 + $0x68] sm:$0xff] }
 0x744   : > { %5237 = vmatprep.subr.bf16.mxu1 %v6549_v0  ;;  %v5193_v13 = vpack.c.bf16 %v2232_v11, %v2231_v10  ;;  %v2578_v10 = vld [vmem:[#allocation31 + $0x78] sm:$0xff] }
 0x747   : > { %5239 = vmatpush3.bf16.msra.mxu1 %v5238_v14 }
 0x748   : > { %5240 = vmatprep.subr.bf16.mxu1 %v6549_v0 }
 0x74b   : > { %5242 = vmatpush3.bf16.msra.mxu1 %v5241_v17 }
 0x74c   : > { %5243 = vmatprep.subr.bf16.mxu1 %v6549_v0 }
 0x74f   : > { %5245 = vmatpush3.bf16.msra.mxu1 %v5244_v21 }
 0x750   : > { %5294 = vmatprep.subr.bf16.mxu1 %v6549_v0 }
 0x7e5   : > { %v2083_v31 = vpop.f32.mrb[10].mxu0  ;;  %v2169_v32 = vpop.f32.mrb[10].mxu1 }
 0x7e6   : > { %v2199_v33 = vrot.slane %v2083_v31, %v2175_v24  ;;  %v2204_v34 = vrot.slane %v2083_v31, %v2180_v25  ;;  %v2210_v35 = vrot.slane %v2083_v31, %v2186_v26  ;;  %v4406_v36 = vpop.f32.mrb[11].mxu0  ;;  %v4441_v38 = vpop.f32.mrb[11].mxu1  ;;  %v2216_v42 = vrot.slane %v2083_v31, %v2192_v27  ;;  %v2582_v31 = vld [vmem:[#allocation32 + $0x18] sm:$0xff] }
 0x7e7   : > { %v2176_v3 = vrot.slane %v2169_v32, %v2175_v24  ;;  %v2181_v4 = vrot.slane %v2169_v32, %v2180_v25  ;;  %v2187_v12 = vrot.slane %v2169_v32, %v2186_v26  ;;  %v2193_v18 = vrot.slane %v2169_v32, %v2192_v27  ;;  %v2580_v24 = vld [vmem:[#allocation32 + $0x8] sm:$0xff]  ;;  %v2587_v38 = vld [vmem:[#allocation32 + $0x40] sm:$0xff] }
 0x7e8   : > { %v2200_v40 = vmul.f32 %v2199_v33, %v1137_v29  ;;  %v2205_v41 = vmul.f32 %v2204_v34, %v1138_v30  ;;  %v2211_v45 = vmul.f32 %v2210_v35, %v1139_v39  ;;  %v2217_v48 = vmul.f32 %v2216_v42, %v1140_v43  ;;  %v2584_v27 = vld [vmem:[#allocation32 + $0x28] sm:$0xff]  ;;  %v2585_v34 = vld [vmem:[#allocation32 + $0x30] sm:$0xff]  ;;  %v2586_v35 = vld [vmem:[#allocation32 + $0x38] sm:$0xff] }
 0x7e9   : > { %v2177_v8 = vmul.f32 %v2176_v3, %v1137_v29  ;;  %v2182_v9 = vmul.f32 %v2181_v4, %v1138_v30  ;;  %v2188_v17 = vmul.f32 %v2187_v12, %v1139_v39  ;;  %v2194_v25 = vmul.f32 %v2193_v18, %v1140_v43  ;;  %v2581_v30 = vld [vmem:[#allocation32 + $0x10] sm:$0xff]  ;;  %v2588_v39 = vld [vmem:[#allocation32 + $0x48] sm:$0xff]  ;;  %v2590_v42 = vld [vmem:[#allocation32 + $0x58] sm:$0xff] }
 0x7ea   : > { %v2206_v44 = vadd.f32 %v2205_v41, %v2200_v40  ;;  %v5247_v26 = vpack.c.bf16 %v2580_v24, %v2579_v22  ;;  %v5250_v33 = vpack.c.bf16 %v2582_v31, %v2581_v30  ;;  %v5253_v32 = vpack.c.bf16 %v2584_v27, %v2583_v23  ;;  %v2589_v41 = vld [vmem:[#allocation32 + $0x50] sm:$0xff]  ;;  %v2574_v4 = vld [vmem:[#allocation31 + $0x58] sm:$0xff]  ;;  %v2751_v12 = vld [vmem:[#allocation29] sm:$0xff] }
 0x7eb   : > { %v2183_v14 = vadd.f32 %v2182_v9, %v2177_v8  ;;  %v5256_v36 = vpack.c.bf16 %v2586_v35, %v2585_v34  ;;  %v5259_v40 = vpack.c.bf16 %v2588_v39, %v2587_v38  ;;  %v5262_v43 = vpack.c.bf16 %v2590_v42, %v2589_v41  ;;  %v2573_v3 = vld [vmem:[#allocation31 + $0x50] sm:$0xff]  ;;  %v2756_v22 = vld [vmem:[#allocation29 + $0x28] sm:$0xff]  ;;  %v2759_v30 = vld [vmem:[#allocation29 + $0x40] sm:$0xff] }
 0x7ec   : > { %v2212_v49 = vadd.f32 %v2211_v45, %v2206_v44  ;;  %v2591_v44 = vld [vmem:[#allocation32 + $0x60] sm:$0xff]  ;;  %v2592_v45 = vld [vmem:[#allocation32 + $0x68] sm:$0xff]  ;;  %v5286_v5 = vpack.c.bf16 %v2574_v4, %v2573_v3  ;;  %v2577_v9 = vld [vmem:[#allocation31 + $0x70] sm:$0xff] }
 0x7ed   : > { %v2189_v21 = vadd.f32 %v2188_v17, %v2183_v14  ;;  %v5265_v46 = vpack.c.bf16 %v2592_v45, %v2591_v44  ;;  %v5292_v11 = vpack.c.bf16 %v2578_v10, %v2577_v9  ;;  %v2760_v31 = vld [vmem:[#allocation29 + $0x48] sm:$0xff]  ;;  %v2761_v23 = vld [vmem:[#allocation29 + $0x50] sm:$0xff]  ;;  %v2762_v27 = vld [vmem:[#allocation29 + $0x58] sm:$0xff] }
 0x7ee   : > { %v2218_v51 = vadd.f32 %v2217_v48, %v2212_v49  ;;  %v2594_v48 = vld [vmem:[#allocation32 + $0x78] sm:$0xff]  ;;  %v2763_v34 = vld [vmem:[#allocation29 + $0x60] sm:$0xff]  ;;  %v2764_v35 = vld [vmem:[#allocation29 + $0x68] sm:$0xff] }
 0x7ef   : > { %v2195_v29 = vadd.f32 %v2194_v25, %v2189_v21  ;;  %v5268_v49 = vpack.c.bf16 %v2594_v48, %v2593_v47  ;;  %v2755_v21 = vld [vmem:[#allocation29 + $0x20] sm:$0xff]  ;;  %v2757_v25 = vld [vmem:[#allocation29 + $0x30] sm:$0xff]  ;;  %v2766_v39 = vld [vmem:[#allocation29 + $0x78] sm:$0xff] }
 0x7f0   : > { %4475 = vmatmul.mubr.f32.vlgmr.msra.gmra.mrb[12].mxu0 %v2218_v51  ;;  %v2564_v51 = vld [vmem:[#allocation31 + $0x8] sm:$0xff]  ;;  %v5301_v24 = vpack.c.bf16 %v2756_v22, %v2755_v21  ;;  %v2765_v38 = vld [vmem:[#allocation29 + $0x70] sm:$0xff]  ;;  %v2735_v41 = vld [vmem:[#allocation28] sm:$0xff] }
 0x7f1   : > { %5176 = vmatpush3.bf16.msra.mxu0 %v5175_v50  ;;  %4509 = vmatprep.mubr.msk.f32.mxu0 %vm6550_vm0, %v6551_v1  ;;  %v2563_v50 = vld [vmem:[#allocation31] sm:$0xff]  ;;  %v2736_v42 = vld [vmem:[#allocation28 + $0x8] sm:$0xff]  ;;  %v2738_v45 = vld [vmem:[#allocation28 + $0x18] sm:$0xff] }
 0x7f2   : > { %5177 = vmatprep.subr.bf16.mxu0 %v6549_v0  ;;  %v5271_v53 = vpack.c.bf16 %v2564_v51, %v2563_v50  ;;  %v5319_v44 = vpack.c.bf16 %v2736_v42, %v2735_v41  ;;  %v2739_v47 = vld [vmem:[#allocation28 + $0x20] sm:$0xff]  ;;  %v2740_v48 = vld [vmem:[#allocation28 + $0x28] sm:$0xff]  ;;  %v2741_v50 = vld [vmem:[#allocation28 + $0x30] sm:$0xff] }
 0x7f3   : > { %v2924_v3 = vld [vmem:[#allocation26 + $0x8] sm:$0xff]  ;;  %v2927_v10 = vld [vmem:[#allocation26 + $0x20] sm:$0xff]  ;;  %v2934_v21 = vld [vmem:[#allocation26 + $0x58] sm:$0xff] }
 0x7f4   : > { %v2915_v42 = vld [vmem:[#allocation25 + $0x40] sm:$0xff] }
 0x7f5   : > { %5179 = vmatpush3.bf16.msra.mxu0 %v5178_v54  ;;  %v2566_v54 = vld [vmem:[#allocation31 + $0x18] sm:$0xff] }
 0x7f6   : > { %5180 = vmatprep.subr.bf16.mxu0 %v6549_v0  ;;  %v5274_v55 = vpack.c.bf16 %v2566_v54, %v2565_v52  ;;  %v2743_v52 = vld [vmem:[#allocation28 + $0x40] sm:$0xff] }
 0x7f9   : > { %5182 = vmatpush3.bf16.msra.mxu0 %v5181_v57  ;;  %v2568_v57 = vld [vmem:[#allocation31 + $0x28] sm:$0xff] }
 0x7fa   : > { %5183 = vmatprep.subr.bf16.mxu0 %v6549_v0  ;;  %v5277_v59 = vpack.c.bf16 %v2568_v57, %v2567_v56  ;;  %v2746_v56 = vld [vmem:[#allocation28 + $0x58] sm:$0xff] }
 0x7fd   : > { %5185 = vmatpush3.bf16.msra.mxu0 %v5184_v61 }
 0x7fe   : > { %5186 = vmatprep.subr.bf16.mxu0 %v6549_v0 }
 0x801   : > { %5188 = vmatpush3.bf16.msra.mxu0 %v5187_v2  ;;  %v5283_v2 = vpack.c.bf16 %v2572_v63, %v2571_v62  ;;  %v2750_v62 = vld [vmem:[#allocation28 + $0x78] sm:$0xff] }
 0x802   : > { %5189 = vmatprep.subr.bf16.mxu0 %v6549_v0 }
 0x805   : > { %5191 = vmatpush3.bf16.msra.mxu0 %v5190_v7  ;;  %v2576_v7 = vld [vmem:[#allocation31 + $0x68] sm:$0xff] }
 0x806   : > { %5192 = vmatprep.subr.bf16.mxu0 %v6549_v0  ;;  %v5289_v8 = vpack.c.bf16 %v2576_v7, %v2575_v6  ;;  %v2926_v6 = vld [vmem:[#allocation26 + $0x18] sm:$0xff] }
 0x809   : > { %5194 = vmatpush3.bf16.msra.mxu0 %v5193_v13  ;;  %v2752_v13 = vld [vmem:[#allocation29 + $0x8] sm:$0xff] }
 0x80a   : > { %5195 = vmatprep.subr.bf16.mxu0 %v6549_v0  ;;  %v5295_v14 = vpack.c.bf16 %v2752_v13, %v2751_v12  ;;  %v2929_v13 = vld [vmem:[#allocation26 + $0x30] sm:$0xff] }
 0x80d   : > { %5197 = vmatpush3.bf16.msra.mxu0 %v5196_v19  ;;  %v5298_v19 = vpack.c.bf16 %v2754_v16, %v2753_v15  ;;  %v2931_v16 = vld [vmem:[#allocation26 + $0x40] sm:$0xff] }
 0x80e   : > { %5246 = vmatprep.subr.bf16.mxu0 %v6549_v0 }
 0x810   : > { %4510 = vmatmul.mubr.f32.vlgmr.msra.gmra.mrb[12].mxu0 %v2195_v29 }
 0x811   : > { %5248 = vmatpush3.bf16.msra.mxu0 %v5247_v26  ;;  %4614 = vmatprep.mubr.msk.f32.mxu0 %vm6550_vm0, %v6551_v1  ;;  %v2758_v26 = vld [vmem:[#allocation29 + $0x38] sm:$0xff] }
 0x812   : > { %5249 = vmatprep.subr.bf16.mxu0 %v6549_v0  ;;  %v5304_v29 = vpack.c.bf16 %v2758_v26, %v2757_v25  ;;  %v2936_v25 = vld [vmem:[#allocation26 + $0x68] sm:$0xff] }
 0x815   : > { %5251 = vmatpush3.bf16.msra.mxu0 %v5250_v33  ;;  %v5307_v33 = vpack.c.bf16 %v2760_v31, %v2759_v30  ;;  %v2938_v30 = vld [vmem:[#allocation26 + $0x78] sm:$0xff] }
 0x816   : > { %5252 = vmatprep.subr.bf16.mxu0 %v6549_v0 }
 0x819   : > { %5254 = vmatpush3.bf16.msra.mxu0 %v5253_v32  ;;  %v5310_v32 = vpack.c.bf16 %v2762_v27, %v2761_v23  ;;  %v2908_v23 = vld [vmem:[#allocation25 + $0x8] sm:$0xff]  ;;  %v2909_v27 = vld [vmem:[#allocation25 + $0x10] sm:$0xff] }
 0x81a   : > { %5255 = vmatprep.subr.bf16.mxu0 %v6549_v0 }
 0x81d   : > { %5257 = vmatpush3.bf16.msra.mxu0 %v5256_v36  ;;  %v5313_v36 = vpack.c.bf16 %v2764_v35, %v2763_v34  ;;  %v2910_v34 = vld [vmem:[#allocation25 + $0x18] sm:$0xff] }
 0x81e   : > { %5258 = vmatprep.subr.bf16.mxu0 %v6549_v0  ;;  %v5370_v35 = vpack.c.bf16 %v2910_v34, %v2909_v27  ;;  %v3089_v27 = vld [vmem:[#allocation22 + $0x50] sm:$0xff] }
 0x821   : > { %5260 = vmatpush3.bf16.msra.mxu0 %v5259_v40  ;;  %v5316_v40 = vpack.c.bf16 %v2766_v39, %v2765_v38  ;;  %v2912_v38 = vld [vmem:[#allocation25 + $0x28] sm:$0xff] }
 0x822   : > { %5261 = vmatprep.subr.bf16.mxu0 %v6549_v0 }
 0x825   : > { %5263 = vmatpush3.bf16.msra.mxu0 %v5262_v43  ;;  %v2737_v43 = vld [vmem:[#allocation28 + $0x10] sm:$0xff] }
 0x826   : > { %5264 = vmatprep.subr.bf16.mxu0 %v6549_v0 }
 0x829   : > { %5266 = vmatpush3.bf16.msra.mxu0 %v5265_v46  ;;  %v5322_v46 = vpack.c.bf16 %v2738_v45, %v2737_v43  ;;  %v2916_v43 = vld [vmem:[#allocation25 + $0x48] sm:$0xff]  ;;  %v2917_v45 = vld [vmem:[#allocation25 + $0x50] sm:$0xff] }
 0x82a   : > { %5267 = vmatprep.subr.bf16.mxu0 %v6549_v0 }
 0x82d   : > { %5269 = vmatpush3.bf16.msra.mxu0 %v5268_v49  ;;  %v5325_v49 = vpack.c.bf16 %v2740_v48, %v2739_v47  ;;  %v2919_v48 = vld [vmem:[#allocation25 + $0x60] sm:$0xff] }
 0x82e   : > { %5270 = vmatprep.subr.bf16.mxu0 %v6549_v0 }
 0x830   : > { %4615 = vmatmul.mubr.f32.vlgmr.msra.gmra.mrb[14].mxu0 %v7443_v20  ;;  %v2570_v20 = vld [vmem:[#allocation31 + $0x38] sm:$0xff] }
 0x831   : > { %4649 = vmatprep.mubr.msk.f32.mxu0 %vm6550_vm0, %v6551_v1  ;;  %5272 = vmatpush3.bf16.msra.mxu0 %v5271_v53  ;;  %v5280_v61 = vpack.c.bf16 %v2570_v20, %v2569_v60  ;;  %v2744_v53 = vld [vmem:[#allocation28 + $0x48] sm:$0xff] }
 0x832   : > { %5273 = vmatprep.subr.bf16.mxu0 %v6549_v0  ;;  %v5331_v54 = vpack.c.bf16 %v2744_v53, %v2743_v52  ;;  %v2748_v60 = vld [vmem:[#allocation28 + $0x68] sm:$0xff]  ;;  %v3095_v53 = vld [vmem:[#allocation23] sm:$0xff] }
 0x835   : > { %5275 = vmatpush3.bf16.msra.mxu0 %v5274_v55  ;;  %v2745_v55 = vld [vmem:[#allocation28 + $0x50] sm:$0xff] }
 0x836   : > { %5276 = vmatprep.subr.bf16.mxu0 %v6549_v0  ;;  %v5334_v57 = vpack.c.bf16 %v2746_v56, %v2745_v55  ;;  %v3097_v56 = vld [vmem:[#allocation23 + $0x10] sm:$0xff] }
 0x839   : > { %5278 = vmatpush3.bf16.msra.mxu0 %v5277_v59  ;;  %v2747_v59 = vld [vmem:[#allocation28 + $0x60] sm:$0xff] }
 0x83a   : > { %5279 = vmatprep.subr.bf16.mxu0 %v6549_v0  ;;  %v5337_v20 = vpack.c.bf16 %v2748_v60, %v2747_v59 }
 0x83d   : > { %5281 = vmatpush3.bf16.msra.mxu0 %v5280_v61  ;;  %v2749_v61 = vld [vmem:[#allocation28 + $0x70] sm:$0xff] }
 0x83e   : > { %5282 = vmatprep.subr.bf16.mxu0 %v6549_v0  ;;  %v5340_v63 = vpack.c.bf16 %v2750_v62, %v2749_v61  ;;  %v3099_v61 = vld [vmem:[#allocation23 + $0x20] sm:$0xff]  ;;  %v3100_v62 = vld [vmem:[#allocation23 + $0x28] sm:$0xff] }
 0x841   : > { %5284 = vmatpush3.bf16.msra.mxu0 %v5283_v2  ;;  %v2923_v2 = vld [vmem:[#allocation26] sm:$0xff] }
 0x842   : > { %5285 = vmatprep.subr.bf16.mxu0 %v6549_v0  ;;  %v5343_v4 = vpack.c.bf16 %v2924_v3, %v2923_v2  ;;  %v3101_v2 = vld [vmem:[#allocation23 + $0x30] sm:$0xff]  ;;  %v3102_v3 = vld [vmem:[#allocation23 + $0x38] sm:$0xff] }
 0x845   : > { %5287 = vmatpush3.bf16.msra.mxu0 %v5286_v5  ;;  %v2925_v5 = vld [vmem:[#allocation26 + $0x10] sm:$0xff] }
 0x846   : > { %5288 = vmatprep.subr.bf16.mxu0 %v6549_v0  ;;  %v5346_v9 = vpack.c.bf16 %v2926_v6, %v2925_v5  ;;  %v3103_v5 = vld [vmem:[#allocation23 + $0x40] sm:$0xff]  ;;  %v3104_v6 = vld [vmem:[#allocation23 + $0x48] sm:$0xff] }
 0x849   : > { %5290 = vmatpush3.bf16.msra.mxu0 %v5289_v8 }
 0x84a   : > { %5291 = vmatprep.subr.bf16.mxu0 %v6549_v0 }
 0x84d   : > { %5293 = vmatpush3.bf16.msra.mxu0 %v5292_v11  ;;  %v2928_v11 = vld [vmem:[#allocation26 + $0x28] sm:$0xff] }
 0x84e   : > { %5342 = vmatprep.subr.bf16.mxu0 %v6549_v0  ;;  %v5349_v12 = vpack.c.bf16 %v2928_v11, %v2927_v10  ;;  %v3107_v11 = vld [vmem:[#allocation23 + $0x60] sm:$0xff] }
 0x8e3   : > { %v2387_v17 = vpop.f32.mrb[12].mxu0 }
 0x8e4   : > { %v4511_v18 = vpop.f32.mrb[13].mxu0  ;;  %4580 = vmatmul.mubr.f32.vlgmr.msra.gmra.mrb[12].mxu1 %v2387_v17  ;;  %v2932_v17 = vld [vmem:[#allocation26 + $0x48] sm:$0xff] }
 0x8e5   : > { %5296 = vmatpush3.bf16.msra.mxu1 %v5295_v14  ;;  %4684 = vmatprep.mubr.msk.f32.mxu1 %vm6550_vm0, %v6551_v1  ;;  %v2930_v14 = vld [vmem:[#allocation26 + $0x38] sm:$0xff]  ;;  %v5355_v18 = vpack.c.bf16 %v2932_v17, %v2931_v16  ;;  %v3079_v17 = vld [vmem:[#allocation22] sm:$0xff] }
 0x8e6   : > { %5297 = vmatprep.subr.bf16.mxu1 %v6549_v0  ;;  %v5352_v15 = vpack.c.bf16 %v2930_v14, %v2929_v13  ;;  %v3109_v14 = vld [vmem:[#allocation23 + $0x70] sm:$0xff] }
 0x8e9   : > { %5299 = vmatpush3.bf16.msra.mxu1 %v5298_v19  ;;  %v2933_v19 = vld [vmem:[#allocation26 + $0x50] sm:$0xff] }
 0x8ea   : > { %5300 = vmatprep.subr.bf16.mxu1 %v6549_v0  ;;  %v5358_v22 = vpack.c.bf16 %v2934_v21, %v2933_v19  ;;  %v3081_v19 = vld [vmem:[#allocation22 + $0x10] sm:$0xff] }
 0x8ed   : > { %5302 = vmatpush3.bf16.msra.mxu1 %v5301_v24  ;;  %v2935_v24 = vld [vmem:[#allocation26 + $0x60] sm:$0xff] }
 0x8ee   : > { %5303 = vmatprep.subr.bf16.mxu1 %v6549_v0  ;;  %v5361_v26 = vpack.c.bf16 %v2936_v25, %v2935_v24  ;;  %v3083_v25 = vld [vmem:[#allocation22 + $0x20] sm:$0xff] }
 0x8f1   : > { %5305 = vmatpush3.bf16.msra.mxu1 %v5304_v29  ;;  %v2937_v29 = vld [vmem:[#allocation26 + $0x70] sm:$0xff] }
 0x8f2   : > { %5306 = vmatprep.subr.bf16.mxu1 %v6549_v0  ;;  %v5364_v31 = vpack.c.bf16 %v2938_v30, %v2937_v29  ;;  %v3085_v30 = vld [vmem:[#allocation22 + $0x30] sm:$0xff] }
 0x8f5   : > { %5308 = vmatpush3.bf16.msra.mxu1 %v5307_v33  ;;  %v2907_v33 = vld [vmem:[#allocation25] sm:$0xff] }
 0x8f6   : > { %5309 = vmatprep.subr.bf16.mxu1 %v6549_v0 }
 0x8f9   : > { %5311 = vmatpush3.bf16.msra.mxu1 %v5310_v32  ;;  %v5367_v32 = vpack.c.bf16 %v2908_v23, %v2907_v33  ;;  %v3088_v33 = vld [vmem:[#allocation22 + $0x48] sm:$0xff] }
 0x8fa   : > { %5312 = vmatprep.subr.bf16.mxu1 %v6549_v0 }
 0x8fd   : > { %5314 = vmatpush3.bf16.msra.mxu1 %v5313_v36  ;;  %v2911_v36 = vld [vmem:[#allocation25 + $0x20] sm:$0xff] }
 0x8fe   : > { %5315 = vmatprep.subr.bf16.mxu1 %v6549_v0  ;;  %v5373_v39 = vpack.c.bf16 %v2912_v38, %v2911_v36  ;;  %v3092_v36 = vld [vmem:[#allocation22 + $0x68] sm:$0xff] }
 0x901   : > { %5317 = vmatpush3.bf16.msra.mxu1 %v5316_v40  ;;  %v2913_v40 = vld [vmem:[#allocation25 + $0x30] sm:$0xff] }
 0x902   : > { %5318 = vmatprep.subr.bf16.mxu1 %v6549_v0 }
 0x904   : > { %4685 = vmatmul.mubr.f32.vlgmr.msra.gmra.mrb[14].mxu1 %v7421_v28  ;;  %v2742_v28 = vld [vmem:[#allocation28 + $0x38] sm:$0xff] }
 0x905   : > { %4719 = vmatprep.mubr.msk.f32.mxu1 %vm6550_vm0, %v6551_v1  ;;  %5320 = vmatpush3.bf16.msra.mxu1 %v5319_v44  ;;  %v5328_v51 = vpack.c.bf16 %v2742_v28, %v2741_v50  ;;  %v5379_v44 = vpack.c.bf16 %v2916_v43, %v2915_v42  ;;  %v2921_v28 = vld [vmem:[#allocation25 + $0x70] sm:$0xff] }
 0x906   : > { %5321 = vmatprep.subr.bf16.mxu1 %v6549_v0 }
 0x909   : > { %5323 = vmatpush3.bf16.msra.mxu1 %v5322_v46  ;;  %v2918_v46 = vld [vmem:[#allocation25 + $0x58] sm:$0xff] }
 0x90a   : > { %5324 = vmatprep.subr.bf16.mxu1 %v6549_v0  ;;  %v5382_v47 = vpack.c.bf16 %v2918_v46, %v2917_v45 }
 0x90d   : > { %5326 = vmatpush3.bf16.msra.mxu1 %v5325_v49  ;;  %v2920_v49 = vld [vmem:[#allocation25 + $0x68] sm:$0xff] }
 0x90e   : > { %5327 = vmatprep.subr.bf16.mxu1 %v6549_v0  ;;  %v5385_v50 = vpack.c.bf16 %v2920_v49, %v2919_v48 }
 0x911   : > { %5329 = vmatpush3.bf16.msra.mxu1 %v5328_v51  ;;  %v2922_v51 = vld [vmem:[#allocation25 + $0x78] sm:$0xff] }
 0x912   : > { %5330 = vmatprep.subr.bf16.mxu1 %v6549_v0  ;;  %v5388_v52 = vpack.c.bf16 %v2922_v51, %v2921_v28 }
 0x915   : > { %5332 = vmatpush3.bf16.msra.mxu1 %v5331_v54  ;;  %v3096_v54 = vld [vmem:[#allocation23 + $0x8] sm:$0xff] }
 0x916   : > { %5333 = vmatprep.subr.bf16.mxu1 %v6549_v0  ;;  %v5391_v55 = vpack.c.bf16 %v3096_v54, %v3095_v53 }
 0x919   : > { %5335 = vmatpush3.bf16.msra.mxu1 %v5334_v57  ;;  %v3098_v57 = vld [vmem:[#allocation23 + $0x18] sm:$0xff] }
 0x91a   : > { %5336 = vmatprep.subr.bf16.mxu1 %v6549_v0 }
 0x91d   : > { %5338 = vmatpush3.bf16.msra.mxu1 %v5337_v20  ;;  %v5394_v20 = vpack.c.bf16 %v3098_v57, %v3097_v56 }
 0x91e   : > { %5339 = vmatprep.subr.bf16.mxu1 %v6549_v0 }
 0x921   : > { %5341 = vmatpush3.bf16.msra.mxu1 %v5340_v63  ;;  %v5397_v63 = vpack.c.bf16 %v3100_v62, %v3099_v61 }
 0x922   : > { %5390 = vmatprep.subr.bf16.mxu1 %v6549_v0 }
 0x9b7   : > { %v2559_v7 = vpop.f32.mrb[12].mxu1 }
 0x9b8   : > { %v4581_v8 = vpop.f32.mrb[13].mxu1  ;;  %4650 = vmatmul.mubr.f32.vlgmr.msra.gmra.mrb[14].mxu0 %v2559_v7  ;;  %v5403_v7 = vpack.c.bf16 %v3104_v6, %v3103_v5 }
 0x9b9   : > { %5344 = vmatpush3.bf16.msra.mxu0 %v5343_v4  ;;  %4754 = vmatprep.mubr.msk.f32.mxu0 %vm6550_vm0, %v6551_v1  ;;  %v5400_v4 = vpack.c.bf16 %v3102_v3, %v3101_v2  ;;  %v3105_v8 = vld [vmem:[#allocation23 + $0x50] sm:$0xff] }
 0x9ba   : > { %5345 = vmatprep.subr.bf16.mxu0 %v6549_v0 }
 0x9bd   : > { %5347 = vmatpush3.bf16.msra.mxu0 %v5346_v9  ;;  %v3106_v9 = vld [vmem:[#allocation23 + $0x58] sm:$0xff] }
 0x9be   : > { %5348 = vmatprep.subr.bf16.mxu0 %v6549_v0  ;;  %v5406_v10 = vpack.c.bf16 %v3106_v9, %v3105_v8 }
 0x9c1   : > { %5350 = vmatpush3.bf16.msra.mxu0 %v5349_v12  ;;  %v3108_v12 = vld [vmem:[#allocation23 + $0x68] sm:$0xff] }
 0x9c2   : > { %5351 = vmatprep.subr.bf16.mxu0 %v6549_v0  ;;  %v5409_v13 = vpack.c.bf16 %v3108_v12, %v3107_v11 }
 0x9c5   : > { %5353 = vmatpush3.bf16.msra.mxu0 %v5352_v15  ;;  %v3110_v15 = vld [vmem:[#allocation23 + $0x78] sm:$0xff] }
 0x9c6   : > { %5354 = vmatprep.subr.bf16.mxu0 %v6549_v0  ;;  %v5412_v16 = vpack.c.bf16 %v3110_v15, %v3109_v14 }
 0x9c9   : > { %5356 = vmatpush3.bf16.msra.mxu0 %v5355_v18  ;;  %v3080_v18 = vld [vmem:[#allocation22 + $0x8] sm:$0xff] }
 0x9ca   : > { %5357 = vmatprep.subr.bf16.mxu0 %v6549_v0  ;;  %v5415_v21 = vpack.c.bf16 %v3080_v18, %v3079_v17 }
 0x9cd   : > { %5359 = vmatpush3.bf16.msra.mxu0 %v5358_v22  ;;  %v3082_v22 = vld [vmem:[#allocation22 + $0x18] sm:$0xff] }
 0x9ce   : > { %5360 = vmatprep.subr.bf16.mxu0 %v6549_v0  ;;  %v5418_v24 = vpack.c.bf16 %v3082_v22, %v3081_v19 }
 0x9d1   : > { %5362 = vmatpush3.bf16.msra.mxu0 %v5361_v26  ;;  %v3084_v26 = vld [vmem:[#allocation22 + $0x28] sm:$0xff] }
 0x9d2   : > { %5363 = vmatprep.subr.bf16.mxu0 %v6549_v0  ;;  %v5421_v29 = vpack.c.bf16 %v3084_v26, %v3083_v25 }
 0x9d5   : > { %5365 = vmatpush3.bf16.msra.mxu0 %v5364_v31 }
 0x9d6   : > { %5366 = vmatprep.subr.bf16.mxu0 %v6549_v0 }
 0x9d8   : > { %4755 = vmatmul.mubr.f32.vlgmr.msra.gmra.mrb[16].mxu0 %v7399_v37  ;;  %v2914_v37 = vld [vmem:[#allocation25 + $0x38] sm:$0xff] }
 0x9d9   : > { %4789 = vmatprep.mubr.msk.f32.mxu0 %vm6550_vm0, %v6551_v1  ;;  %5368 = vmatpush3.bf16.msra.mxu0 %v5367_v32  ;;  %v5376_v41 = vpack.c.bf16 %v2914_v37, %v2913_v40  ;;  %v3090_v32 = vld [vmem:[#allocation22 + $0x58] sm:$0xff] }
 0x9da   : > { %5369 = vmatprep.subr.bf16.mxu0 %v6549_v0  ;;  %v5430_v34 = vpack.c.bf16 %v3090_v32, %v3089_v27  ;;  %v3094_v40 = vld [vmem:[#allocation22 + $0x78] sm:$0xff] }
 0x9dd   : > { %5371 = vmatpush3.bf16.msra.mxu0 %v5370_v35  ;;  %v3091_v35 = vld [vmem:[#allocation22 + $0x60] sm:$0xff] }
 0x9de   : > { %5372 = vmatprep.subr.bf16.mxu0 %v6549_v0  ;;  %v5433_v38 = vpack.c.bf16 %v3092_v36, %v3091_v35 }
 0x9e1   : > { %5374 = vmatpush3.bf16.msra.mxu0 %v5373_v39  ;;  %v3093_v39 = vld [vmem:[#allocation22 + $0x70] sm:$0xff] }
 0x9e2   : > { %5375 = vmatprep.subr.bf16.mxu0 %v6549_v0  ;;  %v5436_v37 = vpack.c.bf16 %v3094_v40, %v3093_v39 }
 0x9e5   : > { %5377 = vmatpush3.bf16.msra.mxu0 %v5376_v41 }
 0x9e6   : > { %5378 = vmatprep.subr.bf16.mxu0 %v6549_v0 }
 0x9e9   : > { %5380 = vmatpush3.bf16.msra.mxu0 %v5379_v44 }
 0x9ea   : > { %5381 = vmatprep.subr.bf16.mxu0 %v6549_v0 }
 0x9ed   : > { %5383 = vmatpush3.bf16.msra.mxu0 %v5382_v47 }
 0x9ee   : > { %5384 = vmatprep.subr.bf16.mxu0 %v6549_v0 }
 0x9f1   : > { %5386 = vmatpush3.bf16.msra.mxu0 %v5385_v50 }
 0x9f2   : > { %5387 = vmatprep.subr.bf16.mxu0 %v6549_v0 }
 0x9f5   : > { %5389 = vmatpush3.bf16.msra.mxu0 %v5388_v52 }
 0xa8b   : > { %v2731_v59 = vpop.f32.mrb[14].mxu0 }
 0xa8c   : > { %v4651_v60 = vpop.f32.mrb[15].mxu0  ;;  %4720 = vmatmul.mubr.f32.vlgmr.msra.gmra.mrb[14].mxu1 %v2731_v59 }
 0xa8d   : > { %5392 = vmatpush3.bf16.msra.mxu1 %v5391_v55  ;;  %4824 = vmatprep.mubr.msk.f32.mxu1 %vm6550_vm0, %v6551_v1 }
 0xa8e   : > { %5393 = vmatprep.subr.bf16.mxu1 %v6549_v0 }
 0xa91   : > { %5395 = vmatpush3.bf16.msra.mxu1 %v5394_v20 }
 0xa92   : > { %5396 = vmatprep.subr.bf16.mxu1 %v6549_v0 }
 0xa95   : > { %5398 = vmatpush3.bf16.msra.mxu1 %v5397_v63 }
 0xa96   : > { %5399 = vmatprep.subr.bf16.mxu1 %v6549_v0 }
 0xa99   : > { %5401 = vmatpush3.bf16.msra.mxu1 %v5400_v4 }
 0xa9a   : > { %5402 = vmatprep.subr.bf16.mxu1 %v6549_v0 }
 0xa9d   : > { %5404 = vmatpush3.bf16.msra.mxu1 %v5403_v7 }
 0xa9e   : > { %5405 = vmatprep.subr.bf16.mxu1 %v6549_v0 }
 0xaa1   : > { %5407 = vmatpush3.bf16.msra.mxu1 %v5406_v10 }
 0xaa2   : > { %5408 = vmatprep.subr.bf16.mxu1 %v6549_v0 }
 0xaa5   : > { %5410 = vmatpush3.bf16.msra.mxu1 %v5409_v13 }
 0xaa6   : > { %5411 = vmatprep.subr.bf16.mxu1 %v6549_v0 }
 0xaa9   : > { %5413 = vmatpush3.bf16.msra.mxu1 %v5412_v16 }
 0xaaa   : > { %5414 = vmatprep.subr.bf16.mxu1 %v6549_v0 }
 0xaac   : > { %4825 = vmatmul.mubr.f32.vlgmr.msra.gmra.mrb[16].mxu1 %v7383_v58  ;;  %v3086_v58 = vld [vmem:[#allocation22 + $0x38] sm:$0xff] }
 0xaad   : > { %4859 = vmatprep.mubr.msk.f32.mxu1 %vm6550_vm0, %v6551_v1  ;;  %5416 = vmatpush3.bf16.msra.mxu1 %v5415_v21  ;;  %v5424_v31 = vpack.c.bf16 %v3086_v58, %v3085_v30  ;;  %v3087_v1 = vld [vmem:[#allocation22 + $0x40] sm:$0xff] }
 0xaae   : > { %5417 = vmatprep.subr.bf16.mxu1 %v6549_v0  ;;  %v5427_v23 = vpack.c.bf16 %v3088_v33, %v3087_v1 }
 0xab1   : > { %5419 = vmatpush3.bf16.msra.mxu1 %v5418_v24 }
 0xab2   : > { %5420 = vmatprep.subr.bf16.mxu1 %v6549_v0 }
 0xab5   : > { %5422 = vmatpush3.bf16.msra.mxu1 %v5421_v29 }
 0xab6   : > { %5423 = vmatprep.subr.bf16.mxu1 %v6549_v0 }
 0xab9   : > { %5425 = vmatpush3.bf16.msra.mxu1 %v5424_v31 }
 0xaba   : > { %5426 = vmatprep.subr.bf16.mxu1 %v6549_v0 }
 0xabd   : > { %5428 = vmatpush3.bf16.msra.mxu1 %v5427_v23 }
 0xabe   : > { %5429 = vmatprep.subr.bf16.mxu1 %v6549_v0 }
 0xac1   : > { %5431 = vmatpush3.bf16.msra.mxu1 %v5430_v34 }
 0xac2   : > { %5432 = vmatprep.subr.bf16.mxu1 %v6549_v0 }
 0xac5   : > { %5434 = vmatpush3.bf16.msra.mxu1 %v5433_v38 }
 0xac6   : > { %5435 = vmatprep.subr.bf16.mxu1 %v6549_v0 }
 0xac9   : > { %5437 = vmatpush3.bf16.msra.mxu1 %v5436_v37 }
 0xb5f   : > { %v2903_v41 = vpop.f32.mrb[14].mxu1 }
 0xb60   : > { %v4721_v42 = vpop.f32.mrb[15].mxu1  ;;  %4790 = vmatmul.mubr.f32.vlgmr.msra.gmra.mrb[16].mxu0 %v2903_v41 }
 0xc33   : > { %v3075_v43 = vpop.f32.mrb[16].mxu0 }
 0xc34   : > { %v4791_v44 = vpop.f32.mrb[17].mxu0  ;;  %4860 = vmatmul.mubr.f32.vlgmr.msra.gmra.mrb[16].mxu1 %v3075_v43 }
 0xd07   : > { %v3247_v0 = vpop.f32.mrb[16].mxu1 }
 0xd08   : > { %3251 = vst [vmem:[%s1131_s11] sm:$0xf] %v3247_v0  ;;  %v4861_v45 = vpop.f32.mrb[17].mxu1 }
 0xd09   : > { %6420 = shalt.err (!%p6417_p7)
}
 0xd0a   : > { %s6421_s28 = scalar_lea.hbm %s7619_s26, 64  ;;  %s6425_s30 = scalar_lea.hbm %s7804_s12, 128 }
 0xd0b   : > { %p6422_p8 = scmp.ne.s32.totalorder %s7619_s26, %s6421_s28  ;;  %p6426_p1 = scmp.lt.u32.totalorder %s7619_s26, %s7804_s12 }
 0xd0c   : > { %p6427_p6 = scmp.lt.u32.totalorder %s6425_s30, %s6421_s28  ;;  %p6429_p5 = scmp.lt.u32.totalorder %s6421_s28, %s7619_s26 }
 0xd0d   : > { %p6423_p11 = pnand %p6422_p8, %p7805_p0 }
 0xd0e   : > { %p6428_p9 = por %p6427_p6, %p6426_p1 }
 0xd0f   : > { %p6424_p13 = pneg %p6423_p11 }
 0xd10   : > { %p6430_p10 = por %p6429_p5, %p6428_p9 }
 0xd12   : > { %p6431_p2 = pnand %p6430_p10, %p6424_p13 }
 0xd14   : > { %6434 = shalt.err (!%p6431_p2)
}
 0xd15   : > { %5546 = dma.vmem_to_hbm [thread:$0]  (%p7805_p0), %s7614_s7, 64, %s7619_s26, %s3253_s6  }
 0xd16 PF: > { %s7806_s10 = sld [smem:[#allocation58_spill]]  ;;  %s7807_s3 = sld [smem:[#allocation55_spill]] }
 0xd17   : > { %s7808_s9 = sld [smem:[#allocation63_spill]] }
 0xd1c   : > { %p5673_p3 = scmp.ge.s32.totalorder %s7806_s10, 2  ;;  %s3278_s4 = sand.u32 1, %s7807_s3  }
 0xd1d   : > { %p7809_p4 = scmp.ne.s32.totalorder %s7808_s9, 0  ;;  %s3279_s8 = scalar_lea.sflag [#allocation4], %s3278_s4 }
 0xd1f   : > { %p5622_p12 = pnand %p5673_p3, %p7809_p4 }
 0xd21   : > { %6504 = dma.done.wait (!%p5622_p12), %s3279_s8, 64  }
 0xd22   : > { %6506 = vsyncadd (!%p5622_p12), %s3279_s8, 4294967232  ;;  %s7810_s28 = sld [smem:[#allocation60_spill]]  ;;  %s7811_s27 = sld [smem:[#allocation56_spill]] }
 0xd23   : > { %s7812_s3 = sld [smem:[#allocation57_spill]]  ;;  %s7813_s7 = sld [smem:[#allocation61_spill]] }
 0xd28   : > { %p49_p7 = scmp.ge.s32.totalorder %s7810_s28, 4  }
 0xd2a   :  { %51 = sbr.rel (!%p49_p7) target bundleno = 34 (0x22), region = 256 }
 0xd31   :  { %3284 = vsyncpa [#allocation3], 1 }
 0xd32   :  { %3286 = vsyncpa [#allocation3 + $0x1], 1 }
 0xd33   :  { %3287 = vsyncpa [#allocation6], 1 }
 0xd34   :  { %3288 = vsyncpa [#allocation9], 1 }
 0xd35   :  { %3289 = vsyncpa [#allocation12], 1 }
 0xd36   :  { %3290 = vsyncpa [#allocation15], 1 }
 0xd37   :  { %3291 = vsyncpa [#allocation18], 1 }
 0xd38   :  { %3292 = vsyncpa [#allocation21], 1 }
 0xd39   :  { %3293 = vsyncpa [#allocation24], 1 }
 0xd3a   :  { %3294 = vsyncpa [#allocation27], 1 }
 0xd3b   :  { %3295 = vsyncpa [#allocation30], 1 }
 0xd3c   :  { %3296 = vsyncpa [#allocation33], 1 }
 0xd3d   :  { %3297 = vsyncpa [#allocation36], 1 }
 0xd3e   :  { %3298 = vsyncpa [#allocation39], 1 }
 0xd3f   :  { %3299 = vsyncpa [#allocation4], 1 }
 0xd40   :  { %3301 = vsyncpa [#allocation4 + $0x1], 1 }

</bundles_post_ra>
